<compile_context>
chip_gen: v7x
topology: tpu7x:2x2x1
jax: 0.10.0
libtpu: 0.0.40
codegen_flags: <defaults>
</compile_context>

<pallas_src>
import numpy as np
import jax
import jax.numpy as jnp
from jax.experimental import pallas as pl
from jax.experimental.pallas import tpu as pltpu


def _round_up(n, m):
    return ((n + m - 1) // m) * m


# ----------------------------------------------------------------------------
# Fused Pallas kernel: 5x5 'same' conv (as 5 banded MXU matmuls) + ReLU
# + fused 6x6/6 max-pool + Flatten + Linear(512-padded) + ReLU + Linear(1),
# for one batch tile.
# ----------------------------------------------------------------------------
def _softnet_kernel(x_ref, bmat_ref, bct_ref, w1_ref, b1_ref, w2_ref, b2_ref,
                    o_ref):
    # x_ref   : (TB, H+4, (W+4)*4)  zero-padded input, lane = w*4 + cin
    # bmat_ref: (5, (W+4)*4, W*32)  banded conv+routing matrix per kernel row
    # bct_ref : (1, W*32)           conv bias tiled across W (lane = w*32 + o)
    # w1_ref  : (F, 512)            Linear-1 weight (rows permuted, N padded)
    # b1_ref  : (1, 512)            Linear-1 bias (zero padded)
    # w2_ref  : (1, 512)            Linear-2 weight as a row (zero padded)
    # b2_ref  : (1,)  [SMEM]        Linear-2 bias scalar
    # o_ref   : (1, 1, TB)          lane-dense output block
    TB, HP, CW = x_ref.shape
    H = HP - 4
    W = CW // 4 - 4
    WC = bmat_ref.shape[2]          # W * 32
    CO = WC // W                    # 32 conv output channels
    Hp, Wp = H // 6, W // 6

    # ---- 5x5 'same' conv + one-hot channel routing on the MXU --------------
    # For each kernel row ky, one matmul contracts the 64 input lanes
    # (w'*4 + cin) against a banded matrix whose columns (w*32 + cout) already
    # contain the kx taps, the tap weights and the channel routing.
    x2d = x_ref[...].reshape(TB * HP, CW)          # layout-preserving (HP % 8 == 0)
    acc = None
    for ky in range(5):
        p = jnp.dot(x2d, bmat_ref[ky],
                    preferred_element_type=jnp.float32)      # (TB*HP, WC)
        p = p.reshape(TB, HP, WC)
        contrib = p[:, ky:ky + H, :]                          # row shift by ky
        acc = contrib if acc is None else acc + contrib       # (TB, H, WC)

    conv = jnp.maximum(acc + bct_ref[...].reshape(1, 1, WC), 0.0)

    # ---- fused 6x6/6 max pool (== MaxPool 3x3/3 then 2x2/2, floor mode) ----
    pooled = []
    for i in range(Hp):
        hp = jnp.max(conv[:, 6 * i:6 * i + 6, :], axis=1)     # (TB, WC)
        for j in range(Wp):
            m = hp[:, (6 * j) * CO:(6 * j + 1) * CO]
            for dw in range(1, 6):
                lo = (6 * j + dw) * CO
                m = jnp.maximum(m, hp[:, lo:lo + CO])
            pooled.append(m)                                   # (TB, 32)
    feat = jnp.concatenate(pooled, axis=-1)                    # (TB, 32*Hp*Wp)

    # ---- head: lane-dense MXU matmul + ReLU, then 512 -> 1 lane reduction --
    h = jnp.dot(feat, w1_ref[...], preferred_element_type=jnp.float32)
    h = jnp.maximum(h + b1_ref[...], 0.0)                      # (TB, 512)
    res = jnp.sum(h * w2_ref[...], axis=-1) + b2_ref[0]        # (TB,)
    o_ref[...] = res.reshape(1, 1, TB)                         # lane-dense store


# ----------------------------------------------------------------------------
# Parameters (deterministic, synthetic — shapes the nn.Module implies)
# ----------------------------------------------------------------------------
def init_params(key, flat_features):
    ks = jax.random.split(key, 5)

    def conv_init(k, cout):
        kw, kb = jax.random.split(k)
        bound = 1.0 / np.sqrt(25.0)
        w = jax.random.uniform(kw, (cout, 1, 5, 5), jnp.float32, -bound, bound)
        b = jax.random.uniform(kb, (cout,), jnp.float32, -bound, bound)
        return w, b

    def lin_init(k, fin, fout):
        kw, kb = jax.random.split(k)
        bound = 1.0 / np.sqrt(fin)
        w = jax.random.uniform(kw, (fin, fout), jnp.float32, -bound, bound)
        b = jax.random.uniform(kb, (fout,), jnp.float32, -bound, bound)
        return w, b

    wc1, bc1 = conv_init(ks[0], 3)
    wc2, bc2 = conv_init(ks[1], 5)
    wc3, bc3 = conv_init(ks[2], 8)
    wl1, bl1 = lin_init(ks[3], flat_features, 400)   # (in, out) orientation
    wl2, bl2 = lin_init(ks[4], 400, 1)
    return dict(wc1=wc1, bc1=bc1, wc2=wc2, bc2=bc2, wc3=wc3, bc3=bc3,
                wl1=wl1, bl1=bl1, wl2=wl2, bl2=bl2)


# ----------------------------------------------------------------------------
# One-time weight packing (hoisted out of the traced forward; pure numpy)
# ----------------------------------------------------------------------------
def pack_params(params, H, W):
    Hp, Wp = H // 6, W // 6
    nblk = Hp * Wp
    wcs = [np.asarray(params["wc1"]), np.asarray(params["wc2"]),
           np.asarray(params["wc3"])]
    bcs = [np.asarray(params["bc1"]), np.asarray(params["bc2"]),
           np.asarray(params["bc3"])]
    # torch.cat order: (conv1, conv2, conv3, conv1, conv2, conv3) applied to
    # input channels (0, 1, 2, 3, 3, 3).
    branches = [(0, 0), (1, 1), (2, 2), (0, 3), (1, 3), (2, 3)]
    kernels, cins, bias = [], [], []
    for conv_idx, in_ch in branches:
        w = wcs[conv_idx]                          # (cout, 1, 5, 5)
        for oc in range(w.shape[0]):
            kernels.append(w[oc, 0])
            cins.append(in_ch)
        bias.append(bcs[conv_idx])
    bias = np.concatenate(bias).astype(np.float32)
    n_out = len(kernels)
    assert n_out == 32

    WC = W * n_out
    # Banded conv+routing matrices: for kernel row ky,
    #   bmat[ky, (w+kx)*4 + cin(o), w*32 + o] = kernel_o[ky, kx]
    bmat = np.zeros((5, (W + 4) * 4, WC), np.float32)
    for o, (k5, cin) in enumerate(zip(kernels, cins)):
        for ky in range(5):
            for kx in range(5):
                for w_ in range(W):
                    bmat[ky, (w_ + kx) * 4 + cin, w_ * n_out + o] = k5[ky, kx]
    bct = np.tile(bias, W).reshape(1, WC).astype(np.float32)

    # Linear-1 rows permuted: kernel feature order is (block k, channel c) =
    # k*32 + c; PyTorch NCHW flatten order is c*nblk + k.  Head padded to 512.
    perm = np.array([c * nblk + k for k in range(nblk) for c in range(n_out)])
    w1 = np.asarray(params["wl1"])[perm]           # (F, 400)
    F = w1.shape[0]
    w1p = np.zeros((F, 512), np.float32)
    w1p[:, :400] = w1
    b1p = np.zeros((1, 512), np.float32)
    b1p[0, :400] = np.asarray(params["bl1"])
    w2p = np.zeros((1, 512), np.float32)
    w2p[0, :400] = np.asarray(params["wl2"]).reshape(-1)
    b2 = np.asarray(params["bl2"]).reshape(1).astype(np.float32)
    return dict(bmat=jnp.asarray(bmat), bct=jnp.asarray(bct),
                w1=jnp.asarray(w1p), b1=jnp.asarray(b1p),
                w2=jnp.asarray(w2p), b2=jnp.asarray(b2))


# ----------------------------------------------------------------------------
# Forward: cheap layout prep in JAX, everything else in the fused Pallas kernel
# ----------------------------------------------------------------------------
def softnet_forward(x, packed, *, tile_b=128):
    B, C, H, W = x.shape
    assert C == 4
    F, Nh = packed["w1"].shape
    WC = packed["bct"].shape[1]
    CW = (W + 4) * 4

    # Large default tile fills the MXU M dim / amortizes per-step overhead,
    # but cap at round_up(B, 8) so tiny batches do not compute padded rows.
    TB = min(tile_b, _round_up(B, 8))
    Bp = _round_up(B, TB)
    nb = Bp // TB

    # Lane-dense, contiguous input layout: (Bp, H+4, (W+4)*4), lane = w*4 + c.
    xn = jnp.transpose(x, (0, 2, 3, 1)).astype(jnp.float32)    # NHWC
    xn = jnp.pad(xn, ((0, Bp - B), (2, 2), (2, 2), (0, 0)))    # 'same' + batch pad
    xn = xn.reshape(Bp, H + 4, CW)

    flops = int(10 * Bp * (H + 4) * CW * WC          # conv matmuls (5 x MXU)
                + 2 * Bp * F * Nh                    # head matmul
                + 6 * Bp * H * WC)                   # bias/ReLU/pooling
    bytes_accessed = int(4 * (xn.size + packed["bmat"].size + packed["bct"].size
                              + packed["w1"].size + 2 * Nh + 1 + Bp))

    full2 = lambda b: (0, 0)
    out = pl.pallas_call(
        _softnet_kernel,
        out_shape=jax.ShapeDtypeStruct((nb, 1, TB), jnp.float32),
        grid=(nb,),
        in_specs=[
            pl.BlockSpec((TB, H + 4, CW), lambda b: (b, 0, 0)),
            pl.BlockSpec((5, CW, WC), lambda b: (0, 0, 0)),
            pl.BlockSpec((1, WC), full2),
            pl.BlockSpec((F, Nh), full2),
            pl.BlockSpec((1, Nh), full2),
            pl.BlockSpec((1, Nh), full2),
            pl.BlockSpec(memory_space=pltpu.MemorySpace.SMEM),   # scalar bias
        ],
        out_specs=pl.BlockSpec((1, 1, TB), lambda b: (b, 0, 0)),
        compiler_params=pltpu.CompilerParams(
            dimension_semantics=("parallel",)),
        cost_estimate=pl.CostEstimate(flops=flops, transcendentals=0,
                                      bytes_accessed=bytes_accessed),
    )(xn, packed["bmat"], packed["bct"], packed["w1"], packed["b1"],
      packed["w2"], packed["b2"])
    return out.reshape(Bp, 1)[:B]


# ----------------------------------------------------------------------------
# Pure-JAX reference mirroring the PyTorch module exactly (verification only)
# ----------------------------------------------------------------------------
def reference_forward(x, params):
    B = x.shape[0]
    hi = jax.lax.Precision.HIGHEST

    def branch(xi, w, b):
        y = jax.lax.conv_general_dilated(
            xi, w, (1, 1), "SAME",
            dimension_numbers=("NCHW", "OIHW", "NCHW"), precision=hi)
        y = jnp.maximum(y + b[None, :, None, None], 0.0)
        return jax.lax.reduce_window(y, -jnp.inf, jax.lax.max,
                                     (1, 1, 3, 3), (1, 1, 3, 3), "VALID")

    branch_params = [(params["wc1"], params["bc1"]),
                     (params["wc2"], params["bc2"]),
                     (params["wc3"], params["bc3"])] * 2
    chans = [branch(x[:, idx:idx + 1], w, b)
             for idx, (w, b) in zip([0, 1, 2, 3, 3, 3], branch_params)]
    merged = jnp.concatenate(chans, axis=1)                   # (B, 32, H/3, W/3)
    pooled = jax.lax.reduce_window(merged, -jnp.inf, jax.lax.max,
                                   (1, 1, 2, 2), (1, 1, 2, 2), "VALID")
    flat = pooled.reshape(B, -1)                              # NCHW flatten
    h = jnp.maximum(jnp.dot(flat, params["wl1"], precision=hi)
                    + params["bl1"], 0.0)
    return jnp.dot(h, params["wl2"], precision=hi) + params["bl2"]


# ----------------------------------------------------------------------------
if __name__ == "__main__":
    B, H, W = 2, 12, 12          # 12 is a multiple of 6 -> flat features = 128
    key = jax.random.PRNGKey(0)
    kx_, kp = jax.random.split(key)
    x = jax.random.normal(kx_, (B, 4, H, W), jnp.float32)

    flat_features = 32 * (H // 6) * (W // 6)                  # 128 (lane-dense)
    params = init_params(kp, flat_features)
    packed = pack_params(params, H, W)                        # hoisted packing

    fwd = jax.jit(softnet_forward)
    out = jax.block_until_ready(fwd(x, packed))

    ref = jax.block_until_ready(reference_forward(x, params))
    assert out.shape == (B, 1)
    assert np.allclose(np.asarray(out), np.asarray(ref), rtol=1e-4, atol=1e-4), \
        (np.asarray(out), np.asarray(ref))

    print("KERNEL_OK")
</pallas_src>

<mosaic_0001>
module attributes {stable_mosaic.version = 11 : i64} {
  func.func @_softnet_kernel(%arg0: i32, %arg1: memref<8x16x64xf32, #tpu.memory_space<vmem>>, %arg2: memref<5x64x384xf32, #tpu.memory_space<vmem>>, %arg3: memref<1x384xf32, #tpu.memory_space<vmem>>, %arg4: memref<128x512xf32, #tpu.memory_space<vmem>>, %arg5: memref<1x512xf32, #tpu.memory_space<vmem>>, %arg6: memref<1x512xf32, #tpu.memory_space<vmem>>, %arg7: memref<1xf32, #tpu.memory_space<smem>>, %arg8: memref<1x1x8xf32, #tpu.memory_space<vmem>>) attributes {dimension_semantics = [#tpu.dimension_semantics<parallel>], iteration_bounds = array<i64: 1>, scalar_prefetch = 0 : i64, scratch_operands = 0 : i64, tpu.core_type = #tpu.core_type<tc>, window_params = [{transform_indices = @transform_0, window_bounds = array<i64: 8, 16, 64>}, {pipeline_mode = #tpu.pipeline_mode<synchronous>, transform_indices = @transform_1, window_bounds = array<i64: 5, 64, 384>}, {pipeline_mode = #tpu.pipeline_mode<synchronous>, transform_indices = @transform_2, window_bounds = array<i64: 1, 384>}, {pipeline_mode = #tpu.pipeline_mode<synchronous>, transform_indices = @transform_3, window_bounds = array<i64: 128, 512>}, {pipeline_mode = #tpu.pipeline_mode<synchronous>, transform_indices = @transform_4, window_bounds = array<i64: 1, 512>}, {pipeline_mode = #tpu.pipeline_mode<synchronous>, transform_indices = @transform_5, window_bounds = array<i64: 1, 512>}, {transform_indices = @transform_6, window_bounds = array<i64: 1>}, {transform_indices = @transform_7, window_bounds = array<i64: 1, 1, 8>}]} {
    %c0 = arith.constant 0 : index
    %c0_0 = arith.constant 0 : index
    %c0_1 = arith.constant 0 : index
    %0 = vector.load %arg1[%c0, %c0_0, %c0_1] : memref<8x16x64xf32, #tpu.memory_space<vmem>>, vector<8x16x64xf32>
    %1 = vector.shape_cast %0 : vector<8x16x64xf32> to vector<128x64xf32>
    %c0_2 = arith.constant 0 : index
    %c0_3 = arith.constant 0 : index
    %c0_4 = arith.constant 0 : index
    %2 = vector.load %arg2[%c0_2, %c0_3, %c0_4] : memref<5x64x384xf32, #tpu.memory_space<vmem>>, vector<1x64x384xf32>
    %3 = vector.shape_cast %2 : vector<1x64x384xf32> to vector<64x384xf32>
    %cst = arith.constant dense<0.000000e+00> : vector<128x384xf32>
    %4 = tpu.matmul %1, %3, %cst {dimension_numbers = #tpu.dot_dimension_numbers<[1], [0], [0], [1], [0, 0, 1, 1], [], []>} : vector<128x64xf32>, vector<64x384xf32>, vector<128x384xf32> -> vector<128x384xf32>
    %5 = vector.shape_cast %4 : vector<128x384xf32> to vector<8x16x384xf32>
    %6 = vector.extract_strided_slice %5 {offsets = [0, 0, 0], sizes = [8, 12, 384], strides = [1, 1, 1]} : vector<8x16x384xf32> to vector<8x12x384xf32>
    %c1 = arith.constant 1 : index
    %c0_5 = arith.constant 0 : index
    %c0_6 = arith.constant 0 : index
    %7 = vector.load %arg2[%c1, %c0_5, %c0_6] : memref<5x64x384xf32, #tpu.memory_space<vmem>>, vector<1x64x384xf32>
    %8 = vector.shape_cast %7 : vector<1x64x384xf32> to vector<64x384xf32>
    %cst_7 = arith.constant dense<0.000000e+00> : vector<128x384xf32>
    %9 = tpu.matmul %1, %8, %cst_7 {dimension_numbers = #tpu.dot_dimension_numbers<[1], [0], [0], [1], [0, 0, 1, 1], [], []>} : vector<128x64xf32>, vector<64x384xf32>, vector<128x384xf32> -> vector<128x384xf32>
    %10 = vector.shape_cast %9 : vector<128x384xf32> to vector<8x16x384xf32>
    %11 = vector.extract_strided_slice %10 {offsets = [0, 1, 0], sizes = [8, 12, 384], strides = [1, 1, 1]} : vector<8x16x384xf32> to vector<8x12x384xf32>
    %12 = arith.addf %6, %11 : vector<8x12x384xf32>
    %c2 = arith.constant 2 : index
    %c0_8 = arith.constant 0 : index
    %c0_9 = arith.constant 0 : index
    %13 = vector.load %arg2[%c2, %c0_8, %c0_9] : memref<5x64x384xf32, #tpu.memory_space<vmem>>, vector<1x64x384xf32>
    %14 = vector.shape_cast %13 : vector<1x64x384xf32> to vector<64x384xf32>
    %cst_10 = arith.constant dense<0.000000e+00> : vector<128x384xf32>
    %15 = tpu.matmul %1, %14, %cst_10 {dimension_numbers = #tpu.dot_dimension_numbers<[1], [0], [0], [1], [0, 0, 1, 1], [], []>} : vector<128x64xf32>, vector<64x384xf32>, vector<128x384xf32> -> vector<128x384xf32>
    %16 = vector.shape_cast %15 : vector<128x384xf32> to vector<8x16x384xf32>
    %17 = vector.extract_strided_slice %16 {offsets = [0, 2, 0], sizes = [8, 12, 384], strides = [1, 1, 1]} : vector<8x16x384xf32> to vector<8x12x384xf32>
    %18 = arith.addf %12, %17 : vector<8x12x384xf32>
    %c3 = arith.constant 3 : index
    %c0_11 = arith.constant 0 : index
    %c0_12 = arith.constant 0 : index
    %19 = vector.load %arg2[%c3, %c0_11, %c0_12] : memref<5x64x384xf32, #tpu.memory_space<vmem>>, vector<1x64x384xf32>
    %20 = vector.shape_cast %19 : vector<1x64x384xf32> to vector<64x384xf32>
    %cst_13 = arith.constant dense<0.000000e+00> : vector<128x384xf32>
    %21 = tpu.matmul %1, %20, %cst_13 {dimension_numbers = #tpu.dot_dimension_numbers<[1], [0], [0], [1], [0, 0, 1, 1], [], []>} : vector<128x64xf32>, vector<64x384xf32>, vector<128x384xf32> -> vector<128x384xf32>
    %22 = vector.shape_cast %21 : vector<128x384xf32> to vector<8x16x384xf32>
    %23 = vector.extract_strided_slice %22 {offsets = [0, 3, 0], sizes = [8, 12, 384], strides = [1, 1, 1]} : vector<8x16x384xf32> to vector<8x12x384xf32>
    %24 = arith.addf %18, %23 : vector<8x12x384xf32>
    %c4 = arith.constant 4 : index
    %c0_14 = arith.constant 0 : index
    %c0_15 = arith.constant 0 : index
    %25 = vector.load %arg2[%c4, %c0_14, %c0_15] : memref<5x64x384xf32, #tpu.memory_space<vmem>>, vector<1x64x384xf32>
    %26 = vector.shape_cast %25 : vector<1x64x384xf32> to vector<64x384xf32>
    %cst_16 = arith.constant dense<0.000000e+00> : vector<128x384xf32>
    %27 = tpu.matmul %1, %26, %cst_16 {dimension_numbers = #tpu.dot_dimension_numbers<[1], [0], [0], [1], [0, 0, 1, 1], [], []>} : vector<128x64xf32>, vector<64x384xf32>, vector<128x384xf32> -> vector<128x384xf32>
    %28 = vector.shape_cast %27 : vector<128x384xf32> to vector<8x16x384xf32>
    %29 = vector.extract_strided_slice %28 {offsets = [0, 4, 0], sizes = [8, 12, 384], strides = [1, 1, 1]} : vector<8x16x384xf32> to vector<8x12x384xf32>
    %30 = arith.addf %24, %29 : vector<8x12x384xf32>
    %c0_17 = arith.constant 0 : index
    %c0_18 = arith.constant 0 : index
    %31 = vector.load %arg3[%c0_17, %c0_18] : memref<1x384xf32, #tpu.memory_space<vmem>>, vector<1x384xf32>
    %32 = vector.shape_cast %31 : vector<1x384xf32> to vector<1x1x384xf32>
    %33 = vector.broadcast %32 : vector<1x1x384xf32> to vector<8x12x384xf32>
    %34 = arith.addf %30, %33 : vector<8x12x384xf32>
    %cst_19 = arith.constant 0.000000e+00 : f32
    %35 = vector.broadcast %cst_19 : f32 to vector<8x12x384xf32>
    %36 = arith.maximumf %34, %35 : vector<8x12x384xf32>
    %37 = vector.extract_strided_slice %36 {offsets = [0, 0, 0], sizes = [8, 6, 384], strides = [1, 1, 1]} : vector<8x12x384xf32> to vector<8x6x384xf32>
    %cst_20 = arith.constant dense<0xFF800000> : vector<8x384xf32>
    %38 = vector.multi_reduction <maximumf>, %37, %cst_20 [1] : vector<8x6x384xf32> to vector<8x384xf32>
    %39 = vector.extract_strided_slice %38 {offsets = [0, 0], sizes = [8, 32], strides = [1, 1]} : vector<8x384xf32> to vector<8x32xf32>
    %40 = vector.extract_strided_slice %38 {offsets = [0, 32], sizes = [8, 32], strides = [1, 1]} : vector<8x384xf32> to vector<8x32xf32>
    %41 = arith.maximumf %39, %40 : vector<8x32xf32>
    %42 = vector.extract_strided_slice %38 {offsets = [0, 64], sizes = [8, 32], strides = [1, 1]} : vector<8x384xf32> to vector<8x32xf32>
    %43 = arith.maximumf %41, %42 : vector<8x32xf32>
    %44 = vector.extract_strided_slice %38 {offsets = [0, 96], sizes = [8, 32], strides = [1, 1]} : vector<8x384xf32> to vector<8x32xf32>
    %45 = arith.maximumf %43, %44 : vector<8x32xf32>
    %46 = vector.extract_strided_slice %38 {offsets = [0, 128], sizes = [8, 32], strides = [1, 1]} : vector<8x384xf32> to vector<8x32xf32>
    %47 = arith.maximumf %45, %46 : vector<8x32xf32>
    %48 = vector.extract_strided_slice %38 {offsets = [0, 160], sizes = [8, 32], strides = [1, 1]} : vector<8x384xf32> to vector<8x32xf32>
    %49 = arith.maximumf %47, %48 : vector<8x32xf32>
    %50 = vector.extract_strided_slice %38 {offsets = [0, 192], sizes = [8, 32], strides = [1, 1]} : vector<8x384xf32> to vector<8x32xf32>
    %51 = vector.extract_strided_slice %38 {offsets = [0, 224], sizes = [8, 32], strides = [1, 1]} : vector<8x384xf32> to vector<8x32xf32>
    %52 = arith.maximumf %50, %51 : vector<8x32xf32>
    %53 = vector.extract_strided_slice %38 {offsets = [0, 256], sizes = [8, 32], strides = [1, 1]} : vector<8x384xf32> to vector<8x32xf32>
    %54 = arith.maximumf %52, %53 : vector<8x32xf32>
    %55 = vector.extract_strided_slice %38 {offsets = [0, 288], sizes = [8, 32], strides = [1, 1]} : vector<8x384xf32> to vector<8x32xf32>
    %56 = arith.maximumf %54, %55 : vector<8x32xf32>
    %57 = vector.extract_strided_slice %38 {offsets = [0, 320], sizes = [8, 32], strides = [1, 1]} : vector<8x384xf32> to vector<8x32xf32>
    %58 = arith.maximumf %56, %57 : vector<8x32xf32>
    %59 = vector.extract_strided_slice %38 {offsets = [0, 352], sizes = [8, 32], strides = [1, 1]} : vector<8x384xf32> to vector<8x32xf32>
    %60 = arith.maximumf %58, %59 : vector<8x32xf32>
    %61 = vector.extract_strided_slice %36 {offsets = [0, 6, 0], sizes = [8, 6, 384], strides = [1, 1, 1]} : vector<8x12x384xf32> to vector<8x6x384xf32>
    %cst_21 = arith.constant dense<0xFF800000> : vector<8x384xf32>
    %62 = vector.multi_reduction <maximumf>, %61, %cst_21 [1] : vector<8x6x384xf32> to vector<8x384xf32>
    %63 = vector.extract_strided_slice %62 {offsets = [0, 0], sizes = [8, 32], strides = [1, 1]} : vector<8x384xf32> to vector<8x32xf32>
    %64 = vector.extract_strided_slice %62 {offsets = [0, 32], sizes = [8, 32], strides = [1, 1]} : vector<8x384xf32> to vector<8x32xf32>
    %65 = arith.maximumf %63, %64 : vector<8x32xf32>
    %66 = vector.extract_strided_slice %62 {offsets = [0, 64], sizes = [8, 32], strides = [1, 1]} : vector<8x384xf32> to vector<8x32xf32>
    %67 = arith.maximumf %65, %66 : vector<8x32xf32>
    %68 = vector.extract_strided_slice %62 {offsets = [0, 96], sizes = [8, 32], strides = [1, 1]} : vector<8x384xf32> to vector<8x32xf32>
    %69 = arith.maximumf %67, %68 : vector<8x32xf32>
    %70 = vector.extract_strided_slice %62 {offsets = [0, 128], sizes = [8, 32], strides = [1, 1]} : vector<8x384xf32> to vector<8x32xf32>
    %71 = arith.maximumf %69, %70 : vector<8x32xf32>
    %72 = vector.extract_strided_slice %62 {offsets = [0, 160], sizes = [8, 32], strides = [1, 1]} : vector<8x384xf32> to vector<8x32xf32>
    %73 = arith.maximumf %71, %72 : vector<8x32xf32>
    %74 = vector.extract_strided_slice %62 {offsets = [0, 192], sizes = [8, 32], strides = [1, 1]} : vector<8x384xf32> to vector<8x32xf32>
    %75 = vector.extract_strided_slice %62 {offsets = [0, 224], sizes = [8, 32], strides = [1, 1]} : vector<8x384xf32> to vector<8x32xf32>
    %76 = arith.maximumf %74, %75 : vector<8x32xf32>
    %77 = vector.extract_strided_slice %62 {offsets = [0, 256], sizes = [8, 32], strides = [1, 1]} : vector<8x384xf32> to vector<8x32xf32>
    %78 = arith.maximumf %76, %77 : vector<8x32xf32>
    %79 = vector.extract_strided_slice %62 {offsets = [0, 288], sizes = [8, 32], strides = [1, 1]} : vector<8x384xf32> to vector<8x32xf32>
    %80 = arith.maximumf %78, %79 : vector<8x32xf32>
    %81 = vector.extract_strided_slice %62 {offsets = [0, 320], sizes = [8, 32], strides = [1, 1]} : vector<8x384xf32> to vector<8x32xf32>
    %82 = arith.maximumf %80, %81 : vector<8x32xf32>
    %83 = vector.extract_strided_slice %62 {offsets = [0, 352], sizes = [8, 32], strides = [1, 1]} : vector<8x384xf32> to vector<8x32xf32>
    %84 = arith.maximumf %82, %83 : vector<8x32xf32>
    %85 = tpu.concatenate %49, %60, %73, %84 in 1 : vector<8x32xf32>, vector<8x32xf32>, vector<8x32xf32>, vector<8x32xf32> -> vector<8x128xf32>
    %c0_22 = arith.constant 0 : index
    %c0_23 = arith.constant 0 : index
    %86 = vector.load %arg4[%c0_22, %c0_23] : memref<128x512xf32, #tpu.memory_space<vmem>>, vector<128x512xf32>
    %cst_24 = arith.constant dense<0.000000e+00> : vector<8x512xf32>
    %87 = tpu.matmul %85, %86, %cst_24 {dimension_numbers = #tpu.dot_dimension_numbers<[1], [0], [0], [1], [0, 0, 1, 1], [], []>} : vector<8x128xf32>, vector<128x512xf32>, vector<8x512xf32> -> vector<8x512xf32>
    %c0_25 = arith.constant 0 : index
    %c0_26 = arith.constant 0 : index
    %88 = vector.load %arg5[%c0_25, %c0_26] : memref<1x512xf32, #tpu.memory_space<vmem>>, vector<1x512xf32>
    %89 = vector.broadcast %88 : vector<1x512xf32> to vector<8x512xf32>
    %90 = arith.addf %87, %89 : vector<8x512xf32>
    %cst_27 = arith.constant 0.000000e+00 : f32
    %91 = vector.broadcast %cst_27 : f32 to vector<8x512xf32>
    %92 = arith.maximumf %90, %91 : vector<8x512xf32>
    %c0_28 = arith.constant 0 : index
    %c0_29 = arith.constant 0 : index
    %93 = vector.load %arg6[%c0_28, %c0_29] : memref<1x512xf32, #tpu.memory_space<vmem>>, vector<1x512xf32>
    %94 = vector.broadcast %93 : vector<1x512xf32> to vector<8x512xf32>
    %95 = arith.mulf %92, %94 : vector<8x512xf32>
    %cst_30 = arith.constant dense<0.000000e+00> : vector<8xf32>
    %96 = vector.multi_reduction <add>, %95, %cst_30 [1] : vector<8x512xf32> to vector<8xf32>
    %c0_31 = arith.constant 0 : index
    %97 = memref.load %arg7[%c0_31] : memref<1xf32, #tpu.memory_space<smem>>
    %98 = vector.broadcast %97 : f32 to vector<8xf32>
    %99 = arith.addf %96, %98 : vector<8xf32>
    %100 = vector.shape_cast %99 : vector<8xf32> to vector<1x1x8xf32>
    %c0_32 = arith.constant 0 : index
    %c0_33 = arith.constant 0 : index
    %c0_34 = arith.constant 0 : index
    %101 = vector.load %arg8[%c0_32, %c0_33, %c0_34] : memref<1x1x8xf32, #tpu.memory_space<vmem>>, vector<1x1x8xf32>
    tpu.vector_store %arg8[%c0_32, %c0_33, %c0_34], %100 {strides = array<i32>} : memref<1x1x8xf32, #tpu.memory_space<vmem>>, vector<1x1x8xf32>,
    return
  }
  func.func @transform_0(%arg0: i32) -> (i32, i32, i32) {
    %c0_i32 = arith.constant 0 : i32
    %c0_i32_0 = arith.constant 0 : i32
    %c0_i32_1 = arith.constant 0 : i32
    return %arg0, %c0_i32, %c0_i32_0 : i32, i32, i32
  }
  func.func @transform_1(%arg0: i32) -> (i32, i32, i32) {
    %c0_i32 = arith.constant 0 : i32
    %c0_i32_0 = arith.constant 0 : i32
    %c0_i32_1 = arith.constant 0 : i32
    %c0_i32_2 = arith.constant 0 : i32
    return %c0_i32, %c0_i32_0, %c0_i32_1 : i32, i32, i32
  }
  func.func @transform_2(%arg0: i32) -> (i32, i32) {
    %c0_i32 = arith.constant 0 : i32
    %c0_i32_0 = arith.constant 0 : i32
    %c0_i32_1 = arith.constant 0 : i32
    return %c0_i32, %c0_i32_0 : i32, i32
  }
  func.func @transform_3(%arg0: i32) -> (i32, i32) {
    %c0_i32 = arith.constant 0 : i32
    %c0_i32_0 = arith.constant 0 : i32
    %c0_i32_1 = arith.constant 0 : i32
    return %c0_i32, %c0_i32_0 : i32, i32
  }
  func.func @transform_4(%arg0: i32) -> (i32, i32) {
    %c0_i32 = arith.constant 0 : i32
    %c0_i32_0 = arith.constant 0 : i32
    %c0_i32_1 = arith.constant 0 : i32
    return %c0_i32, %c0_i32_0 : i32, i32
  }
  func.func @transform_5(%arg0: i32) -> (i32, i32) {
    %c0_i32 = arith.constant 0 : i32
    %c0_i32_0 = arith.constant 0 : i32
    %c0_i32_1 = arith.constant 0 : i32
    return %c0_i32, %c0_i32_0 : i32, i32
  }
  func.func @transform_6(%arg0: i32) -> i32 {
    %c0_i32 = arith.constant 0 : i32
    %c0_i32_0 = arith.constant 0 : i32
    return %c0_i32 : i32
  }
  func.func @transform_7(%arg0: i32) -> (i32, i32, i32) {
    %c0_i32 = arith.constant 0 : i32
    %c0_i32_0 = arith.constant 0 : i32
    %c0_i32_1 = arith.constant 0 : i32
    return %arg0, %c0_i32, %c0_i32_0 : i32, i32, i32
  }
}

</mosaic_0001>

<bundles_post_ra>
// kernel: softnet_forward.1
= control target key start
LH: loop header
LB: loop body
LE: loop exit
PB: predicated region body
PF: predicated region fallthrough
CT: control target
= control target key end

     0   :  { %13 = vsyncpa [#allocation4], 0  ;;  %s5179_s24 = smov [#allocation3]   ;;  %s7823_s0 = inlined_call_operand.vmem [shape: f32[8,16,64], index: 0, kind: input, shape index: {}]   ;;  %s7824_s1 = inlined_call_operand.vmem [shape: f32[5,64,384], index: 1, kind: input, shape index: {}]   ;;  %s7825_s2 = inlined_call_operand.vmem [shape: f32[1,384], index: 2, kind: input, shape index: {}]   ;;  %s7826_s3 = inlined_call_operand.hbm [shape: f32[128,512], index: 3, kind: input, shape index: {}]   ;;  %s7827_s4 = inlined_call_operand.vmem [shape: f32[1,512], index: 4, kind: input, shape index: {}]   ;;  %s7828_s5 = inlined_call_operand.vmem [shape: f32[1,512], index: 5, kind: input, shape index: {}]   ;;  %s7829_s6 = inlined_call_operand.<no memory space> [shape: f32[1], index: 6, kind: input, shape index: {}]   ;;  %s7830_s7 = inlined_call_operand.vmem [shape: f32[1,1,8], index: 7, kind: output, shape index: {}]  }
   0x1   :  { %s25_s25 = sshll.u32 %s5179_s24, 4  ;;  %s5155_s28 = scalar_lea.hbm %s7826_s3, 8192  ;;  %s26_s25 = int_to_ptr.vmem [resolvable:$true] %s25_s25 }
   0x2   :  { %p5156_p0 = scmp.ne.s32.totalorder %s7826_s3, %s5155_s28  ;;  %p5159_p1 = scmp.lt.u32.totalorder %s5155_s28, %s7826_s3 }
   0x4   :  { %p5161_p2 = pnand %p5159_p1, %p5156_p0 }
   0x6   :  { %5164 = shalt.err (!%p5161_p2)
}
   0x7   :  { %s5165_s10 = scalar_lea.vmem %s26_s25, 8192  ;;  %p5170_p4 = scmp.lt.s32.totalorder %s26_s25, %s26_s25 }
   0x8   :  { %p5166_p3 = scmp.ne.s32.totalorder %s26_s25, %s5165_s10  ;;  %p5171_p5 = scmp.lt.s32.totalorder %s5165_s10, %s5165_s10 }
   0xa   :  { %p5172_p6 = por %p5171_p5, %p5170_p4 }
   0xc   :  { %p5173_p7 = pnand %p5172_p6, %p5166_p3 }
   0xe   :  { %5176 = shalt.err (!%p5173_p7)
}
   0xf   :  { %s5180_s11 = smov 512   ;;  %s5181_s12 = smov 32  }
  0x10   :  { %31 = dma.hbm_to_vmem [thread:$0]  %s7826_s3, 8192, %s26_s25, [#allocation4], %s5180_s11, %s5180_s11, %s5181_s12  }
  0x11   :  { %5177 = dma.done.wait [#allocation4], 8192  }
  0x12   :  { %5178 = vsyncadd [#allocation4], 4294959104  ;;  %v5182_v0 = vmov 0.0   ;;  %v58_v1 = vld [vmem:[%s7824_s1 + $0x8] sm:$0xff]  ;;  %v61_v2 = vld [vmem:[%s7824_s1 + $0x20] sm:$0xff]  ;;  %vm81_vm0 = vcmask 523264  }
  0x13   :  { %194 = vmatprep.mubr.f32.mxu0 %v5182_v0  ;;  %266 = vmatprep.mubr.f32.mxu1 %v5182_v0  ;;  %v57_v3 = vld [vmem:[%s7824_s1] sm:$0xff]  ;;  %v4637_v4 = vpack.c.bf16 %v61_v2, %v58_v1  ;;  %v60_v5 = vld [vmem:[%s7824_s1 + $0x18] sm:$0xff]  ;;  %v67_v7 = vld [vmem:[%s7824_s1 + $0x50] sm:$0xff]  ;;  %vm815_vm1 = vcmask 1046528   ;;  %vm1363_vm2 = vcmask 1045504   ;;  %vm1911_vm3 = vcmask 1044480  }
  0x14   :  { %v64_v6 = vld [vmem:[%s7824_s1 + $0x38] sm:$0xff]  ;;  %v4639_v8 = vpack.c.bf16 %v60_v5, %v57_v3  ;;  %v63_v10 = vld [vmem:[%s7824_s1 + $0x30] sm:$0xff]  ;;  %v66_v11 = vld [vmem:[%s7824_s1 + $0x48] sm:$0xff]  ;;  %vm2459_vm4 = vcmask 1043456   ;;  %vm3181_vm5 = vcmask 1047558   ;;  %s5184_s28 = smov 64  }
  0x15   :  { %v4641_v9 = vpack.c.bf16 %v67_v7, %v64_v6  ;;  %v70_v12 = vld [vmem:[%s7824_s1 + $0x68] sm:$0xff]  ;;  %4638 = vmatprep.subr.bf16.mxu0 %v4637_v4  ;;  %4861 = vmatprep.subr.bf16.mxu1 %v4637_v4  ;;  %v73_v13 = vld [vmem:[%s7824_s1 + $0x80] sm:$0xff]  ;;  %v4643_v14 = vpack.c.bf16 %v66_v11, %v63_v10  ;;  %v72_v17 = vld [vmem:[%s7824_s1 + $0x78] sm:$0xff]  ;;  %vm3679_vm6 = vcmask 1041409   ;;  %vm3682_vm7 = vcmask 1042434  }
  0x16   :  { %4640 = vmatpush1.bf16.msra.mxu0 %v4639_v8  ;;  %4865 = vmatpush1.bf16.msra.mxu1 %v4639_v8  ;;  %v4645_v15 = vpack.c.bf16 %v73_v13, %v70_v12  ;;  %v69_v16 = vld [vmem:[%s7824_s1 + $0x60] sm:$0xff]  ;;  %v76_v18 = vld [vmem:[%s7824_s1 + $0x98] sm:$0xff]  ;;  %v79_v19 = vld [vmem:[%s7824_s1 + $0xb0] sm:$0xff]  ;;  %vm3685_vm8 = vcmask 1043459   ;;  %vm3688_vm9 = vcmask 1044484   ;;  %vm3691_vm10 = vcmask 1045509  }
  0x17   :  { %4642 = vmatprep.subr.bf16.mxu0 %v4641_v9  ;;  %4862 = vmatprep.subr.bf16.mxu1 %v4641_v9  ;;  %v4647_v20 = vpack.c.bf16 %v72_v17, %v69_v16  ;;  %v4649_v21 = vpack.c.bf16 %v79_v19, %v76_v18  ;;  %v75_v22 = vld [vmem:[%s7824_s1 + $0x90] sm:$0xff]  ;;  %v78_v23 = vld [vmem:[%s7824_s1 + $0xa8] sm:$0xff]  ;;  %v65_v31 = vld [vmem:[%s7824_s1 + $0x40] sm:$0xff]  ;;  %vm3694_vm11 = vcmask 1046534   ;;  %vm3697_vm12 = vcmask 1047559  }
  0x18   :  { %v59_v24 = vld [vmem:[%s7824_s1 + $0x10] sm:$0xff]  ;;  %v62_v25 = vld [vmem:[%s7824_s1 + $0x28] sm:$0xff]  ;;  %v4651_v28 = vpack.c.bf16 %v78_v23, %v75_v22  ;;  %v68_v32 = vld [vmem:[%s7824_s1 + $0x58] sm:$0xff]  ;;  %vm3775_vm13 = vcmask 261120   ;;  %vm3778_vm14 = vcmask 785408   ;;  %vm4054_vm15 = vcmask 57344  }
  0x19   :  { %v4095_v26 = vld [vmem:[%s7824_s1 + $0xd0] sm:$0xff]  ;;  %v4098_v27 = vld [vmem:[%s7824_s1 + $0xe8] sm:$0xff]  ;;  %v4653_v29 = vpack.c.bf16 %v62_v25, %v59_v24  ;;  %v4101_v33 = vld [vmem:[%s7824_s1 + $0x100] sm:$0xff]  ;;  %v4657_v37 = vpack.c.bf16 %v68_v32, %v65_v31 }
  0x1a   :  { %4644 = vmatpush1.bf16.msra.mxu0 %v4643_v14  ;;  %4866 = vmatpush1.bf16.msra.mxu1 %v4643_v14  ;;  %v4685_v30 = vpack.c.bf16 %v4098_v27, %v4095_v26  ;;  %v4104_v34 = vld [vmem:[%s7824_s1 + $0x118] sm:$0xff]  ;;  %v5315_v35 = vld [vmem:[%s7823_s0] sm:$0xff]  ;;  %v71_v38 = vld [vmem:[%s7824_s1 + $0x70] sm:$0xff] }
  0x1b   :  { %4646 = vmatprep.subr.bf16.mxu0 %v4645_v15  ;;  %4863 = vmatprep.subr.bf16.mxu1 %v4645_v15  ;;  %v5320_v36 = vld [vmem:[%s7823_s0 + $0x60] sm:$0xff]  ;;  %v74_v39 = vld [vmem:[%s7824_s1 + $0x88] sm:$0xff]  ;;  %v4689_v40 = vpack.c.bf16 %v4104_v34, %v4101_v33  ;;  %v80_v45 = vld [vmem:[%s7824_s1 + $0xb8] sm:$0xff] }
  0x1c   :  { %v5335_v41 = vld [vmem:[%s7823_s0 + $0x8] sm:$0xff]  ;;  %v4661_v43 = vpack.c.bf16 %v74_v39, %v71_v38  ;;  %v77_v44 = vld [vmem:[%s7824_s1 + $0xa0] sm:$0xff]  ;;  %v4107_v46 = vld [vmem:[%s7824_s1 + $0x130] sm:$0xff] }
  0x1d   :  { %v5340_v42 = vld [vmem:[%s7823_s0 + $0x68] sm:$0xff]  ;;  %v5364_v48 = vld [vmem:[%s7823_s0 + $0x10] sm:$0xff]  ;;  %v4665_v50 = vpack.c.bf16 %v80_v45, %v77_v44  ;;  %v4097_v52 = vld [vmem:[%s7824_s1 + $0xe0] sm:$0xff] }
  0x1e   :  { %4648 = vmatpush1.bf16.msra.mxu0 %v4647_v20  ;;  %4867 = vmatpush1.bf16.msra.mxu1 %v4647_v20  ;;  %v4110_v47 = vld [vmem:[%s7824_s1 + $0x148] sm:$0xff]  ;;  %v5369_v49 = vld [vmem:[%s7823_s0 + $0x70] sm:$0xff]  ;;  %v5386_v54 = vld [vmem:[%s7823_s0 + $0x18] sm:$0xff] }
  0x1f   :  { %4650 = vmatprep.subr.bf16.mxu0 %v4649_v21  ;;  %4864 = vmatprep.subr.bf16.mxu1 %v4649_v21  ;;  %v4094_v51 = vld [vmem:[%s7824_s1 + $0xc8] sm:$0xff]  ;;  %v4693_v53 = vpack.c.bf16 %v4110_v47, %v4107_v46  ;;  %v5391_v55 = vld [vmem:[%s7823_s0 + $0x78] sm:$0xff]  ;;  %v4093_v57 = vld [vmem:[%s7824_s1 + $0xc0] sm:$0xff] }
  0x20   :  { %v4669_v56 = vpack.c.bf16 %v4097_v52, %v4094_v51  ;;  %v4096_v58 = vld [vmem:[%s7824_s1 + $0xd8] sm:$0xff]  ;;  %v4113_v59 = vld [vmem:[%s7824_s1 + $0x160] sm:$0xff]  ;;  %v4103_v62 = vld [vmem:[%s7824_s1 + $0x110] sm:$0xff] }
  0x21   :  { %v4116_v60 = vld [vmem:[%s7824_s1 + $0x178] sm:$0xff]  ;;  %v5420_v63 = vld [vmem:[%s7823_s0 + $0x20] sm:$0xff]  ;;  %v4671_v1 = vpack.c.bf16 %v4096_v58, %v4093_v57  ;;  %v4099_v2 = vld [vmem:[%s7824_s1 + $0xf0] sm:$0xff] }
  0x22   :  { %4652 = vmatpush1.bf16.msra.mxu0 %v4651_v28  ;;  %4868 = vmatpush1.bf16.msra.mxu1 %v4651_v28  ;;  %v4100_v61 = vld [vmem:[%s7824_s1 + $0xf8] sm:$0xff]  ;;  %v4697_v3 = vpack.c.bf16 %v4116_v60, %v4113_v59  ;;  %v4102_v5 = vld [vmem:[%s7824_s1 + $0x108] sm:$0xff]  ;;  %v4153_v7 = vld [vmem:[%s7824_s1 + $0x1a0] sm:$0xff] }
  0x23   :  { %4654 = vmatprep.subr.bf16.mxu1 %v4653_v29  ;;  %4686 = vmatprep.subr.bf16.mxu0 %v4685_v30  ;;  %v4673_v4 = vpack.c.bf16 %v4103_v62, %v4100_v61  ;;  %v4150_v6 = vld [vmem:[%s7824_s1 + $0x188] sm:$0xff]  ;;  %v4109_v9 = vld [vmem:[%s7824_s1 + $0x140] sm:$0xff]  ;;  %v4675_v11 = vpack.c.bf16 %v4102_v5, %v4099_v2  ;;  %v4108_v15 = vld [vmem:[%s7824_s1 + $0x138] sm:$0xff] }
  0x24   :  { %v4106_v8 = vld [vmem:[%s7824_s1 + $0x128] sm:$0xff]  ;;  %v4701_v12 = vpack.c.bf16 %v4153_v7, %v4150_v6  ;;  %v4105_v14 = vld [vmem:[%s7824_s1 + $0x120] sm:$0xff]  ;;  %v4112_v16 = vld [vmem:[%s7824_s1 + $0x158] sm:$0xff] }
  0x25   :  { %4061 = vmatmul.mubr.msk.f32.vlgmr.msra.gmra.mrb[0].mxu0 %vm81_vm0, %v5315_v35  ;;  %4073 = vmatmul.mubr.msk.f32.vlgmr.msra.gmra.mrb[0].mxu1 %vm81_vm0, %v5320_v36  ;;  %v5452_v10 = vld [vmem:[%s7823_s0 + $0x28] sm:$0xff]  ;;  %v4677_v13 = vpack.c.bf16 %v4109_v9, %v4106_v8  ;;  %v4115_v17 = vld [vmem:[%s7824_s1 + $0x170] sm:$0xff]  ;;  %v4679_v19 = vpack.c.bf16 %v4108_v15, %v4105_v14  ;;  %v5500_v25 = vld [vmem:[%s7823_s0 + $0x38] sm:$0xff] }
  0x26   :  { %4656 = vmatpush3.bf16.msra.mxu1 %v4653_v29  ;;  %4688 = vmatpush3.bf16.msra.mxu0 %v4685_v30  ;;  %v5476_v18 = vld [vmem:[%s7823_s0 + $0x30] sm:$0xff]  ;;  %v4681_v20 = vpack.c.bf16 %v4115_v17, %v4112_v16  ;;  %v4114_v22 = vld [vmem:[%s7824_s1 + $0x168] sm:$0xff]  ;;  %v5505_v26 = vld [vmem:[%s7823_s0 + $0x40] sm:$0xff] }
  0x27   :  { %200 = vmatprep.mubr.f32.mxu0 %v5182_v0  ;;  %272 = vmatprep.mubr.f32.mxu1 %v5182_v0  ;;  %v4111_v21 = vld [vmem:[%s7824_s1 + $0x150] sm:$0xff]  ;;  %v4154_v24 = vld [vmem:[%s7824_s1 + $0x1a8] sm:$0xff]  ;;  %v5534_v31 = vld [vmem:[%s7823_s0 + $0x58] sm:$0xff] }
  0x28   :  { %4658 = vmatprep.subr.bf16.mxu1 %v4657_v37  ;;  %4690 = vmatprep.subr.bf16.mxu0 %v4689_v40  ;;  %v4151_v23 = vld [vmem:[%s7824_s1 + $0x190] sm:$0xff]  ;;  %v4683_v27 = vpack.c.bf16 %v4114_v22, %v4111_v21  ;;  %v5517_v29 = vld [vmem:[%s7823_s0 + $0x48] sm:$0xff]  ;;  %v4149_v32 = vld [vmem:[%s7824_s1 + $0x180] sm:$0xff] }
  0x29   :  { %4062 = vmatmul.mubr.msk.f32.gmra.mrb[2].mxu0 %vm81_vm0, %v5335_v41  ;;  %4074 = vmatmul.mubr.msk.f32.gmra.mrb[2].mxu1 %vm81_vm0, %v5340_v42  ;;  %v4717_v28 = vpack.c.bf16 %v4154_v24, %v4151_v23  ;;  %v5522_v30 = vld [vmem:[%s7823_s0 + $0x50] sm:$0xff]  ;;  %v4152_v33 = vld [vmem:[%s7824_s1 + $0x198] sm:$0xff]  ;;  %v4157_v38 = vld [vmem:[%s7824_s1 + $0x1c0] sm:$0xff] }
  0x2a   :  { %4660 = vmatpush3.bf16.msra.mxu1 %v4657_v37  ;;  %206 = vmatprep.mubr.f32.mxu0 %v5182_v0  ;;  %v4156_v34 = vld [vmem:[%s7824_s1 + $0x1b8] sm:$0xff]  ;;  %v4159_v37 = vld [vmem:[%s7824_s1 + $0x1d0] sm:$0xff]  ;;  %v4158_v45 = vld [vmem:[%s7824_s1 + $0x1c8] sm:$0xff] }
  0x2b   :  { %278 = vmatprep.mubr.f32.mxu1 %v5182_v0  ;;  %4662 = vmatprep.subr.bf16.mxu1 %v4661_v43  ;;  %v4160_v39 = vld [vmem:[%s7824_s1 + $0x1d8] sm:$0xff]  ;;  %v4155_v44 = vld [vmem:[%s7824_s1 + $0x1b0] sm:$0xff]  ;;  %v4162_v46 = vld [vmem:[%s7824_s1 + $0x1e8] sm:$0xff] }
  0x2c   :  { %4692 = vmatpush3.bf16.msra.mxu0 %v4689_v40  ;;  %v4703_v40 = vpack.c.bf16 %v4152_v33, %v4149_v32  ;;  %v4721_v47 = vpack.c.bf16 %v4160_v39, %v4157_v38  ;;  %v4163_v51 = vld [vmem:[%s7824_s1 + $0x1f0] sm:$0xff]  ;;  %v4166_v52 = vld [vmem:[%s7824_s1 + $0x208] sm:$0xff]  ;;  %v4161_v57 = vld [vmem:[%s7824_s1 + $0x1e0] sm:$0xff] }
  0x2d   :  { %4063 = vmatmul.mubr.msk.f32.gmra.mrb[4].mxu0 %vm81_vm0, %v5364_v48  ;;  %4075 = vmatmul.mubr.msk.f32.gmra.mrb[4].mxu1 %vm81_vm0, %v5369_v49  ;;  %v4164_v58 = vld [vmem:[%s7824_s1 + $0x1f8] sm:$0xff]  ;;  %v4725_v60 = vpack.c.bf16 %v4166_v52, %v4163_v51  ;;  %v4171_v61 = vld [vmem:[%s7824_s1 + $0x230] sm:$0xff]  ;;  %v4169_v62 = vld [vmem:[%s7824_s1 + $0x220] sm:$0xff] }
  0x2e   :  { %4664 = vmatpush3.bf16.msra.mxu1 %v4661_v43  ;;  %212 = vmatprep.mubr.f32.mxu0 %v5182_v0  ;;  %v4705_v43 = vpack.c.bf16 %v4159_v37, %v4156_v34  ;;  %v4168_v59 = vld [vmem:[%s7824_s1 + $0x218] sm:$0xff]  ;;  %v4711_v2 = vpack.c.bf16 %v4164_v58, %v4161_v57  ;;  %v4170_v5 = vld [vmem:[%s7824_s1 + $0x228] sm:$0xff]  ;;  %v4207_v6 = vld [vmem:[%s7824_s1 + $0x250] sm:$0xff] }
  0x2f   :  { %284 = vmatprep.mubr.f32.mxu1 %v5182_v0  ;;  %4666 = vmatprep.subr.bf16.mxu1 %v4665_v50  ;;  %v4210_v8 = vld [vmem:[%s7824_s1 + $0x268] sm:$0xff]  ;;  %v4213_v15 = vld [vmem:[%s7824_s1 + $0x280] sm:$0xff]  ;;  %v4216_v16 = vld [vmem:[%s7824_s1 + $0x298] sm:$0xff] }
  0x30   :  { %4694 = vmatprep.subr.bf16.mxu0 %v4693_v53  ;;  %v4206_v9 = vld [vmem:[%s7824_s1 + $0x248] sm:$0xff]  ;;  %v4753_v17 = vpack.c.bf16 %v4216_v16, %v4213_v15  ;;  %v4225_v22 = vld [vmem:[%s7824_s1 + $0x2e0] sm:$0xff]  ;;  %v4228_v23 = vld [vmem:[%s7824_s1 + $0x2f8] sm:$0xff] }
  0x31   :  { %4064 = vmatmul.mubr.msk.f32.gmra.mrb[6].mxu0 %vm81_vm0, %v5386_v54  ;;  %4076 = vmatmul.mubr.msk.f32.gmra.mrb[6].mxu1 %vm81_vm0, %v5391_v55  ;;  %v4761_v24 = vpack.c.bf16 %v4228_v23, %v4225_v22  ;;  %v4205_v33 = vld [vmem:[%s7824_s1 + $0x240] sm:$0xff]  ;;  %v4208_v34 = vld [vmem:[%s7824_s1 + $0x258] sm:$0xff]  ;;  %v4215_v38 = vld [vmem:[%s7824_s1 + $0x290] sm:$0xff] }
  0x32   :  { %4668 = vmatpush3.bf16.msra.mxu1 %v4665_v50  ;;  %218 = vmatprep.mubr.f32.mxu0 %v5182_v0  ;;  %v4165_v50 = vld [vmem:[%s7824_s1 + $0x200] sm:$0xff]  ;;  %v4212_v37 = vld [vmem:[%s7824_s1 + $0x278] sm:$0xff]  ;;  %v4735_v39 = vpack.c.bf16 %v4208_v34, %v4205_v33 }
  0x33   :  { %4453 = vmatprep.mubr.msk.f32.mxu1 %vm81_vm0, %v5315_v35  ;;  %4670 = vmatprep.subr.bf16.mxu1 %v4669_v56  ;;  %v4709_v56 = vpack.c.bf16 %v4165_v50, %v4162_v46  ;;  %v4221_v46 = vld [vmem:[%s7824_s1 + $0x2c0] sm:$0xff]  ;;  %v4220_v52 = vld [vmem:[%s7824_s1 + $0x2b8] sm:$0xff] }
  0x34   :  { %4696 = vmatpush3.bf16.msra.mxu0 %v4693_v53  ;;  %v4707_v53 = vpack.c.bf16 %v4158_v45, %v4155_v44  ;;  %v4214_v44 = vld [vmem:[%s7824_s1 + $0x288] sm:$0xff]  ;;  %v4217_v51 = vld [vmem:[%s7824_s1 + $0x2a0] sm:$0xff]  ;;  %v4276_v23 = vld [vmem:[%s7824_s1 + $0x378] sm:$0xff] }
  0x35   :  { %4065 = vmatmul.mubr.msk.f32.gmra.mrb[8].mxu0 %vm81_vm0, %v5420_v63  ;;  %4454 = vmatmul.mubr.msk.f32.vlgmr.msra.gmra.mrb[8].mxu1 %vm81_vm0, %v5335_v41  ;;  %v4218_v45 = vld [vmem:[%s7824_s1 + $0x2a8] sm:$0xff]  ;;  %v4743_v57 = vpack.c.bf16 %v4220_v52, %v4217_v51  ;;  %v4277_v16 = vld [vmem:[%s7824_s1 + $0x380] sm:$0xff]  ;;  %v4284_v33 = vld [vmem:[%s7824_s1 + $0x3b8] sm:$0xff] }
  0x36   :  { %224 = vmatprep.mubr.f32.mxu0 %v5182_v0  ;;  %4456 = vmatprep.mubr.msk.f32.mxu1 %vm81_vm0, %v5364_v48  ;;  %v4741_v50 = vpack.c.bf16 %v4221_v46, %v4218_v45  ;;  %v4273_v22 = vld [vmem:[%s7824_s1 + $0x360] sm:$0xff] }
  0x37   :  { %4672 = vmatpush1.bf16.msra.mxu1 %v4671_v1  ;;  %4698 = vmatprep.subr.bf16.mxu0 %v4697_v3  ;;  %v4172_v1 = vld [vmem:[%s7824_s1 + $0x238] sm:$0xff]  ;;  %v4775_v34 = vpack.c.bf16 %v4276_v23, %v4273_v22 }
  0x38   :  { %4674 = vmatprep.subr.bf16.mxu1 %v4673_v4  ;;  %4700 = vmatpush3.bf16.msra.mxu0 %v4697_v3  ;;  %v4713_v3 = vpack.c.bf16 %v4171_v61, %v4168_v59  ;;  %v4167_v4 = vld [vmem:[%s7824_s1 + $0x210] sm:$0xff]  ;;  %v4729_v7 = vpack.c.bf16 %v4172_v1, %v4169_v62  ;;  %v4266_v62 = vld [vmem:[%s7824_s1 + $0x328] sm:$0xff] }
  0x39   :  { %4066 = vmatmul.mubr.msk.f32.gmra.mrb[10].mxu0 %vm81_vm0, %v5452_v10  ;;  %4457 = vmatmul.mubr.msk.f32.gmra.mrb[10].mxu1 %vm81_vm0, %v5386_v54  ;;  %v4223_v59 = vld [vmem:[%s7824_s1 + $0x2d0] sm:$0xff] }
  0x3a   :  { %230 = vmatprep.mubr.f32.mxu0 %v5182_v0  ;;  %4459 = vmatprep.mubr.msk.f32.mxu1 %vm81_vm0, %v5420_v63  ;;  %v4263_v61 = vld [vmem:[%s7824_s1 + $0x310] sm:$0xff] }
  0x3b   :  { %4676 = vmatpush1.bf16.msra.mxu1 %v4675_v11  ;;  %4702 = vmatprep.subr.bf16.mxu0 %v4701_v12  ;;  %v4209_v11 = vld [vmem:[%s7824_s1 + $0x260] sm:$0xff]  ;;  %v4715_v12 = vpack.c.bf16 %v4170_v5, %v4167_v4  ;;  %v4264_v4 = vld [vmem:[%s7824_s1 + $0x318] sm:$0xff] }
  0x3c   :  { %4678 = vmatprep.subr.bf16.mxu1 %v4677_v13  ;;  %v4749_v13 = vpack.c.bf16 %v4210_v8, %v4207_v6  ;;  %v4733_v14 = vpack.c.bf16 %v4209_v11, %v4206_v9  ;;  %v4268_v5 = vld [vmem:[%s7824_s1 + $0x338] sm:$0xff]  ;;  %v4271_v6 = vld [vmem:[%s7824_s1 + $0x350] sm:$0xff] }
  0x3d   :  { %4067 = vmatmul.mubr.msk.f32.gmra.mrb[12].mxu0 %vm81_vm0, %v5476_v18  ;;  %4460 = vmatmul.mubr.msk.f32.gmra.mrb[12].mxu1 %vm81_vm0, %v5452_v10  ;;  %v4272_v8 = vld [vmem:[%s7824_s1 + $0x358] sm:$0xff]  ;;  %v4769_v11 = vpack.c.bf16 %v4271_v6, %v4268_v5 }
  0x3e   :  { %236 = vmatprep.mubr.f32.mxu0 %v5182_v0  ;;  %4462 = vmatprep.mubr.msk.f32.mxu1 %vm81_vm0, %v5476_v18 }
  0x3f   :  { %4680 = vmatpush1.bf16.msra.mxu1 %v4679_v19  ;;  %v4219_v19 = vld [vmem:[%s7824_s1 + $0x2b0] sm:$0xff] }
  0x40   :  { %4682 = vmatprep.subr.bf16.mxu1 %v4681_v20  ;;  %v4222_v20 = vld [vmem:[%s7824_s1 + $0x2c8] sm:$0xff] }
  0x41   :  { %4068 = vmatmul.mubr.msk.f32.gmra.mrb[14].mxu0 %vm81_vm0, %v5500_v25  ;;  %4463 = vmatmul.mubr.msk.f32.gmra.mrb[14].mxu1 %vm81_vm0, %v5500_v25  ;;  %v4757_v21 = vpack.c.bf16 %v4222_v20, %v4219_v19  ;;  %v4278_v19 = vld [vmem:[%s7824_s1 + $0x388] sm:$0xff] }
  0x42   :  { %242 = vmatprep.mubr.f32.mxu0 %v5182_v0  ;;  %4465 = vmatprep.mubr.msk.f32.mxu1 %vm81_vm0, %v5505_v26 }
  0x43   :  { %4684 = vmatpush1.bf16.msra.mxu1 %v4683_v27  ;;  %v4262_v27 = vld [vmem:[%s7824_s1 + $0x308] sm:$0xff] }
  0x44   :  { %4718 = vmatprep.subr.bf16.mxu1 %v4717_v28 }
  0x45   :  { %4069 = vmatmul.mubr.msk.f32.gmra.mrb[16].mxu0 %vm81_vm0, %v5505_v26  ;;  %4466 = vmatmul.mubr.msk.f32.gmra.mrb[16].mxu1 %vm81_vm0, %v5517_v29 }
  0x46   :  { %248 = vmatprep.mubr.f32.mxu0 %v5182_v0  ;;  %4468 = vmatprep.mubr.msk.f32.mxu1 %vm81_vm0, %v5522_v30 }
  0x49   :  { %4070 = vmatmul.mubr.msk.f32.gmra.mrb[18].mxu0 %vm81_vm0, %v5517_v29  ;;  %4469 = vmatmul.mubr.msk.f32.gmra.mrb[18].mxu1 %vm81_vm0, %v5534_v31 }
  0x4a   :  { %254 = vmatprep.mubr.f32.mxu0 %v5182_v0  ;;  %4471 = vmatprep.mubr.msk.f32.mxu1 %vm81_vm0, %v5320_v36 }
  0x4d   :  { %4071 = vmatmul.mubr.msk.f32.gmra.mrb[20].mxu0 %vm81_vm0, %v5522_v30  ;;  %4472 = vmatmul.mubr.msk.f32.gmra.mrb[20].mxu1 %vm81_vm0, %v5340_v42 }
  0x4e   :  { %260 = vmatprep.mubr.f32.mxu0 %v5182_v0  ;;  %4474 = vmatprep.mubr.msk.f32.mxu1 %vm81_vm0, %v5369_v49 }
  0x51   :  { %4072 = vmatmul.mubr.msk.f32.gmra.mrb[22].mxu0 %vm81_vm0, %v5534_v31  ;;  %4475 = vmatmul.mubr.msk.f32.gmra.mrb[22].mxu1 %vm81_vm0, %v5391_v55 }
  0x52   :  { %525 = vmatprep.mubr.f32.mxu1 %v5182_v0  ;;  %4493 = vmatprep.mubr.msk.f32.mxu0 %vm81_vm0, %v5315_v35 }
  0x55   :  { %4117 = vmatmul.mubr.msk.f32.vlgmr.msra.gmra.mrb[24].mxu1 %vm81_vm0, %v5315_v35  ;;  %4494 = vmatmul.mubr.msk.f32.vlgmr.msra.gmra.mrb[24].mxu0 %vm81_vm0, %v5335_v41 }
  0x56   :  { %4704 = vmatpush1.bf16.msra.mxu0 %v4703_v40  ;;  %531 = vmatprep.mubr.f32.mxu1 %v5182_v0  ;;  %v4737_v40 = vpack.c.bf16 %v4215_v38, %v4212_v37  ;;  %v4279_v38 = vld [vmem:[%s7824_s1 + $0x390] sm:$0xff] }
  0x57   :  { %4496 = vmatprep.mubr.msk.f32.mxu0 %vm81_vm0, %v5364_v48  ;;  %4720 = vmatpush3.bf16.msra.mxu1 %v4717_v28  ;;  %v4265_v28 = vld [vmem:[%s7824_s1 + $0x320] sm:$0xff] }
  0x58   :  { %4706 = vmatprep.subr.bf16.mxu0 %v4705_v43  ;;  %4722 = vmatprep.subr.bf16.mxu1 %v4721_v47  ;;  %v4765_v32 = vpack.c.bf16 %v4265_v28, %v4262_v27  ;;  %v4211_v43 = vld [vmem:[%s7824_s1 + $0x270] sm:$0xff] }
  0x59   :  { %4118 = vmatmul.mubr.msk.f32.gmra.mrb[26].mxu1 %vm81_vm0, %v5335_v41  ;;  %4497 = vmatmul.mubr.msk.f32.gmra.mrb[26].mxu0 %vm81_vm0, %v5386_v54  ;;  %v4283_v28 = vld [vmem:[%s7824_s1 + $0x3b0] sm:$0xff] }
  0x5a   :  { %537 = vmatprep.mubr.f32.mxu1 %v5182_v0  ;;  %4499 = vmatprep.mubr.msk.f32.mxu0 %vm81_vm0, %v5420_v63 }
  0x5b   :  { %4708 = vmatpush1.bf16.msra.mxu0 %v4707_v53  ;;  %4724 = vmatpush3.bf16.msra.mxu1 %v4721_v47  ;;  %v4739_v47 = vpack.c.bf16 %v4214_v44, %v4211_v43  ;;  %v4224_v53 = vld [vmem:[%s7824_s1 + $0x2d8] sm:$0xff] }
  0x5c   :  { %4710 = vmatprep.subr.bf16.mxu0 %v4709_v56  ;;  %4726 = vmatprep.subr.bf16.mxu1 %v4725_v60  ;;  %v4227_v56 = vld [vmem:[%s7824_s1 + $0x2f0] sm:$0xff] }
  0x5d   :  { %4119 = vmatmul.mubr.msk.f32.gmra.mrb[28].mxu1 %vm81_vm0, %v5364_v48  ;;  %4500 = vmatmul.mubr.msk.f32.gmra.mrb[28].mxu0 %vm81_vm0, %v5452_v10  ;;  %v4745_v58 = vpack.c.bf16 %v4227_v56, %v4224_v53 }
  0x5e   :  { %543 = vmatprep.mubr.f32.mxu1 %v5182_v0  ;;  %4502 = vmatprep.mubr.msk.f32.mxu0 %vm81_vm0, %v5476_v18 }
  0x5f   :  { %4712 = vmatpush1.bf16.msra.mxu0 %v4711_v2  ;;  %4728 = vmatpush3.bf16.msra.mxu1 %v4725_v60  ;;  %v4226_v60 = vld [vmem:[%s7824_s1 + $0x2e8] sm:$0xff]  ;;  %v4781_v2 = vpack.c.bf16 %v4266_v62, %v4263_v61 }
  0x60   :  { %4714 = vmatprep.subr.bf16.mxu0 %v4713_v3  ;;  %4730 = vmatprep.subr.bf16.mxu1 %v4729_v7  ;;  %v4747_v1 = vpack.c.bf16 %v4226_v60, %v4223_v59  ;;  %v4261_v3 = vld [vmem:[%s7824_s1 + $0x300] sm:$0xff] }
  0x61   :  { %4120 = vmatmul.mubr.msk.f32.gmra.mrb[30].mxu1 %vm81_vm0, %v5386_v54  ;;  %4503 = vmatmul.mubr.msk.f32.gmra.mrb[30].mxu0 %vm81_vm0, %v5500_v25  ;;  %v4767_v9 = vpack.c.bf16 %v4264_v4, %v4261_v3 }
  0x62   :  { %549 = vmatprep.mubr.f32.mxu1 %v5182_v0  ;;  %4505 = vmatprep.mubr.msk.f32.mxu0 %vm81_vm0, %v5505_v26 }
  0x63   :  { %4716 = vmatpush1.bf16.msra.mxu0 %v4715_v12  ;;  %4732 = vmatpush3.bf16.msra.mxu1 %v4729_v7  ;;  %v4269_v7 = vld [vmem:[%s7824_s1 + $0x340] sm:$0xff]  ;;  %v4267_v12 = vld [vmem:[%s7824_s1 + $0x330] sm:$0xff] }
  0x64   :  { %4750 = vmatprep.subr.bf16.mxu0 %v4749_v13  ;;  %4734 = vmatprep.subr.bf16.mxu1 %v4733_v14  ;;  %v4274_v14 = vld [vmem:[%s7824_s1 + $0x368] sm:$0xff]  ;;  %v4785_v15 = vpack.c.bf16 %v4272_v8, %v4269_v7 }
  0x65   :  { %4121 = vmatmul.mubr.msk.f32.gmra.mrb[32].mxu1 %vm81_vm0, %v5420_v63  ;;  %4506 = vmatmul.mubr.msk.f32.gmra.mrb[32].mxu0 %vm81_vm0, %v5517_v29 }
  0x66   :  { %555 = vmatprep.mubr.f32.mxu1 %v5182_v0  ;;  %4508 = vmatprep.mubr.msk.f32.mxu0 %vm81_vm0, %v5522_v30 }
  0x69   :  { %4122 = vmatmul.mubr.msk.f32.gmra.mrb[34].mxu1 %vm81_vm0, %v5452_v10  ;;  %4509 = vmatmul.mubr.msk.f32.gmra.mrb[34].mxu0 %vm81_vm0, %v5534_v31 }
  0x6a   :  { %561 = vmatprep.mubr.f32.mxu1 %v5182_v0  ;;  %4511 = vmatprep.mubr.msk.f32.mxu0 %vm81_vm0, %v5320_v36 }
  0x6d   :  { %4123 = vmatmul.mubr.msk.f32.gmra.mrb[36].mxu1 %vm81_vm0, %v5476_v18  ;;  %4512 = vmatmul.mubr.msk.f32.gmra.mrb[36].mxu0 %vm81_vm0, %v5340_v42 }
  0x6e   :  { %567 = vmatprep.mubr.f32.mxu1 %v5182_v0  ;;  %4514 = vmatprep.mubr.msk.f32.mxu0 %vm81_vm0, %v5369_v49 }
  0x71   :  { %4124 = vmatmul.mubr.msk.f32.gmra.mrb[38].mxu1 %vm81_vm0, %v5500_v25  ;;  %4515 = vmatmul.mubr.msk.f32.gmra.mrb[38].mxu0 %vm81_vm0, %v5391_v55 }
  0x72   :  { %573 = vmatprep.mubr.f32.mxu1 %v5182_v0  ;;  %1073 = vmatprep.mubr.f32.mxu0 %v5182_v0 }
  0x75   :  { %4125 = vmatmul.mubr.msk.f32.gmra.mrb[40].mxu1 %vm81_vm0, %v5505_v26  ;;  %4173 = vmatmul.mubr.msk.f32.vlgmr.msra.gmra.mrb[40].mxu0 %vm81_vm0, %v5315_v35 }
  0x76   :  { %4752 = vmatpush3.bf16.msra.mxu0 %v4749_v13  ;;  %579 = vmatprep.mubr.f32.mxu1 %v5182_v0  ;;  %v4270_v13 = vld [vmem:[%s7824_s1 + $0x348] sm:$0xff] }
  0x77   :  { %1079 = vmatprep.mubr.f32.mxu0 %v5182_v0  ;;  %4754 = vmatprep.subr.bf16.mxu0 %v4753_v17  ;;  %v4771_v20 = vpack.c.bf16 %v4270_v13, %v4267_v12 }
  0x79   :  { %4126 = vmatmul.mubr.msk.f32.gmra.mrb[42].mxu1 %vm81_vm0, %v5517_v29  ;;  %4174 = vmatmul.mubr.msk.f32.gmra.mrb[42].mxu0 %vm81_vm0, %v5335_v41 }
  0x7a   :  { %585 = vmatprep.mubr.f32.mxu1 %v5182_v0  ;;  %1085 = vmatprep.mubr.f32.mxu0 %v5182_v0 }
  0x7b   :  { %4756 = vmatpush3.bf16.msra.mxu0 %v4753_v17  ;;  %v4275_v17 = vld [vmem:[%s7824_s1 + $0x370] sm:$0xff] }
  0x7c   :  { %4758 = vmatprep.subr.bf16.mxu0 %v4757_v21  ;;  %v4789_v27 = vpack.c.bf16 %v4278_v19, %v4275_v17 }
  0x7d   :  { %4127 = vmatmul.mubr.msk.f32.gmra.mrb[44].mxu1 %vm81_vm0, %v5522_v30  ;;  %4175 = vmatmul.mubr.msk.f32.gmra.mrb[44].mxu0 %vm81_vm0, %v5364_v48 }
  0x7e   :  { %591 = vmatprep.mubr.f32.mxu1 %v5182_v0  ;;  %1091 = vmatprep.mubr.f32.mxu0 %v5182_v0 }
  0x7f   :  { %4760 = vmatpush3.bf16.msra.mxu0 %v4757_v21  ;;  %v4773_v21 = vpack.c.bf16 %v4277_v16, %v4274_v14 }
  0x80   :  { %4762 = vmatprep.subr.bf16.mxu0 %v4761_v24 }
  0x81   :  { %4128 = vmatmul.mubr.msk.f32.gmra.mrb[46].mxu1 %vm81_vm0, %v5534_v31  ;;  %4176 = vmatmul.mubr.msk.f32.gmra.mrb[46].mxu0 %vm81_vm0, %v5386_v54 }
  0x82   :  { %597 = vmatprep.mubr.f32.mxu1 %v5182_v0  ;;  %1097 = vmatprep.mubr.f32.mxu0 %v5182_v0 }
  0x83   :  { %4764 = vmatpush3.bf16.msra.mxu0 %v4761_v24  ;;  %v4280_v24 = vld [vmem:[%s7824_s1 + $0x398] sm:$0xff] }
  0x84   :  { %4766 = vmatprep.subr.bf16.mxu0 %v4765_v32  ;;  %v4281_v32 = vld [vmem:[%s7824_s1 + $0x3a0] sm:$0xff]  ;;  %v4777_v37 = vpack.c.bf16 %v4283_v28, %v4280_v24 }
  0x85   :  { %4129 = vmatmul.mubr.msk.f32.gmra.mrb[48].mxu1 %vm81_vm0, %v5320_v36  ;;  %4177 = vmatmul.mubr.msk.f32.gmra.mrb[48].mxu0 %vm81_vm0, %v5420_v63 }
  0x86   :  { %603 = vmatprep.mubr.f32.mxu1 %v5182_v0  ;;  %1103 = vmatprep.mubr.f32.mxu0 %v5182_v0 }
  0x89   :  { %4130 = vmatmul.mubr.msk.f32.gmra.mrb[50].mxu1 %vm81_vm0, %v5340_v42  ;;  %4178 = vmatmul.mubr.msk.f32.gmra.mrb[50].mxu0 %vm81_vm0, %v5452_v10 }
  0x8a   :  { %609 = vmatprep.mubr.f32.mxu1 %v5182_v0  ;;  %1109 = vmatprep.mubr.f32.mxu0 %v5182_v0 }
  0x8d   :  { %4131 = vmatmul.mubr.msk.f32.gmra.mrb[52].mxu1 %vm81_vm0, %v5369_v49  ;;  %4179 = vmatmul.mubr.msk.f32.gmra.mrb[52].mxu0 %vm81_vm0, %v5476_v18 }
  0x8e   :  { %615 = vmatprep.mubr.f32.mxu1 %v5182_v0  ;;  %1115 = vmatprep.mubr.f32.mxu0 %v5182_v0 }
  0x91   :  { %4132 = vmatmul.mubr.msk.f32.gmra.mrb[54].mxu1 %vm81_vm0, %v5391_v55  ;;  %4180 = vmatmul.mubr.msk.f32.gmra.mrb[54].mxu0 %vm81_vm0, %v5500_v25 }
  0x92   :  { %1121 = vmatprep.mubr.f32.mxu0 %v5182_v0  ;;  %4533 = vmatprep.mubr.msk.f32.mxu1 %vm81_vm0, %v5315_v35 }
  0x95   :  { %4181 = vmatmul.mubr.msk.f32.gmra.mrb[56].mxu0 %vm81_vm0, %v5505_v26  ;;  %4534 = vmatmul.mubr.msk.f32.vlgmr.msra.gmra.mrb[56].mxu1 %vm81_vm0, %v5335_v41 }
  0x96   :  { %1127 = vmatprep.mubr.f32.mxu0 %v5182_v0  ;;  %4536 = vmatprep.mubr.msk.f32.mxu1 %vm81_vm0, %v5364_v48 }
  0x97   :  { %4736 = vmatpush1.bf16.msra.mxu1 %v4735_v39  ;;  %v4282_v39 = vld [vmem:[%s7824_s1 + $0x3a8] sm:$0xff] }
  0x98   :  { %4738 = vmatprep.subr.bf16.mxu1 %v4737_v40  ;;  %v4793_v40 = vpack.c.bf16 %v4284_v33, %v4281_v32  ;;  %v4779_v43 = vpack.c.bf16 %v4282_v39, %v4279_v38 }
  0x99   :  { %4182 = vmatmul.mubr.msk.f32.gmra.mrb[58].mxu0 %vm81_vm0, %v5517_v29  ;;  %4537 = vmatmul.mubr.msk.f32.gmra.mrb[58].mxu1 %vm81_vm0, %v5386_v54 }
  0x9a   :  { %1133 = vmatprep.mubr.f32.mxu0 %v5182_v0  ;;  %4539 = vmatprep.mubr.msk.f32.mxu1 %vm81_vm0, %v5420_v63 }
  0x9b   :  { %4740 = vmatpush1.bf16.msra.mxu1 %v4739_v47 }
  0x9c   :  { %4742 = vmatprep.subr.bf16.mxu1 %v4741_v50 }
  0x9d   :  { %4183 = vmatmul.mubr.msk.f32.gmra.mrb[60].mxu0 %vm81_vm0, %v5522_v30  ;;  %4540 = vmatmul.mubr.msk.f32.gmra.mrb[60].mxu1 %vm81_vm0, %v5452_v10 }
  0x9e   :  { %1139 = vmatprep.mubr.f32.mxu0 %v5182_v0  ;;  %4542 = vmatprep.mubr.msk.f32.mxu1 %vm81_vm0, %v5476_v18 }
  0x9f   :  { %4744 = vmatpush1.bf16.msra.mxu1 %v4743_v57 }
  0xa0   :  { %4746 = vmatprep.subr.bf16.mxu1 %v4745_v58 }
  0xa1   :  { %4184 = vmatmul.mubr.msk.f32.gmra.mrb[62].mxu0 %vm81_vm0, %v5534_v31  ;;  %4543 = vmatmul.mubr.msk.f32.gmra.mrb[62].mxu1 %vm81_vm0, %v5500_v25 }
  0xa2   :  { %1145 = vmatprep.mubr.f32.mxu0 %v5182_v0  ;;  %4545 = vmatprep.mubr.msk.f32.mxu1 %vm81_vm0, %v5505_v26 }
  0xa3   :  { %4748 = vmatpush1.bf16.msra.mxu1 %v4747_v1 }
  0xa4   :  { %4782 = vmatprep.subr.bf16.mxu1 %v4781_v2 }
  0xa5   :  { %4185 = vmatmul.mubr.msk.f32.gmra.mrb[64].mxu0 %vm81_vm0, %v5320_v36  ;;  %4546 = vmatmul.mubr.msk.f32.gmra.mrb[64].mxu1 %vm81_vm0, %v5517_v29 }
  0xa6   :  { %1151 = vmatprep.mubr.f32.mxu0 %v5182_v0  ;;  %4548 = vmatprep.mubr.msk.f32.mxu1 %vm81_vm0, %v5522_v30 }
  0xa9   :  { %4186 = vmatmul.mubr.msk.f32.gmra.mrb[66].mxu0 %vm81_vm0, %v5340_v42  ;;  %4549 = vmatmul.mubr.msk.f32.gmra.mrb[66].mxu1 %vm81_vm0, %v5534_v31 }
  0xaa   :  { %1157 = vmatprep.mubr.f32.mxu0 %v5182_v0  ;;  %4551 = vmatprep.mubr.msk.f32.mxu1 %vm81_vm0, %v5320_v36 }
  0xad   :  { %4187 = vmatmul.mubr.msk.f32.gmra.mrb[68].mxu0 %vm81_vm0, %v5369_v49  ;;  %4552 = vmatmul.mubr.msk.f32.gmra.mrb[68].mxu1 %vm81_vm0, %v5340_v42 }
  0xae   :  { %1163 = vmatprep.mubr.f32.mxu0 %v5182_v0  ;;  %4554 = vmatprep.mubr.msk.f32.mxu1 %vm81_vm0, %v5369_v49 }
  0xb1   :  { %4188 = vmatmul.mubr.msk.f32.gmra.mrb[70].mxu0 %vm81_vm0, %v5391_v55  ;;  %4555 = vmatmul.mubr.msk.f32.gmra.mrb[70].mxu1 %vm81_vm0, %v5391_v55 }
  0xb2   :  { %1621 = vmatprep.mubr.f32.mxu1 %v5182_v0  ;;  %4573 = vmatprep.mubr.msk.f32.mxu0 %vm81_vm0, %v5315_v35 }
  0xb5   :  { %4229 = vmatmul.mubr.msk.f32.vlgmr.msra.gmra.mrb[72].mxu1 %vm81_vm0, %v5315_v35  ;;  %4574 = vmatmul.mubr.msk.f32.vlgmr.msra.gmra.mrb[72].mxu0 %vm81_vm0, %v5335_v41 }
  0xb6   :  { %4768 = vmatpush1.bf16.msra.mxu0 %v4767_v9  ;;  %1627 = vmatprep.mubr.f32.mxu1 %v5182_v0 }
  0xb7   :  { %4576 = vmatprep.mubr.msk.f32.mxu0 %vm81_vm0, %v5364_v48  ;;  %4784 = vmatpush3.bf16.msra.mxu1 %v4781_v2 }
  0xb8   :  { %4770 = vmatprep.subr.bf16.mxu0 %v4769_v11  ;;  %4786 = vmatprep.subr.bf16.mxu1 %v4785_v15 }
  0xb9   :  { %4230 = vmatmul.mubr.msk.f32.gmra.mrb[74].mxu1 %vm81_vm0, %v5335_v41  ;;  %4577 = vmatmul.mubr.msk.f32.gmra.mrb[74].mxu0 %vm81_vm0, %v5386_v54 }
  0xba   :  { %1633 = vmatprep.mubr.f32.mxu1 %v5182_v0  ;;  %4579 = vmatprep.mubr.msk.f32.mxu0 %vm81_vm0, %v5420_v63 }
  0xbb   :  { %4772 = vmatpush1.bf16.msra.mxu0 %v4771_v20  ;;  %4788 = vmatpush3.bf16.msra.mxu1 %v4785_v15 }
  0xbc   :  { %4774 = vmatprep.subr.bf16.mxu0 %v4773_v21  ;;  %4790 = vmatprep.subr.bf16.mxu1 %v4789_v27 }
  0xbd   :  { %4231 = vmatmul.mubr.msk.f32.gmra.mrb[76].mxu1 %vm81_vm0, %v5364_v48  ;;  %4580 = vmatmul.mubr.msk.f32.gmra.mrb[76].mxu0 %vm81_vm0, %v5452_v10 }
  0xbe   :  { %1639 = vmatprep.mubr.f32.mxu1 %v5182_v0  ;;  %4582 = vmatprep.mubr.msk.f32.mxu0 %vm81_vm0, %v5476_v18 }
  0xbf   :  { %4776 = vmatpush1.bf16.msra.mxu0 %v4775_v34  ;;  %4792 = vmatpush3.bf16.msra.mxu1 %v4789_v27 }
  0xc0   :  { %4778 = vmatprep.subr.bf16.mxu0 %v4777_v37  ;;  %4794 = vmatprep.subr.bf16.mxu1 %v4793_v40 }
  0xc1   :  { %4232 = vmatmul.mubr.msk.f32.gmra.mrb[78].mxu1 %vm81_vm0, %v5386_v54  ;;  %4583 = vmatmul.mubr.msk.f32.gmra.mrb[78].mxu0 %vm81_vm0, %v5500_v25 }
  0xc2   :  { %1645 = vmatprep.mubr.f32.mxu1 %v5182_v0  ;;  %4585 = vmatprep.mubr.msk.f32.mxu0 %vm81_vm0, %v5505_v26 }
  0xc3   :  { %4780 = vmatpush1.bf16.msra.mxu0 %v4779_v43  ;;  %4796 = vmatpush3.bf16.msra.mxu1 %v4793_v40 }
  0xc5   :  { %4233 = vmatmul.mubr.msk.f32.gmra.mrb[80].mxu1 %vm81_vm0, %v5420_v63  ;;  %4586 = vmatmul.mubr.msk.f32.gmra.mrb[80].mxu0 %vm81_vm0, %v5517_v29 }
  0xc6   :  { %1651 = vmatprep.mubr.f32.mxu1 %v5182_v0  ;;  %4588 = vmatprep.mubr.msk.f32.mxu0 %vm81_vm0, %v5522_v30 }
  0xc9   :  { %4234 = vmatmul.mubr.msk.f32.gmra.mrb[82].mxu1 %vm81_vm0, %v5452_v10  ;;  %4589 = vmatmul.mubr.msk.f32.gmra.mrb[82].mxu0 %vm81_vm0, %v5534_v31 }
  0xca   :  { %1657 = vmatprep.mubr.f32.mxu1 %v5182_v0  ;;  %4591 = vmatprep.mubr.msk.f32.mxu0 %vm81_vm0, %v5320_v36 }
  0xcd   :  { %4235 = vmatmul.mubr.msk.f32.gmra.mrb[84].mxu1 %vm81_vm0, %v5476_v18  ;;  %4592 = vmatmul.mubr.msk.f32.gmra.mrb[84].mxu0 %vm81_vm0, %v5340_v42 }
  0xce   :  { %1663 = vmatprep.mubr.f32.mxu1 %v5182_v0  ;;  %4594 = vmatprep.mubr.msk.f32.mxu0 %vm81_vm0, %v5369_v49 }
  0xd1   :  { %4236 = vmatmul.mubr.msk.f32.gmra.mrb[86].mxu1 %vm81_vm0, %v5500_v25  ;;  %4595 = vmatmul.mubr.msk.f32.gmra.mrb[86].mxu0 %vm81_vm0, %v5391_v55 }
  0xd2   :  { %1669 = vmatprep.mubr.f32.mxu1 %v5182_v0  ;;  %2169 = vmatprep.mubr.f32.mxu0 %v5182_v0 }
  0xd5   :  { %4237 = vmatmul.mubr.msk.f32.gmra.mrb[88].mxu1 %vm81_vm0, %v5505_v26  ;;  %4285 = vmatmul.mubr.msk.f32.vlgmr.msra.gmra.mrb[88].mxu0 %vm81_vm0, %v5315_v35 }
  0xd6   :  { %1675 = vmatprep.mubr.f32.mxu1 %v5182_v0  ;;  %2175 = vmatprep.mubr.f32.mxu0 %v5182_v0 }
  0xd9   :  { %4238 = vmatmul.mubr.msk.f32.gmra.mrb[90].mxu1 %vm81_vm0, %v5517_v29  ;;  %4286 = vmatmul.mubr.msk.f32.gmra.mrb[90].mxu0 %vm81_vm0, %v5335_v41 }
  0xda   :  { %1681 = vmatprep.mubr.f32.mxu1 %v5182_v0  ;;  %2181 = vmatprep.mubr.f32.mxu0 %v5182_v0 }
  0xdd   :  { %4239 = vmatmul.mubr.msk.f32.gmra.mrb[92].mxu1 %vm81_vm0, %v5522_v30  ;;  %4287 = vmatmul.mubr.msk.f32.gmra.mrb[92].mxu0 %vm81_vm0, %v5364_v48 }
  0xde   :  { %1687 = vmatprep.mubr.f32.mxu1 %v5182_v0  ;;  %2187 = vmatprep.mubr.f32.mxu0 %v5182_v0 }
  0xe1   :  { %4240 = vmatmul.mubr.msk.f32.gmra.mrb[94].mxu1 %vm81_vm0, %v5534_v31  ;;  %4288 = vmatmul.mubr.msk.f32.gmra.mrb[94].mxu0 %vm81_vm0, %v5386_v54 }
  0xe2   :  { %1693 = vmatprep.mubr.f32.mxu1 %v5182_v0  ;;  %2193 = vmatprep.mubr.f32.mxu0 %v5182_v0 }
  0xe5   :  { %4241 = vmatmul.mubr.msk.f32.gmra.mrb[96].mxu1 %vm81_vm0, %v5320_v36  ;;  %4289 = vmatmul.mubr.msk.f32.gmra.mrb[96].mxu0 %vm81_vm0, %v5420_v63 }
  0xe6   :  { %1699 = vmatprep.mubr.f32.mxu1 %v5182_v0  ;;  %2199 = vmatprep.mubr.f32.mxu0 %v5182_v0 }
  0xe9   :  { %4242 = vmatmul.mubr.msk.f32.gmra.mrb[98].mxu1 %vm81_vm0, %v5340_v42  ;;  %4290 = vmatmul.mubr.msk.f32.gmra.mrb[98].mxu0 %vm81_vm0, %v5452_v10 }
  0xea   :  { %1705 = vmatprep.mubr.f32.mxu1 %v5182_v0  ;;  %2205 = vmatprep.mubr.f32.mxu0 %v5182_v0 }
  0xed   :  { %4243 = vmatmul.mubr.msk.f32.gmra.mrb[100].mxu1 %vm81_vm0, %v5369_v49  ;;  %4291 = vmatmul.mubr.msk.f32.gmra.mrb[100].mxu0 %vm81_vm0, %v5476_v18 }
  0xee   :  { %1711 = vmatprep.mubr.f32.mxu1 %v5182_v0  ;;  %2211 = vmatprep.mubr.f32.mxu0 %v5182_v0 }
  0xf1   :  { %4244 = vmatmul.mubr.msk.f32.gmra.mrb[102].mxu1 %vm81_vm0, %v5391_v55  ;;  %4292 = vmatmul.mubr.msk.f32.gmra.mrb[102].mxu0 %vm81_vm0, %v5500_v25 }
  0xf2   :  { %2217 = vmatprep.mubr.f32.mxu0 %v5182_v0  ;;  %4613 = vmatprep.mubr.msk.f32.mxu1 %vm81_vm0, %v5315_v35 }
  0xf5   :  { %4293 = vmatmul.mubr.msk.f32.gmra.mrb[104].mxu0 %vm81_vm0, %v5505_v26  ;;  %4614 = vmatmul.mubr.msk.f32.vlgmr.msra.gmra.mrb[104].mxu1 %vm81_vm0, %v5335_v41 }
  0xf6   :  { %2223 = vmatprep.mubr.f32.mxu0 %v5182_v0  ;;  %4616 = vmatprep.mubr.msk.f32.mxu1 %vm81_vm0, %v5364_v48 }
  0xf8   :  { %v6032_v44 = vpop.f32.mrb[0].mxu0  ;;  %v6034_v45 = vpop.f32.mrb[0].mxu1 }
  0xf9   :  { %v6036_v46 = vpop.f32.mrb[1].mxu0  ;;  %4294 = vmatmul.mubr.msk.f32.gmra.mrb[106].mxu0 %vm81_vm0, %v5517_v29  ;;  %4617 = vmatmul.mubr.msk.f32.gmra.mrb[106].mxu1 %vm81_vm0, %v5386_v54  ;;  %v6042_v35 = vpop.f32.mrb[1].mxu1 }
  0xfa   :  { %2229 = vmatprep.mubr.f32.mxu0 %v5182_v0  ;;  %4619 = vmatprep.mubr.msk.f32.mxu1 %vm81_vm0, %v5420_v63 }
  0xfc   :  { %v6047_v41 = vpop.f32.mrb[2].mxu0  ;;  %v6049_v48 = vpop.f32.mrb[2].mxu1 }
  0xfd   :  { %v6051_v47 = vpop.f32.mrb[3].mxu0  ;;  %4295 = vmatmul.mubr.msk.f32.gmra.mrb[108].mxu0 %vm81_vm0, %v5522_v30  ;;  %4620 = vmatmul.mubr.msk.f32.gmra.mrb[108].mxu1 %vm81_vm0, %v5452_v10  ;;  %v6057_v54 = vpop.f32.mrb[3].mxu1 }
  0xfe   :  { %2235 = vmatprep.mubr.f32.mxu0 %v5182_v0  ;;  %4622 = vmatprep.mubr.msk.f32.mxu1 %vm81_vm0, %v5476_v18 }
 0x100   :  { %v6062_v63 = vpop.f32.mrb[4].mxu0  ;;  %v6064_v50 = vpop.f32.mrb[4].mxu1 }
 0x101   :  { %7904 = vst [vmem:[#allocation6_spill] sm:$0xff] %v6064_v50  ;;  %v6066_v51 = vpop.f32.mrb[5].mxu0  ;;  %4296 = vmatmul.mubr.msk.f32.gmra.mrb[110].mxu0 %vm81_vm0, %v5534_v31  ;;  %4623 = vmatmul.mubr.msk.f32.gmra.mrb[110].mxu1 %vm81_vm0, %v5500_v25  ;;  %v6072_v10 = vpop.f32.mrb[5].mxu1 }
 0x102   :  { %7905 = vst [vmem:[#allocation7_spill] sm:$0xff] %v6072_v10  ;;  %2241 = vmatprep.mubr.f32.mxu0 %v5182_v0  ;;  %4625 = vmatprep.mubr.msk.f32.mxu1 %vm81_vm0, %v5505_v26 }
 0x104   :  { %v6077_v18 = vpop.f32.mrb[6].mxu0  ;;  %v6079_v52 = vpop.f32.mrb[6].mxu1 }
 0x105   :  { %v6081_v53 = vpop.f32.mrb[7].mxu0  ;;  %4297 = vmatmul.mubr.msk.f32.gmra.mrb[112].mxu0 %vm81_vm0, %v5320_v36  ;;  %4626 = vmatmul.mubr.msk.f32.gmra.mrb[112].mxu1 %vm81_vm0, %v5517_v29  ;;  %v6087_v25 = vpop.f32.mrb[7].mxu1 }
 0x106   :  { %7906 = vst [vmem:[#allocation8_spill] sm:$0xff] %v6087_v25  ;;  %2247 = vmatprep.mubr.f32.mxu0 %v5182_v0  ;;  %4628 = vmatprep.mubr.msk.f32.mxu1 %vm81_vm0, %v5522_v30 }
 0x108   :  { %v6092_v26 = vpop.f32.mrb[8].mxu0  ;;  %v4455_v56 = vpop.f32.mrb[8].mxu1 }
 0x109   :  { %v6094_v57 = vpop.f32.mrb[9].mxu0  ;;  %4298 = vmatmul.mubr.msk.f32.gmra.mrb[114].mxu0 %vm81_vm0, %v5340_v42  ;;  %4629 = vmatmul.mubr.msk.f32.gmra.mrb[114].mxu1 %vm81_vm0, %v5534_v31  ;;  %v357_v58 = vpop.f32.mrb[9].mxu1 }
 0x10a   :  { %2253 = vmatprep.mubr.f32.mxu0 %v5182_v0  ;;  %4631 = vmatprep.mubr.msk.f32.mxu1 %vm81_vm0, %v5320_v36 }
 0x10c   :  { %v6103_v29 = vpop.f32.mrb[10].mxu0  ;;  %v4458_v30 = vpop.f32.mrb[10].mxu1 }
 0x10d   :  { %v6105_v59 = vpop.f32.mrb[11].mxu0  ;;  %4299 = vmatmul.mubr.msk.f32.gmra.mrb[116].mxu0 %vm81_vm0, %v5369_v49  ;;  %4632 = vmatmul.mubr.msk.f32.gmra.mrb[116].mxu1 %vm81_vm0, %v5340_v42  ;;  %v367_v60 = vpop.f32.mrb[11].mxu1 }
 0x10e   :  { %2259 = vmatprep.mubr.f32.mxu0 %v5182_v0  ;;  %4634 = vmatprep.mubr.msk.f32.mxu1 %vm81_vm0, %v5369_v49 }
 0x110   :  { %v6114_v31 = vpop.f32.mrb[12].mxu0  ;;  %v4461_v36 = vpop.f32.mrb[12].mxu1 }
 0x111   :  { %v6116_v61 = vpop.f32.mrb[13].mxu0  ;;  %4300 = vmatmul.mubr.msk.f32.gmra.mrb[118].mxu0 %vm81_vm0, %v5391_v55  ;;  %4635 = vmatmul.mubr.msk.f32.gmra.mrb[118].mxu1 %vm81_vm0, %v5391_v55  ;;  %v6122_v62 = vpop.f32.mrb[13].mxu1 }
 0x112   :  { %3930 = vmatprep.mubr.f32.mxu1 %v5182_v0  ;;  %4001 = vmatprep.mubr.f32.mxu0 %v5182_v0 }
 0x114   :  { %v6126_v42 = vpop.f32.mrb[14].mxu0  ;;  %v6128_v49 = vpop.f32.mrb[14].mxu1 }
 0x115   :  { %v6130_v1 = vpop.f32.mrb[15].mxu0  ;;  %v6132_v2 = vpop.f32.mrb[15].mxu1 }
 0x118   :  { %v6134_v3 = vpop.f32.mrb[16].mxu0  ;;  %v6136_v4 = vpop.f32.mrb[16].mxu1 }
 0x119   :  { %v6138_v5 = vpop.f32.mrb[17].mxu0  ;;  %v6140_v55 = vpop.f32.mrb[17].mxu1 }
 0x11c   :  { %v6142_v6 = vpop.f32.mrb[18].mxu0  ;;  %v6144_v7 = vpop.f32.mrb[18].mxu1 }
 0x11d   :  { %v6146_v0 = vpop.f32.mrb[19].mxu0  ;;  %v6148_v8 = vpop.f32.mrb[19].mxu1 }
 0x120   :  { %v6150_v9 = vpop.f32.mrb[20].mxu0  ;;  %v6152_v11 = vpop.f32.mrb[20].mxu1 }
 0x121   :  { %v6154_v12 = vpop.f32.mrb[21].mxu0  ;;  %v6156_v13 = vpop.f32.mrb[21].mxu1 }
 0x124   :  { %v6158_v14 = vpop.f32.mrb[22].mxu0  ;;  %v6160_v15 = vpop.f32.mrb[22].mxu1 }
 0x125   :  { %v6162_v16 = vpop.f32.mrb[23].mxu0  ;;  %v6164_v17 = vpop.f32.mrb[23].mxu1 }
 0x128   :  { %v4495_v19 = vpop.f32.mrb[24].mxu0  ;;  %v527_v20 = vpop.f32.mrb[24].mxu1 }
 0x129   :  { %v823_v21 = vrot.slane %v4495_v19, 1  ;;  %v688_v22 = vpop.f32.mrb[25].mxu0  ;;  %v529_v23 = vpop.f32.mrb[25].mxu1  ;;  %v816_v28 = vrot.slane %v527_v20, 1 }
 0x12a   :  { %v822_v24 = vrot.slane %v688_v22, 1  ;;  %v819_v33 = vrot.slane %v529_v23, 1 }
 0x12b   :  { %v6166_v27 = vadd.f32 %v4455_v56, %v823_v21 }
 0x12c   :  { %v824_v32 = vsel %vm815_vm1, %v822_v24, %v823_v21  ;;  %v533_v34 = vpop.f32.mrb[26].mxu1  ;;  %v4498_v37 = vpop.f32.mrb[26].mxu0 }
 0x12d   :  { %v6169_v38 = vadd.f32 %v824_v32, %v357_v58  ;;  %v817_v39 = vrot.slane %v533_v34, 1  ;;  %v832_v40 = vrot.slane %v4498_v37, 1  ;;  %v535_v43 = vpop.f32.mrb[27].mxu1  ;;  %v698_v10 = vpop.f32.mrb[27].mxu0 }
 0x12e   :  { %v820_v25 = vrot.slane %v535_v43, 1  ;;  %v831_v19 = vrot.slane %v698_v10, 1 }
 0x12f   :  { %v818_v50 = vsel %vm815_vm1, %v816_v28, %v817_v39  ;;  %v6173_v22 = vadd.f32 %v817_v39, %v6047_v41  ;;  %v6175_v56 = vadd.f32 %v4458_v30, %v832_v40 }
 0x130   :  { %v6178_v20 = vadd.f32 %v818_v50, %v6032_v44  ;;  %v821_v21 = vsel %vm815_vm1, %v819_v33, %v820_v25  ;;  %v6182_v58 = vadd.f32 %v820_v25, %v6051_v47  ;;  %v833_v23 = vsel %vm815_vm1, %v831_v19, %v832_v40  ;;  %v4501_v24 = vpop.f32.mrb[28].mxu0  ;;  %v539_v32 = vpop.f32.mrb[28].mxu1 }
 0x131   :  { %v6186_v10 = vadd.f32 %v821_v21, %v6036_v46  ;;  %v6188_v28 = vadd.f32 %v833_v23, %v367_v60  ;;  %v841_v41 = vrot.slane %v4501_v24, 1  ;;  %v708_v30 = vpop.f32.mrb[29].mxu0  ;;  %v541_v34 = vpop.f32.mrb[29].mxu1  ;;  %v825_v50 = vrot.slane %v539_v32, 1 }
 0x132   :  { %v840_v37 = vrot.slane %v708_v30, 1  ;;  %v828_v47 = vrot.slane %v541_v34, 1 }
 0x133   :  { %v6190_v44 = vadd.f32 %v4461_v36, %v841_v41 }
 0x134   :  { %v842_v33 = vsel %vm815_vm1, %v840_v37, %v841_v41  ;;  %v545_v25 = vpop.f32.mrb[30].mxu1  ;;  %v4504_v39 = vpop.f32.mrb[30].mxu0 }
 0x135   :  { %v6194_v40 = vadd.f32 %v842_v33, %v6122_v62  ;;  %v826_v43 = vrot.slane %v545_v25, 1  ;;  %v850_v46 = vrot.slane %v4504_v39, 1  ;;  %v547_v19 = vpop.f32.mrb[31].mxu1  ;;  %v718_v60 = vpop.f32.mrb[31].mxu0 }
 0x136   :  { %v829_v21 = vrot.slane %v547_v19, 1  ;;  %v849_v23 = vrot.slane %v718_v60, 1 }
 0x137   :  { %v827_v24 = vsel %vm815_vm1, %v825_v50, %v826_v43  ;;  %v6198_v36 = vadd.f32 %v826_v43, %v6077_v18  ;;  %v6201_v32 = vadd.f32 %v6128_v49, %v850_v46 }
 0x138   :  { %v6204_v41 = vadd.f32 %v827_v24, %v6062_v63  ;;  %v830_v62 = vsel %vm815_vm1, %v828_v47, %v829_v21  ;;  %v6208_v30 = vadd.f32 %v829_v21, %v6081_v53  ;;  %v851_v34 = vsel %vm815_vm1, %v849_v23, %v850_v46  ;;  %v4507_v37 = vpop.f32.mrb[32].mxu0  ;;  %v551_v33 = vpop.f32.mrb[32].mxu1 }
 0x139   :  { %v6212_v50 = vadd.f32 %v830_v62, %v6066_v51  ;;  %v6215_v18 = vadd.f32 %v851_v34, %v6132_v2  ;;  %v859_v49 = vrot.slane %v4507_v37, 1  ;;  %v728_v25 = vpop.f32.mrb[33].mxu0  ;;  %v553_v39 = vpop.f32.mrb[33].mxu1  ;;  %v834_v47 = vrot.slane %v551_v33, 1 }
 0x13a   :  { %v858_v63 = vrot.slane %v728_v25, 1  ;;  %v837_v19 = vrot.slane %v553_v39, 1 }
 0x13b   :  { %v6218_v43 = vadd.f32 %v6136_v4, %v859_v49 }
 0x13c   :  { %v860_v53 = vsel %vm815_vm1, %v858_v63, %v859_v49  ;;  %v557_v46 = vpop.f32.mrb[34].mxu1  ;;  %v4510_v60 = vpop.f32.mrb[34].mxu0 }
 0x13d   :  { %v6222_v21 = vadd.f32 %v860_v53, %v6140_v55  ;;  %v835_v51 = vrot.slane %v557_v46, 1  ;;  %v868_v23 = vrot.slane %v4510_v60, 1  ;;  %v559_v2 = vpop.f32.mrb[35].mxu1  ;;  %v738_v24 = vpop.f32.mrb[35].mxu0 }
 0x13e   :  { %v838_v62 = vrot.slane %v559_v2, 1  ;;  %v867_v34 = vrot.slane %v738_v24, 1 }
 0x13f   :  { %v836_v37 = vsel %vm815_vm1, %v834_v47, %v835_v51  ;;  %v6226_v4 = vadd.f32 %v835_v51, %v6103_v29  ;;  %v6229_v33 = vadd.f32 %v6144_v7, %v868_v23 }
 0x140   :  { %v6232_v49 = vadd.f32 %v836_v37, %v6092_v26  ;;  %v839_v55 = vsel %vm815_vm1, %v837_v19, %v838_v62  ;;  %v6236_v25 = vadd.f32 %v838_v62, %v6105_v59  ;;  %v869_v39 = vsel %vm815_vm1, %v867_v34, %v868_v23  ;;  %v4513_v63 = vpop.f32.mrb[36].mxu0  ;;  %v563_v53 = vpop.f32.mrb[36].mxu1 }
 0x141   :  { %v6240_v47 = vadd.f32 %v839_v55, %v6094_v57  ;;  %v6243_v29 = vadd.f32 %v869_v39, %v6148_v8  ;;  %v877_v7 = vrot.slane %v4513_v63, 1  ;;  %v748_v46 = vpop.f32.mrb[37].mxu0  ;;  %v565_v60 = vpop.f32.mrb[37].mxu1  ;;  %v843_v19 = vrot.slane %v563_v53, 1 }
 0x142   :  { %v876_v26 = vrot.slane %v748_v46, 1  ;;  %v846_v2 = vrot.slane %v565_v60, 1 }
 0x143   :  { %v6246_v51 = vadd.f32 %v6152_v11, %v877_v7 }
 0x144   :  { %v878_v59 = vsel %vm815_vm1, %v876_v26, %v877_v7  ;;  %v569_v23 = vpop.f32.mrb[38].mxu1  ;;  %v4516_v24 = vpop.f32.mrb[38].mxu0 }
 0x145   :  { %v6250_v62 = vadd.f32 %v878_v59, %v6156_v13  ;;  %v844_v57 = vrot.slane %v569_v23, 1  ;;  %v886_v34 = vrot.slane %v4516_v24, 1  ;;  %v571_v8 = vpop.f32.mrb[39].mxu1  ;;  %v758_v37 = vpop.f32.mrb[39].mxu0 }
 0x146   :  { %v847_v55 = vrot.slane %v571_v8, 1  ;;  %v885_v39 = vrot.slane %v758_v37, 1 }
 0x147   :  { %v845_v63 = vsel %vm815_vm1, %v843_v19, %v844_v57  ;;  %v6254_v11 = vadd.f32 %v844_v57, %v6126_v42  ;;  %v6257_v53 = vadd.f32 %v6160_v15, %v886_v34 }
 0x148   :  { %v6260_v7 = vadd.f32 %v845_v63, %v6114_v31  ;;  %v848_v13 = vsel %vm815_vm1, %v846_v2, %v847_v55  ;;  %v6264_v46 = vadd.f32 %v847_v55, %v6130_v1  ;;  %v887_v60 = vsel %vm815_vm1, %v885_v39, %v886_v34  ;;  %v1075_v26 = vpop.f32.mrb[40].mxu0  ;;  %v575_v59 = vpop.f32.mrb[40].mxu1 }
 0x149   :  { %7907 = vst [vmem:[#allocation9_spill] sm:$0xff] %v6257_v53  ;;  %v6268_v19 = vadd.f32 %v848_v13, %v6116_v61  ;;  %v6271_v42 = vadd.f32 %v887_v60, %v6164_v17  ;;  %v1077_v15 = vpop.f32.mrb[41].mxu0  ;;  %v577_v23 = vpop.f32.mrb[41].mxu1  ;;  %v852_v24 = vrot.slane %v575_v59, 1  ;;  %v1364_v2 = vrot.slane %v1075_v26, 2 }
 0x14a   :  { %v855_v31 = vrot.slane %v577_v23, 1  ;;  %v1367_v39 = vrot.slane %v1077_v15, 2 }
 0x14c   :  { %v581_v57 = vpop.f32.mrb[42].mxu1  ;;  %v1081_v8 = vpop.f32.mrb[42].mxu0 }
 0x14d   :  { %v853_v1 = vrot.slane %v581_v57, 1  ;;  %v1365_v37 = vrot.slane %v1081_v8, 2  ;;  %v583_v55 = vpop.f32.mrb[43].mxu1  ;;  %v1083_v34 = vpop.f32.mrb[43].mxu0 }
 0x14e   :  { %v856_v63 = vrot.slane %v583_v55, 1  ;;  %v1368_v53 = vrot.slane %v1083_v34, 2 }
 0x14f   :  { %v854_v61 = vsel %vm815_vm1, %v852_v24, %v853_v1  ;;  %v6275_v17 = vadd.f32 %v853_v1, %v6142_v6  ;;  %v1366_v13 = vsel %vm1363_vm2, %v1364_v2, %v1365_v37  ;;  %v6279_v60 = vadd.f32 %v1365_v37, %v6173_v22 }
 0x150   :  { %v6282_v59 = vadd.f32 %v854_v61, %v6134_v3  ;;  %v6285_v26 = vadd.f32 %v1366_v13, %v6178_v20  ;;  %v857_v15 = vsel %vm815_vm1, %v855_v31, %v856_v63  ;;  %v6289_v23 = vadd.f32 %v856_v63, %v6146_v0  ;;  %v1087_v24 = vpop.f32.mrb[44].mxu0  ;;  %v587_v57 = vpop.f32.mrb[44].mxu1 }
 0x151   :  { %v6292_v6 = vadd.f32 %v857_v15, %v6138_v5  ;;  %v1369_v8 = vsel %vm1363_vm2, %v1367_v39, %v1368_v53  ;;  %v6296_v22 = vadd.f32 %v1368_v53, %v6182_v58  ;;  %v1089_v3 = vpop.f32.mrb[45].mxu0  ;;  %v589_v2 = vpop.f32.mrb[45].mxu1  ;;  %v861_v1 = vrot.slane %v587_v57, 1 }
 0x152   :  { %v6299_v20 = vadd.f32 %v1369_v8, %v6186_v10  ;;  %v864_v31 = vrot.slane %v589_v2, 1  ;;  %v1373_v55 = vrot.slane %v1087_v24, 2  ;;  %v1376_v13 = vrot.slane %v1089_v3, 2 }
 0x154   :  { %v593_v37 = vpop.f32.mrb[46].mxu1  ;;  %v1093_v0 = vpop.f32.mrb[46].mxu0 }
 0x155   :  { %v862_v34 = vrot.slane %v593_v37, 1  ;;  %v1374_v63 = vrot.slane %v1093_v0, 2  ;;  %v595_v61 = vpop.f32.mrb[47].mxu1  ;;  %v1095_v5 = vpop.f32.mrb[47].mxu0 }
 0x156   :  { %v865_v15 = vrot.slane %v595_v61, 1  ;;  %v1377_v39 = vrot.slane %v1095_v5, 2 }
 0x157   :  { %v863_v58 = vsel %vm815_vm1, %v861_v1, %v862_v34  ;;  %v6303_v53 = vadd.f32 %v862_v34, %v6158_v14  ;;  %v1375_v10 = vsel %vm1363_vm2, %v1373_v55, %v1374_v63  ;;  %v6307_v57 = vadd.f32 %v1374_v63, %v6198_v36 }
 0x158   :  { %v6310_v8 = vadd.f32 %v863_v58, %v6150_v9  ;;  %v6313_v24 = vadd.f32 %v1375_v10, %v6204_v41  ;;  %v866_v3 = vsel %vm815_vm1, %v864_v31, %v865_v15  ;;  %v6317_v2 = vadd.f32 %v865_v15, %v6162_v16  ;;  %v1099_v1 = vpop.f32.mrb[48].mxu0  ;;  %v599_v37 = vpop.f32.mrb[48].mxu1 }
 0x159   :  { %v6320_v14 = vadd.f32 %v866_v3, %v6154_v12  ;;  %v1378_v0 = vsel %vm1363_vm2, %v1376_v13, %v1377_v39  ;;  %v6324_v36 = vadd.f32 %v1377_v39, %v6208_v30  ;;  %v1101_v9 = vpop.f32.mrb[49].mxu0  ;;  %v601_v55 = vpop.f32.mrb[49].mxu1  ;;  %v870_v34 = vrot.slane %v599_v37, 1 }
 0x15a   :  { %v6327_v41 = vadd.f32 %v1378_v0, %v6212_v50  ;;  %v873_v31 = vrot.slane %v601_v55, 1  ;;  %v1382_v61 = vrot.slane %v1099_v1, 2  ;;  %v1385_v10 = vrot.slane %v1101_v9, 2 }
 0x15c   :  { %v605_v63 = vpop.f32.mrb[50].mxu1  ;;  %v1105_v16 = vpop.f32.mrb[50].mxu0 }
 0x15d   :  { %v871_v5 = vrot.slane %v605_v63, 1  ;;  %v1383_v15 = vrot.slane %v1105_v16, 2  ;;  %v607_v58 = vpop.f32.mrb[51].mxu1  ;;  %v1107_v12 = vpop.f32.mrb[51].mxu0 }
 0x15e   :  { %v874_v3 = vrot.slane %v607_v58, 1  ;;  %v1386_v13 = vrot.slane %v1107_v12, 2 }
 0x15f   :  { %v872_v30 = vsel %vm815_vm1, %v870_v34, %v871_v5  ;;  %v6331_v39 = vadd.f32 %v871_v5, %v6049_v48  ;;  %v1384_v50 = vsel %vm1363_vm2, %v1382_v61, %v1383_v15  ;;  %v6335_v37 = vadd.f32 %v1383_v15, %v6226_v4 }
 0x160   :  { %v6338_v0 = vadd.f32 %v872_v30, %v6034_v45  ;;  %v6341_v1 = vadd.f32 %v1384_v50, %v6232_v49  ;;  %v875_v9 = vsel %vm815_vm1, %v873_v31, %v874_v3  ;;  %v6345_v55 = vadd.f32 %v874_v3, %v6057_v54  ;;  %v1111_v34 = vpop.f32.mrb[52].mxu0  ;;  %v611_v63 = vpop.f32.mrb[52].mxu1 }
 0x161   :  { %v6348_v48 = vadd.f32 %v875_v9, %v6042_v35  ;;  %v1387_v16 = vsel %vm1363_vm2, %v1385_v10, %v1386_v13  ;;  %v6352_v4 = vadd.f32 %v1386_v13, %v6236_v25  ;;  %v1113_v45 = vpop.f32.mrb[53].mxu0  ;;  %v613_v61 = vpop.f32.mrb[53].mxu1  ;;  %v879_v5 = vrot.slane %v611_v63, 1 }
 0x162   :  { %v6355_v49 = vadd.f32 %v1387_v16, %v6240_v47  ;;  %v882_v31 = vrot.slane %v613_v61, 1  ;;  %v1391_v58 = vrot.slane %v1111_v34, 2  ;;  %v1394_v50 = vrot.slane %v1113_v45, 2  ;;  %v7908_v16 = vld [vmem:[#allocation6_spill] sm:$0xff] }
 0x164   :  { %v617_v15 = vpop.f32.mrb[54].mxu1  ;;  %v1117_v54 = vpop.f32.mrb[54].mxu0 }
 0x165   :  { %v880_v12 = vrot.slane %v617_v15, 1  ;;  %v1392_v3 = vrot.slane %v1117_v54, 2  ;;  %v619_v30 = vpop.f32.mrb[55].mxu1  ;;  %v1119_v35 = vpop.f32.mrb[55].mxu0  ;;  %v7910_v15 = vld [vmem:[#allocation8_spill] sm:$0xff] }
 0x166   :  { %v883_v9 = vrot.slane %v619_v30, 1  ;;  %v1395_v10 = vrot.slane %v1119_v35, 2 }
 0x167   :  { %v881_v25 = vsel %vm815_vm1, %v879_v5, %v880_v12  ;;  %v6359_v13 = vadd.f32 %v880_v12, %v6079_v52  ;;  %v1393_v47 = vsel %vm1363_vm2, %v1391_v58, %v1392_v3  ;;  %v6363_v63 = vadd.f32 %v1392_v3, %v6254_v11  ;;  %v7911_v52 = vld [vmem:[#allocation7_spill] sm:$0xff] }
 0x168   :  { %v6366_v61 = vadd.f32 %v881_v25, %v7908_v16  ;;  %v6369_v34 = vadd.f32 %v1393_v47, %v6260_v7  ;;  %v884_v45 = vsel %vm815_vm1, %v882_v31, %v883_v9  ;;  %v6373_v54 = vadd.f32 %v883_v9, %v7910_v15  ;;  %v1123_v5 = vpop.f32.mrb[56].mxu0  ;;  %v4535_v30 = vpop.f32.mrb[56].mxu1 }
 0x169   :  { %v6376_v12 = vadd.f32 %v884_v45, %v7911_v52  ;;  %v1396_v58 = vsel %vm1363_vm2, %v1394_v50, %v1395_v10  ;;  %v6380_v11 = vadd.f32 %v1395_v10, %v6264_v46  ;;  %v1125_v3 = vpop.f32.mrb[57].mxu0  ;;  %v1236_v35 = vpop.f32.mrb[57].mxu1  ;;  %v1371_v25 = vrot.slane %v4535_v30, 2 }
 0x16a   :  { %7909 = vst [vmem:[#allocation6_spill] sm:$0xff] %v6369_v34  ;;  %v6383_v7 = vadd.f32 %v1396_v58, %v6268_v19  ;;  %v1370_v31 = vrot.slane %v1236_v35, 2  ;;  %v1400_v15 = vrot.slane %v1123_v5, 2  ;;  %v1403_v34 = vrot.slane %v1125_v3, 2 }
 0x16b   :  { %7912 = vst [vmem:[#allocation8_spill] sm:$0xff] %v6380_v11  ;;  %v6386_v9 = vadd.f32 %v1371_v25, %v6166_v27 }
 0x16c   :  { %v1372_v47 = vsel %vm1363_vm2, %v1370_v31, %v1371_v25  ;;  %v1129_v16 = vpop.f32.mrb[58].mxu0  ;;  %v4538_v45 = vpop.f32.mrb[58].mxu1 }
 0x16d   :  { %v6390_v50 = vadd.f32 %v1372_v47, %v6169_v38  ;;  %v1401_v46 = vrot.slane %v1129_v16, 2  ;;  %v1380_v10 = vrot.slane %v4538_v45, 2  ;;  %v1131_v52 = vpop.f32.mrb[59].mxu0  ;;  %v1246_v11 = vpop.f32.mrb[59].mxu1 }
 0x16e   :  { %v1404_v19 = vrot.slane %v1131_v52, 2  ;;  %v1379_v58 = vrot.slane %v1246_v11, 2 }
 0x16f   :  { %v1402_v30 = vsel %vm1363_vm2, %v1400_v15, %v1401_v46  ;;  %v6394_v27 = vadd.f32 %v1401_v46, %v6275_v17  ;;  %v6397_v35 = vadd.f32 %v1380_v10, %v6175_v56 }
 0x170   :  { %v6400_v5 = vadd.f32 %v1402_v30, %v6282_v59  ;;  %v1405_v38 = vsel %vm1363_vm2, %v1403_v34, %v1404_v19  ;;  %v6404_v25 = vadd.f32 %v1404_v19, %v6289_v23  ;;  %v1381_v3 = vsel %vm1363_vm2, %v1379_v58, %v1380_v10  ;;  %v1135_v31 = vpop.f32.mrb[60].mxu0  ;;  %v4541_v11 = vpop.f32.mrb[60].mxu1 }
 0x171   :  { %v6408_v47 = vadd.f32 %v1405_v38, %v6292_v6  ;;  %v6411_v17 = vadd.f32 %v1381_v3, %v6188_v28  ;;  %v1389_v56 = vrot.slane %v4541_v11, 2  ;;  %v1137_v16 = vpop.f32.mrb[61].mxu0  ;;  %v1256_v45 = vpop.f32.mrb[61].mxu1  ;;  %v1409_v10 = vrot.slane %v1135_v31, 2 }
 0x172   :  { %v1388_v59 = vrot.slane %v1256_v45, 2  ;;  %v1412_v30 = vrot.slane %v1137_v16, 2 }
 0x173   :  { %v6414_v15 = vadd.f32 %v1389_v56, %v6190_v44 }
 0x174   :  { %v1390_v23 = vsel %vm1363_vm2, %v1388_v59, %v1389_v56  ;;  %v1141_v34 = vpop.f32.mrb[62].mxu0  ;;  %v4544_v46 = vpop.f32.mrb[62].mxu1 }
 0x175   :  { %v6418_v52 = vadd.f32 %v1390_v23, %v6194_v40  ;;  %v1410_v6 = vrot.slane %v1141_v34, 2  ;;  %v1398_v19 = vrot.slane %v4544_v46, 2  ;;  %v1143_v58 = vpop.f32.mrb[63].mxu0  ;;  %v1266_v28 = vpop.f32.mrb[63].mxu1 }
 0x176   :  { %v1413_v38 = vrot.slane %v1143_v58, 2  ;;  %v1397_v3 = vrot.slane %v1266_v28, 2 }
 0x177   :  { %v1411_v11 = vsel %vm1363_vm2, %v1409_v10, %v1410_v6  ;;  %v6422_v44 = vadd.f32 %v1410_v6, %v6303_v53  ;;  %v6425_v56 = vadd.f32 %v1398_v19, %v6201_v32 }
 0x178   :  { %v6428_v31 = vadd.f32 %v1411_v11, %v6310_v8  ;;  %v1414_v40 = vsel %vm1363_vm2, %v1412_v30, %v1413_v38  ;;  %v6432_v45 = vadd.f32 %v1413_v38, %v6317_v2  ;;  %v1399_v16 = vsel %vm1363_vm2, %v1397_v3, %v1398_v19  ;;  %v1147_v59 = vpop.f32.mrb[64].mxu0  ;;  %v4547_v23 = vpop.f32.mrb[64].mxu1 }
 0x179   :  { %v6436_v34 = vadd.f32 %v1414_v40, %v6320_v14  ;;  %v6439_v53 = vadd.f32 %v1399_v16, %v6215_v18  ;;  %v1407_v32 = vrot.slane %v4547_v23, 2  ;;  %v1149_v46 = vpop.f32.mrb[65].mxu0  ;;  %v1276_v10 = vpop.f32.mrb[65].mxu1  ;;  %v1418_v19 = vrot.slane %v1147_v59, 2 }
 0x17a   :  { %v1406_v8 = vrot.slane %v1276_v10, 2  ;;  %v1421_v11 = vrot.slane %v1149_v46, 2 }
 0x17b   :  { %v6442_v6 = vadd.f32 %v1407_v32, %v6218_v43 }
 0x17c   :  { %v1408_v2 = vsel %vm1363_vm2, %v1406_v8, %v1407_v32  ;;  %v1153_v58 = vpop.f32.mrb[66].mxu0  ;;  %v4550_v28 = vpop.f32.mrb[66].mxu1 }
 0x17d   :  { %v6446_v30 = vadd.f32 %v1408_v2, %v6222_v21  ;;  %v1419_v14 = vrot.slane %v1153_v58, 2  ;;  %v1416_v38 = vrot.slane %v4550_v28, 2  ;;  %v1155_v3 = vpop.f32.mrb[67].mxu0  ;;  %v1286_v18 = vpop.f32.mrb[67].mxu1 }
 0x17e   :  { %v1422_v40 = vrot.slane %v1155_v3, 2  ;;  %v1415_v16 = vrot.slane %v1286_v18, 2 }
 0x17f   :  { %v1420_v23 = vsel %vm1363_vm2, %v1418_v19, %v1419_v14  ;;  %v6450_v43 = vadd.f32 %v1419_v14, %v6331_v39  ;;  %v6453_v32 = vadd.f32 %v1416_v38, %v6229_v33 }
 0x180   :  { %v6456_v59 = vadd.f32 %v1420_v23, %v6338_v0  ;;  %v1423_v21 = vsel %vm1363_vm2, %v1421_v11, %v1422_v40  ;;  %v6460_v10 = vadd.f32 %v1422_v40, %v6345_v55  ;;  %v1417_v46 = vsel %vm1363_vm2, %v1415_v16, %v1416_v38  ;;  %v1159_v8 = vpop.f32.mrb[68].mxu0  ;;  %v4553_v2 = vpop.f32.mrb[68].mxu1 }
 0x181   :  { %v6464_v58 = vadd.f32 %v1423_v21, %v6348_v48  ;;  %v6467_v39 = vadd.f32 %v1417_v46, %v6243_v29  ;;  %v1425_v33 = vrot.slane %v4553_v2, 2  ;;  %v1161_v28 = vpop.f32.mrb[69].mxu0  ;;  %v1296_v19 = vpop.f32.mrb[69].mxu1  ;;  %v1427_v38 = vrot.slane %v1159_v8, 2 }
 0x182   :  { %v1424_v0 = vrot.slane %v1296_v19, 2  ;;  %v1430_v23 = vrot.slane %v1161_v28, 2  ;;  %v7913_v19 = vld [vmem:[#allocation9_spill] sm:$0xff] }
 0x183   :  { %v6470_v14 = vadd.f32 %v1425_v33, %v6246_v51 }
 0x184   :  { %v1426_v55 = vsel %vm1363_vm2, %v1424_v0, %v1425_v33  ;;  %v1165_v3 = vpop.f32.mrb[70].mxu0  ;;  %v4556_v18 = vpop.f32.mrb[70].mxu1 }
 0x185   :  { %v6474_v11 = vadd.f32 %v1426_v55, %v6250_v62  ;;  %v1428_v48 = vrot.slane %v1165_v3, 2  ;;  %v1434_v40 = vrot.slane %v4556_v18, 2  ;;  %v1167_v16 = vpop.f32.mrb[71].mxu0  ;;  %v1306_v29 = vpop.f32.mrb[71].mxu1 }
 0x186   :  { %v1431_v21 = vrot.slane %v1167_v16, 2  ;;  %v1433_v46 = vrot.slane %v1306_v29, 2 }
 0x187   :  { %v1429_v2 = vsel %vm1363_vm2, %v1427_v38, %v1428_v48  ;;  %v6478_v51 = vadd.f32 %v1428_v48, %v6359_v13  ;;  %v6481_v33 = vadd.f32 %v1434_v40, %v7913_v19 }
 0x188   :  { %v6484_v8 = vadd.f32 %v1429_v2, %v6366_v61  ;;  %v1432_v62 = vsel %vm1363_vm2, %v1430_v23, %v1431_v21  ;;  %v6488_v0 = vadd.f32 %v1431_v21, %v6373_v54  ;;  %v1435_v28 = vsel %vm1363_vm2, %v1433_v46, %v1434_v40  ;;  %v4575_v55 = vpop.f32.mrb[72].mxu0  ;;  %v1623_v3 = vpop.f32.mrb[72].mxu1 }
 0x189   :  { %v6492_v18 = vadd.f32 %v1432_v62, %v6376_v12  ;;  %v6495_v13 = vadd.f32 %v1435_v28, %v6271_v42  ;;  %v1919_v38 = vrot.slane %v4575_v55, 3  ;;  %v1784_v48 = vpop.f32.mrb[73].mxu0  ;;  %v1625_v61 = vpop.f32.mrb[73].mxu1  ;;  %v1912_v54 = vrot.slane %v1623_v3, 3 }
 0x18a   :  { %v1918_v16 = vrot.slane %v1784_v48, 3  ;;  %v1915_v40 = vrot.slane %v1625_v61, 3 }
 0x18b   :  { %v6498_v29 = vadd.f32 %v1919_v38, %v6386_v9 }
 0x18c   :  { %v1920_v23 = vsel %vm1911_vm3, %v1918_v16, %v1919_v38  ;;  %v1629_v21 = vpop.f32.mrb[74].mxu1  ;;  %v4578_v46 = vpop.f32.mrb[74].mxu0 }
 0x18d   :  { %v6502_v12 = vadd.f32 %v1920_v23, %v6390_v50  ;;  %v1913_v2 = vrot.slane %v1629_v21, 3  ;;  %v1928_v42 = vrot.slane %v4578_v46, 3  ;;  %v1631_v19 = vpop.f32.mrb[75].mxu1  ;;  %v1794_v62 = vpop.f32.mrb[75].mxu0 }
 0x18e   :  { %v1916_v28 = vrot.slane %v1631_v19, 3  ;;  %v1927_v55 = vrot.slane %v1794_v62, 3 }
 0x18f   :  { %v1914_v48 = vsel %vm1911_vm3, %v1912_v54, %v1913_v2  ;;  %v6506_v9 = vadd.f32 %v1913_v2, %v6279_v60  ;;  %v6509_v3 = vadd.f32 %v1928_v42, %v6397_v35 }
 0x190   :  { %v6512_v38 = vadd.f32 %v1914_v48, %v6285_v26  ;;  %v1917_v50 = vsel %vm1911_vm3, %v1915_v40, %v1916_v28  ;;  %v6516_v61 = vadd.f32 %v1916_v28, %v6296_v22  ;;  %v1929_v16 = vsel %vm1911_vm3, %v1927_v55, %v1928_v42  ;;  %v4581_v23 = vpop.f32.mrb[76].mxu0  ;;  %v1635_v21 = vpop.f32.mrb[76].mxu1 }
 0x191   :  { %v6520_v54 = vadd.f32 %v1917_v50, %v6299_v20  ;;  %v6523_v60 = vadd.f32 %v1929_v16, %v6411_v17  ;;  %v1937_v35 = vrot.slane %v4581_v23, 3  ;;  %v1804_v46 = vpop.f32.mrb[77].mxu0  ;;  %v1637_v2 = vpop.f32.mrb[77].mxu1  ;;  %v1921_v40 = vrot.slane %v1635_v21, 3 }
 0x192   :  { %v1936_v26 = vrot.slane %v1804_v46, 3  ;;  %v1924_v62 = vrot.slane %v1637_v2, 3 }
 0x193   :  { %v6526_v19 = vadd.f32 %v1937_v35, %v6414_v15 }
 0x194   :  { %v1938_v22 = vsel %vm1911_vm3, %v1936_v26, %v1937_v35  ;;  %v1641_v42 = vpop.f32.mrb[78].mxu1  ;;  %v4584_v28 = vpop.f32.mrb[78].mxu0 }
 0x195   :  { %v6530_v55 = vadd.f32 %v1938_v22, %v6418_v52  ;;  %v1922_v20 = vrot.slane %v1641_v42, 3  ;;  %v1946_v48 = vrot.slane %v4584_v28, 3  ;;  %v1643_v17 = vpop.f32.mrb[79].mxu1  ;;  %v1814_v50 = vpop.f32.mrb[79].mxu0 }
 0x196   :  { %v1925_v16 = vrot.slane %v1643_v17, 3  ;;  %v1945_v23 = vrot.slane %v1814_v50, 3 }
 0x197   :  { %v1923_v46 = vsel %vm1911_vm3, %v1921_v40, %v1922_v20  ;;  %v6534_v15 = vadd.f32 %v1922_v20, %v6307_v57  ;;  %v6537_v21 = vadd.f32 %v1946_v48, %v6425_v56 }
 0x198   :  { %v6540_v35 = vadd.f32 %v1923_v46, %v6313_v24  ;;  %v1926_v52 = vsel %vm1911_vm3, %v1924_v62, %v1925_v16  ;;  %v6544_v2 = vadd.f32 %v1925_v16, %v6324_v36  ;;  %v1947_v26 = vsel %vm1911_vm3, %v1945_v23, %v1946_v48  ;;  %v4587_v22 = vpop.f32.mrb[80].mxu0  ;;  %v1647_v42 = vpop.f32.mrb[80].mxu1 }
 0x199   :  { %v6548_v40 = vadd.f32 %v1926_v52, %v6327_v41  ;;  %v6551_v57 = vadd.f32 %v1947_v26, %v6439_v53  ;;  %v1955_v56 = vrot.slane %v4587_v22, 3  ;;  %v1824_v28 = vpop.f32.mrb[81].mxu0  ;;  %v1649_v20 = vpop.f32.mrb[81].mxu1  ;;  %v1930_v62 = vrot.slane %v1647_v42, 3 }
 0x19a   :  { %v1954_v24 = vrot.slane %v1824_v28, 3  ;;  %v1933_v50 = vrot.slane %v1649_v20, 3 }
 0x19b   :  { %7914 = vst [vmem:[#allocation7_spill] sm:$0xff] %v6551_v57  ;;  %v6554_v17 = vadd.f32 %v1955_v56, %v6442_v6 }
 0x19c   :  { %v1956_v36 = vsel %vm1911_vm3, %v1954_v24, %v1955_v56  ;;  %v1653_v48 = vpop.f32.mrb[82].mxu1  ;;  %v4590_v16 = vpop.f32.mrb[82].mxu0 }
 0x19d   :  { %7915 = vst [vmem:[#allocation9_spill] sm:$0xff] %v6554_v17  ;;  %v6558_v23 = vadd.f32 %v1956_v36, %v6446_v30  ;;  %v1931_v41 = vrot.slane %v1653_v48, 3  ;;  %v1964_v46 = vrot.slane %v4590_v16, 3  ;;  %v1655_v53 = vpop.f32.mrb[83].mxu1  ;;  %v1834_v52 = vpop.f32.mrb[83].mxu0 }
 0x19e   :  { %v1934_v26 = vrot.slane %v1655_v53, 3  ;;  %v1963_v22 = vrot.slane %v1834_v52, 3 }
 0x19f   :  { %7916 = vst [vmem:[#allocation10_spill] sm:$0xff] %v6558_v23  ;;  %v1932_v28 = vsel %vm1911_vm3, %v1930_v62, %v1931_v41  ;;  %v6562_v6 = vadd.f32 %v1931_v41, %v6335_v37  ;;  %v6565_v42 = vadd.f32 %v1964_v46, %v6453_v32 }
 0x1a0   :  { %v6568_v56 = vadd.f32 %v1932_v28, %v6341_v1  ;;  %v1935_v30 = vsel %vm1911_vm3, %v1933_v50, %v1934_v26  ;;  %v6572_v20 = vadd.f32 %v1934_v26, %v6352_v4  ;;  %v1965_v24 = vsel %vm1911_vm3, %v1963_v22, %v1964_v46  ;;  %v4593_v36 = vpop.f32.mrb[84].mxu0  ;;  %v1659_v48 = vpop.f32.mrb[84].mxu1 }
 0x1a1   :  { %7917 = vst [vmem:[#allocation11_spill] sm:$0xff] %v6565_v42  ;;  %v6576_v62 = vadd.f32 %v1935_v30, %v6355_v49  ;;  %v6579_v37 = vadd.f32 %v1965_v24, %v6467_v39  ;;  %v1973_v32 = vrot.slane %v4593_v36, 3  ;;  %v1844_v16 = vpop.f32.mrb[85].mxu0  ;;  %v1661_v41 = vpop.f32.mrb[85].mxu1  ;;  %v7831_v1 = vlaneseq }
 0x1a2   :  { %v1972_v53 = vrot.slane %v1844_v16, 3  ;;  %v1939_v4 = vrot.slane %v1659_v48, 3  ;;  %v1942_v46 = vrot.slane %v1661_v41, 3  ;;  %v7923_v41 = vld [vmem:[#allocation6_spill] sm:$0xff] }
 0x1a3   :  { %7918 = vst [vmem:[#allocation12_spill] sm:$0xff] %v6579_v37  ;;  %v6582_v50 = vadd.f32 %v1973_v32, %v6470_v14  ;;  %v6589_v36 = vshrl.u32 %v7831_v1, 7 }
 0x1a4   :  { %v1974_v52 = vsel %vm1911_vm3, %v1972_v53, %v1973_v32  ;;  %v1665_v26 = vpop.f32.mrb[86].mxu1  ;;  %v4596_v22 = vpop.f32.mrb[86].mxu0 }
 0x1a5   :  { %7919 = vst [vmem:[#allocation13_spill] sm:$0xff] %v6582_v50  ;;  %v6586_v49 = vadd.f32 %v1974_v52, %v6474_v11  ;;  %v1940_v28 = vrot.slane %v1665_v26, 3  ;;  %v1982_v39 = vrot.slane %v4596_v22, 3  ;;  %v1667_v30 = vpop.f32.mrb[87].mxu1  ;;  %v1854_v24 = vpop.f32.mrb[87].mxu0  ;;  %7921 = vst [vmem:[#allocation15_spill] sm:$0xff] %v6589_v36 }
 0x1a6   :  { %v1943_v16 = vrot.slane %v1667_v30, 3  ;;  %v1981_v37 = vrot.slane %v1854_v24, 3  ;;  %v7924_v52 = vld [vmem:[#allocation8_spill] sm:$0xff] }
 0x1a7   :  { %7920 = vst [vmem:[#allocation14_spill] sm:$0xff] %v6586_v49  ;;  %v1941_v14 = vsel %vm1911_vm3, %v1939_v4, %v1940_v28  ;;  %v6593_v48 = vadd.f32 %v1940_v28, %v6363_v63  ;;  %v6596_v32 = vadd.f32 %v1982_v39, %v6481_v33 }
 0x1a8   :  { %v6599_v11 = vadd.f32 %v1941_v14, %v7923_v41  ;;  %v1944_v53 = vsel %vm1911_vm3, %v1942_v46, %v1943_v16  ;;  %v6603_v26 = vadd.f32 %v1943_v16, %v7924_v52  ;;  %v1983_v22 = vsel %vm1911_vm3, %v1981_v37, %v1982_v39  ;;  %v2171_v30 = vpop.f32.mrb[88].mxu0  ;;  %v1671_v24 = vpop.f32.mrb[88].mxu1  ;;  %v6618_v46 = vld [vmem:[%s7825_s2] sm:$0x7]  ;;  %s5183_s2 = smov 96  }
 0x1a9   :  { %7922 = vst [vmem:[#allocation16_spill] sm:$0xff] %v6596_v32  ;;  %v6607_v4 = vadd.f32 %v1944_v53, %v6383_v7  ;;  %v6610_v63 = vadd.f32 %v1983_v22, %v6495_v13  ;;  %v2173_v33 = vpop.f32.mrb[89].mxu0  ;;  %v1673_v28 = vpop.f32.mrb[89].mxu1  ;;  %v6613_v14 = vsub.s32 0, %v6589_v36  ;;  %v6621_v37 = vsub.s32 1, %v6589_v36 }
 0x1aa   :  { %v1948_v39 = vrot.slane %v1671_v24, 3  ;;  %v1951_v16 = vrot.slane %v1673_v28, 3  ;;  %v2460_v13 = vrot.slane %v2171_v30, 4  ;;  %v2463_v32 = vrot.slane %v2173_v33, 4 }
 0x1ab   :  { %7925 = vst [vmem:[#allocation6_spill] sm:$0xff] %v6610_v63  ;;  %7926 = vst [vmem:[#allocation8_spill] sm:$0xff] %v6613_v14  ;;  %v6625_v22 = vrot.slane %v6618_v46, %v6613_v14  ;;  %v6629_v42 = vrot.slane %v6618_v46, %v6621_v37 }
 0x1ac   :  { %7927 = vst [vmem:[#allocation17_spill] sm:$0xff] %v6621_v37  ;;  %v1677_v7 = vpop.f32.mrb[90].mxu1  ;;  %v2177_v41 = vpop.f32.mrb[90].mxu0 }
 0x1ad   :  { %v1949_v53 = vrot.slane %v1677_v7, 3  ;;  %v2461_v52 = vrot.slane %v2177_v41, 4  ;;  %v1679_v1 = vpop.f32.mrb[91].mxu1  ;;  %v2179_v63 = vpop.f32.mrb[91].mxu0 }
 0x1ae   :  { %v1952_v49 = vrot.slane %v1679_v1, 3  ;;  %v2464_v50 = vrot.slane %v2179_v63, 4 }
 0x1af   :  { %v1950_v24 = vsel %vm1911_vm3, %v1948_v39, %v1949_v53  ;;  %v6633_v28 = vadd.f32 %v1949_v53, %v6394_v27  ;;  %v2462_v30 = vsel %vm2459_vm4, %v2460_v13, %v2461_v52  ;;  %v2583_v7 = vadd.f32 %v2461_v52, %v6506_v9 }
 0x1b0   :  { %v6638_v41 = vadd.f32 %v1950_v24, %v6400_v5  ;;  %v2580_v33 = vadd.f32 %v2462_v30, %v6512_v38  ;;  %v1953_v1 = vsel %vm1911_vm3, %v1951_v16, %v1952_v49  ;;  %v6643_v63 = vadd.f32 %v1952_v49, %v6404_v25  ;;  %v2183_v37 = vpop.f32.mrb[92].mxu0  ;;  %v1683_v14 = vpop.f32.mrb[92].mxu1 }
 0x1b1   :  { %v2648_v39 = vadd.f32 %v6625_v22, %v2583_v7  ;;  %v6647_v27 = vadd.f32 %v1953_v1, %v6408_v47  ;;  %v2465_v13 = vsel %vm2459_vm4, %v2463_v32, %v2464_v50  ;;  %v2584_v9 = vadd.f32 %v2464_v50, %v6516_v61  ;;  %v2185_v5 = vpop.f32.mrb[93].mxu0  ;;  %v1685_v53 = vpop.f32.mrb[93].mxu1 }
 0x1b2   :  { %v6652_v38 = vadd.f32 %v6625_v22, %v2580_v33  ;;  %v2581_v16 = vadd.f32 %v2465_v13, %v6520_v54  ;;  %v1957_v52 = vrot.slane %v1683_v14, 3  ;;  %v1960_v7 = vrot.slane %v1685_v53, 3 }
 0x1b3   :  { %v2696_v25 = vmax.f32 %v2648_v39, 0.0  ;;  %v2649_v49 = vadd.f32 %v6629_v42, %v2584_v9 }
 0x1b4   :  { %7928 = vst [vmem:[#allocation18_spill] sm:$0xff] %v6652_v38  ;;  %v7836_v24 = vmax.f32 %v6652_v38, 0.0  ;;  %v6658_v47 = vadd.f32 %v6629_v42, %v2581_v16  ;;  %v1689_v32 = vpop.f32.mrb[94].mxu1  ;;  %v2189_v30 = vpop.f32.mrb[94].mxu0 }
 0x1b5   :  { %v3183_v61 = vsel %vm2459_vm4, %v2696_v25, -inf  ;;  %v2697_v50 = vmax.f32 %v2649_v49, 0.0  ;;  %v1958_v33 = vrot.slane %v1689_v32, 3  ;;  %v1691_v1 = vpop.f32.mrb[95].mxu1  ;;  %v2191_v23 = vpop.f32.mrb[95].mxu0  ;;  %v2470_v39 = vrot.slane %v2189_v30, 4 }
 0x1b6   :  { %v3182_v54 = vsel %vm3181_vm5, %v7836_v24, -inf  ;;  %v7837_v14 = vmax.f32 %v6658_v47, 0.0  ;;  %v1961_v13 = vrot.slane %v1691_v1, 3  ;;  %v2469_v25 = vrot.slane %v2183_v37, 4 }
 0x1b7   :  { %v6665_v9 = vmax.f32 %v3182_v54, %v3183_v61  ;;  %v3192_v16 = vsel %vm2459_vm4, %v2697_v50, -inf  ;;  %v1959_v17 = vsel %vm1911_vm3, %v1957_v52, %v1958_v33  ;;  %v6676_v32 = vadd.f32 %v1958_v33, %v6422_v44 }
 0x1b8   :  { %v3191_v53 = vsel %vm3181_vm5, %v7837_v14, -inf  ;;  %v6673_v49 = vadd.f32 %v1959_v17, %v6428_v31  ;;  %v2195_v24 = vpop.f32.mrb[96].mxu0  ;;  %v1695_v30 = vpop.f32.mrb[96].mxu1  ;;  %v2471_v52 = vsel %vm2459_vm4, %v2469_v25, %v2470_v39  ;;  %v2589_v54 = vadd.f32 %v2470_v39, %v6534_v15 }
 0x1b9   :  { %7929 = vst [vmem:[#allocation19_spill] sm:$0xff] %v6665_v9  ;;  %v6678_v1 = vmax.f32 %v3191_v53, %v3192_v16  ;;  %v6680_v61 = vpop.f32.mrb[97].mxu0  ;;  %v1697_v50 = vpop.f32.mrb[97].mxu1  ;;  %v1962_v14 = vsel %vm1911_vm3, %v1960_v7, %v1961_v13  ;;  %v6686_v37 = vadd.f32 %v1961_v13, %v6432_v45  ;;  %v2586_v31 = vadd.f32 %v2471_v52, %v6540_v35 }
 0x1ba   :  { %v2472_v44 = vrot.slane %v2185_v5, 4  ;;  %v2654_v17 = vadd.f32 %v6625_v22, %v2589_v54  ;;  %v6691_v33 = vadd.f32 %v1962_v14, %v6436_v34  ;;  %v2473_v16 = vrot.slane %v2191_v23, 4 }
 0x1bb   :  { %7930 = vst [vmem:[#allocation20_spill] sm:$0xff] %v6678_v1  ;;  %v6694_v25 = vadd.f32 %v6625_v22, %v2586_v31  ;;  %v1966_v14 = vrot.slane %v1695_v30, 3 }
 0x1bc   :  { %v1701_v53 = vpop.f32.mrb[98].mxu1  ;;  %v2201_v38 = vpop.f32.mrb[98].mxu0  ;;  %v2702_v7 = vmax.f32 %v2654_v17, 0.0  ;;  %v2474_v45 = vsel %vm2459_vm4, %v2472_v44, %v2473_v16  ;;  %v2590_v13 = vadd.f32 %v2473_v16, %v6544_v2  ;;  %v2478_v44 = vrot.slane %v2195_v24, 4 }
 0x1bd   :  { %7931 = vst [vmem:[#allocation21_spill] sm:$0xff] %v6694_v25  ;;  %v1703_v15 = vpop.f32.mrb[99].mxu1  ;;  %v2203_v39 = vpop.f32.mrb[99].mxu0  ;;  %v7841_v35 = vmax.f32 %v6694_v25, 0.0  ;;  %v2587_v5 = vadd.f32 %v2474_v45, %v6548_v40  ;;  %v1967_v2 = vrot.slane %v1701_v53, 3  ;;  %v1969_v45 = vrot.slane %v1697_v50, 3 }
 0x1be   :  { %v3210_v34 = vsel %vm2459_vm4, %v2702_v7, -inf  ;;  %v2655_v23 = vadd.f32 %v6629_v42, %v2590_v13  ;;  %v2479_v30 = vrot.slane %v2201_v38, 4 }
 0x1bf   :  { %v3209_v31 = vsel %vm3181_vm5, %v7841_v35, -inf  ;;  %v6706_v17 = vadd.f32 %v6629_v42, %v2587_v5  ;;  %v1968_v25 = vsel %vm1911_vm3, %v1966_v14, %v1967_v2  ;;  %v6717_v35 = vadd.f32 %v1967_v2, %v6450_v43 }
 0x1c0   :  { %v2207_v52 = vpop.f32.mrb[100].mxu0  ;;  %v1707_v54 = vpop.f32.mrb[100].mxu1  ;;  %v6712_v40 = vmax.f32 %v3209_v31, %v3210_v34  ;;  %v2703_v7 = vmax.f32 %v2655_v23, 0.0  ;;  %v1970_v5 = vrot.slane %v1703_v15, 3  ;;  %v6721_v53 = vadd.f32 %v1968_v25, %v6456_v59 }
 0x1c1   :  { %v6708_v16 = vpop.f32.mrb[101].mxu0  ;;  %v6710_v1 = vpop.f32.mrb[101].mxu1  ;;  %v7843_v13 = vmax.f32 %v6706_v17, 0.0  ;;  %v2480_v38 = vsel %vm2459_vm4, %v2478_v44, %v2479_v30  ;;  %v2595_v34 = vadd.f32 %v2479_v30, %v6562_v6  ;;  %v2481_v2 = vrot.slane %v6680_v61, 4 }
 0x1c2   :  { %v3219_v24 = vsel %vm2459_vm4, %v2703_v7, -inf  ;;  %v2592_v15 = vadd.f32 %v2480_v38, %v6568_v56  ;;  %v1971_v25 = vsel %vm1911_vm3, %v1969_v45, %v1970_v5  ;;  %v6736_v31 = vadd.f32 %v1970_v5, %v6460_v10 }
 0x1c3   :  { %v3218_v50 = vsel %vm3181_vm5, %v7843_v13, -inf  ;;  %v2660_v59 = vadd.f32 %v6625_v22, %v2595_v34  ;;  %v2482_v56 = vrot.slane %v2203_v39, 4  ;;  %v1975_v10 = vrot.slane %v1707_v54, 3 }
 0x1c4   :  { %v1713_v9 = vpop.f32.mrb[102].mxu1  ;;  %v2213_v57 = vpop.f32.mrb[102].mxu0  ;;  %v6730_v43 = vmax.f32 %v3218_v50, %v3219_v24  ;;  %v6744_v6 = vadd.f32 %v6625_v22, %v2592_v15  ;;  %v6747_v24 = vadd.f32 %v1971_v25, %v6464_v58  ;;  %v2487_v25 = vrot.slane %v2207_v52, 4 }
 0x1c5   :  { %v1715_v23 = vpop.f32.mrb[103].mxu1  ;;  %v6728_v14 = vpop.f32.mrb[103].mxu0  ;;  %v2708_v30 = vmax.f32 %v2660_v59, 0.0  ;;  %v2483_v38 = vsel %vm2459_vm4, %v2481_v2, %v2482_v56  ;;  %v2596_v34 = vadd.f32 %v2482_v56, %v6572_v20  ;;  %v1976_v59 = vrot.slane %v1713_v9, 3 }
 0x1c6   :  { %7932 = vst [vmem:[#allocation22_spill] sm:$0xff] %v6730_v43  ;;  %7933 = vst [vmem:[#allocation23_spill] sm:$0xff] %v6744_v6  ;;  %v7845_v5 = vmax.f32 %v6744_v6, 0.0  ;;  %v2593_v15 = vadd.f32 %v2483_v38, %v6576_v62  ;;  %v2488_v43 = vrot.slane %v2213_v57, 4 }
 0x1c7   :  { %v3237_v61 = vsel %vm2459_vm4, %v2708_v30, -inf  ;;  %v2661_v54 = vadd.f32 %v6629_v42, %v2596_v34  ;;  %v1977_v9 = vsel %vm1911_vm3, %v1975_v10, %v1976_v59  ;;  %v1978_v34 = vrot.slane %v6710_v1, 3 }
 0x1c8   :  { %v6739_v7 = vpop.f32.mrb[104].mxu1  ;;  %v6741_v44 = vpop.f32.mrb[104].mxu0  ;;  %v3236_v39 = vsel %vm3181_vm5, %v7845_v5, -inf  ;;  %v6773_v62 = vadd.f32 %v6629_v42, %v2593_v15  ;;  %v6777_v38 = vadd.f32 %v1977_v9, %v6484_v8  ;;  %v6780_v5 = vadd.f32 %v1976_v59, %v6478_v51 }
 0x1c9   :  { %v6749_v50 = vpop.f32.mrb[105].mxu1  ;;  %v6751_v45 = vpop.f32.mrb[105].mxu0  ;;  %v6770_v20 = vmax.f32 %v3236_v39, %v3237_v61  ;;  %v2709_v56 = vmax.f32 %v2661_v54, 0.0  ;;  %v2489_v57 = vsel %vm2459_vm4, %v2487_v25, %v2488_v43  ;;  %v2601_v8 = vadd.f32 %v2488_v43, %v6593_v48 }
 0x1ca   :  { %7934 = vst [vmem:[#allocation24_spill] sm:$0xff] %v6777_v38  ;;  %7935 = vst [vmem:[#allocation25_spill] sm:$0xff] %v6780_v5  ;;  %v7846_v52 = vmax.f32 %v6773_v62, 0.0  ;;  %v2598_v61 = vadd.f32 %v2489_v57, %v6599_v11  ;;  %v1979_v54 = vrot.slane %v1715_v23, 3  ;;  %v2491_v1 = vrot.slane %v6728_v14, 4 }
 0x1cb   :  { %v3246_v10 = vsel %vm2459_vm4, %v2709_v56, -inf  ;;  %v2666_v56 = vadd.f32 %v6625_v22, %v2601_v8  ;;  %v6807_v48 = vsub.s32 2, %v6589_v36  ;;  %v2490_v23 = vrot.slane %v6708_v16, 4 }
 0x1cc   :  { %v6758_v13 = vpop.f32.mrb[106].mxu0  ;;  %v6760_v58 = vpop.f32.mrb[106].mxu1  ;;  %v3245_v59 = vsel %vm3181_vm5, %v7846_v52, -inf  ;;  %v6803_v25 = vadd.f32 %v6625_v22, %v2598_v61  ;;  %v1980_v43 = vsel %vm1911_vm3, %v1978_v34, %v1979_v54  ;;  %v6812_v57 = vadd.f32 %v1979_v54, %v6488_v0 }
 0x1cd   :  { %v6766_v30 = vpop.f32.mrb[107].mxu0  ;;  %v6768_v2 = vpop.f32.mrb[107].mxu1  ;;  %v6800_v11 = vmax.f32 %v3245_v59, %v3246_v10  ;;  %7937 = vst [vmem:[#allocation27_spill] sm:$0xff] %v6807_v48  ;;  %v2714_v61 = vmax.f32 %v2666_v56, 0.0  ;;  %v6824_v36 = vadd.f32 %v1980_v43, %v6492_v18  ;;  %v2492_v16 = vsel %vm2459_vm4, %v2490_v23, %v2491_v1 }
 0x1ce   :  { %7936 = vst [vmem:[#allocation26_spill] sm:$0xff] %v6803_v25  ;;  %7938 = vst [vmem:[#allocation28_spill] sm:$0xff] %v6812_v57  ;;  %v7850_v10 = vmax.f32 %v6803_v25, 0.0  ;;  %v2602_v34 = vadd.f32 %v2491_v1, %v6603_v26  ;;  %v2467_v0 = vrot.slane %v6739_v7, 4  ;;  %v6835_v56 = vrot.slane %v6618_v46, %v6807_v48 }
 0x1cf   :  { %7939 = vst [vmem:[#allocation29_spill] sm:$0xff] %v6824_v36  ;;  %v3264_v6 = vsel %vm2459_vm4, %v2714_v61, -inf  ;;  %v2599_v18 = vadd.f32 %v2492_v16, %v6607_v4  ;;  %v2466_v1 = vrot.slane %v6749_v50, 4  ;;  %v2496_v61 = vrot.slane %v6741_v44, 4 }
 0x1d0   :  { %v6786_v39 = vpop.f32.mrb[108].mxu1  ;;  %v6788_v15 = vpop.f32.mrb[108].mxu0  ;;  %v3263_v54 = vsel %vm3181_vm5, %v7850_v10, -inf  ;;  %v2667_v23 = vadd.f32 %v6629_v42, %v2602_v34  ;;  %v2585_v7 = vadd.f32 %v2467_v0, %v6498_v29  ;;  %v7940_v25 = vmax.f32 %v6658_v47, 0.0 }
 0x1d1   :  { %v6792_v9 = vpop.f32.mrb[109].mxu1  ;;  %v6794_v51 = vpop.f32.mrb[109].mxu0  ;;  %v6837_v57 = vmax.f32 %v3263_v54, %v3264_v6  ;;  %v6853_v6 = vadd.f32 %v6629_v42, %v2599_v18  ;;  %v2468_v34 = vsel %vm2459_vm4, %v2466_v1, %v2467_v0  ;;  %v2497_v54 = vrot.slane %v6758_v13, 4 }
 0x1d2   :  { %v2715_v4 = vmax.f32 %v2667_v23, 0.0  ;;  %v2650_v16 = vadd.f32 %v6835_v56, %v2585_v7  ;;  %v2748_v18 = vsel %vm1363_vm2, %v7940_v25, -inf  ;;  %v2582_v23 = vadd.f32 %v2468_v34, %v6502_v12 }
 0x1d3   :  { %v7854_v29 = vmax.f32 %v6853_v6, 0.0  ;;  %v2498_v7 = vsel %vm2459_vm4, %v2496_v61, %v2497_v54  ;;  %v2607_v0 = vadd.f32 %v2497_v54, %v6633_v28  ;;  %v2749_v25 = vrot.slane %v2748_v18, 4 }
 0x1d4   :  { %v6814_v52 = vpop.f32.mrb[110].mxu0  ;;  %v6816_v14 = vpop.f32.mrb[110].mxu1  ;;  %v3273_v50 = vsel %vm2459_vm4, %v2715_v4, -inf  ;;  %v2698_v38 = vmax.f32 %v2650_v16, 0.0  ;;  %v6880_v47 = vadd.f32 %v6835_v56, %v2582_v23  ;;  %v2604_v12 = vadd.f32 %v2498_v7, %v6638_v41 }
 0x1d5   :  { %v6819_v59 = vpop.f32.mrb[111].mxu0  ;;  %v6821_v8 = vpop.f32.mrb[111].mxu1  ;;  %v3272_v4 = vsel %vm3181_vm5, %v7854_v29, -inf  ;;  %v2672_v61 = vadd.f32 %v6625_v22, %v2607_v0  ;;  %v2476_v28 = vrot.slane %v6760_v58, 4  ;;  %v3212_v5 = vrot.slane %v6712_v40, 4 }
 0x1d6   :  { %v6877_v36 = vmax.f32 %v3272_v4, %v3273_v50  ;;  %v7856_v50 = vmax.f32 %v6880_v47, 0.0  ;;  %v2499_v16 = vrot.slane %v6751_v45, 4  ;;  %v2500_v23 = vrot.slane %v6766_v30, 4 }
 0x1d7   :  { %v6898_v41 = vadd.f32 %v6625_v22, %v2604_v12  ;;  %v2720_v58 = vmax.f32 %v2672_v61, 0.0  ;;  %v2591_v7 = vadd.f32 %v2476_v28, %v6509_v3  ;;  %v3201_v0 = vsel %vm2459_vm4, %v2698_v38, -inf }
 0x1d8   :  { %v6841_v43 = vpop.f32.mrb[112].mxu1  ;;  %v6843_v26 = vpop.f32.mrb[112].mxu0  ;;  %7941 = vst [vmem:[#allocation30_spill] sm:$0xff] %v6877_v36  ;;  %v3200_v36 = vsel %vm3181_vm5, %v7856_v50, -inf  ;;  %v2501_v45 = vsel %vm2459_vm4, %v2499_v16, %v2500_v23  ;;  %v2475_v30 = vrot.slane %v6768_v2, 4  ;;  %v3213_v38 = vmax.f32 %v6712_v40, %v3212_v5 }
 0x1d9   :  { %v6848_v10 = vpop.f32.mrb[113].mxu1  ;;  %v6850_v46 = vpop.f32.mrb[113].mxu0  ;;  %7946 = vst [vmem:[#allocation35_spill] sm:$0xff] %v6898_v41  ;;  %v3291_v12 = vsel %vm2459_vm4, %v2720_v58, -inf  ;;  %v2608_v50 = vadd.f32 %v2500_v23, %v6643_v63 }
 0x1da   :  { %v3214_v5 = vrot.slane %v3213_v38, 2 }
 0x1db   :  { %v2673_v40 = vadd.f32 %v6629_v42, %v2608_v50 }
 0x1dc   :  { %v6860_v48 = vpop.f32.mrb[114].mxu0  ;;  %v6862_v44 = vpop.f32.mrb[114].mxu1 }
 0x1dd   :  { %v6870_v1 = vpop.f32.mrb[115].mxu0  ;;  %v6872_v13 = vpop.f32.mrb[115].mxu1 }
 0x1e0   :  { %v6885_v34 = vpop.f32.mrb[116].mxu1  ;;  %v6887_v54 = vpop.f32.mrb[116].mxu0 }
 0x1e1   :  { %7942 = vst [vmem:[#allocation31_spill] sm:$0xff] %v6885_v34  ;;  %7943 = vst [vmem:[#allocation32_spill] sm:$0xff] %v6887_v54  ;;  %v6893_v4 = vpop.f32.mrb[117].mxu1  ;;  %v6895_v29 = vpop.f32.mrb[117].mxu0  ;;  %v6907_v54 = vmax.f32 %v3200_v36, %v3201_v0  ;;  %v2605_v34 = vadd.f32 %v2501_v45, %v6647_v27  ;;  %v2477_v27 = vsel %vm2459_vm4, %v2475_v30, %v2476_v28  ;;  %v2721_v0 = vmax.f32 %v2673_v40, 0.0 }
 0x1e2   :  { %7944 = vst [vmem:[#allocation33_spill] sm:$0xff] %v6893_v4  ;;  %7945 = vst [vmem:[#allocation34_spill] sm:$0xff] %v6895_v29  ;;  %v7858_v29 = vmax.f32 %v6898_v41, 0.0  ;;  %v2750_v4 = vmax.f32 %v2748_v18, %v2749_v25  ;;  %v2656_v25 = vadd.f32 %v6835_v56, %v2591_v7  ;;  %v2588_v45 = vadd.f32 %v2477_v27, %v6523_v60 }
 0x1e3   :  { %v6928_v18 = vadd.f32 %v6629_v42, %v2605_v34  ;;  %v3215_v30 = vmax.f32 %v3213_v38, %v3214_v5  ;;  %v2485_v40 = vrot.slane %v6786_v39, 4 }
 0x1e4   :  { %v6911_v61 = vpop.f32.mrb[118].mxu0  ;;  %v6913_v3 = vpop.f32.mrb[118].mxu1  ;;  %v3290_v36 = vsel %vm3181_vm5, %v7858_v29, -inf  ;;  %v2751_v63 = vrot.slane %v2750_v4, 2  ;;  %v2704_v34 = vmax.f32 %v2656_v25, 0.0  ;;  %v6940_v7 = vadd.f32 %v6835_v56, %v2588_v45 }
 0x1e5   :  { %v6918_v16 = vpop.f32.mrb[119].mxu0  ;;  %v6920_v2 = vpop.f32.mrb[119].mxu1  ;;  %v6925_v58 = vmax.f32 %v3290_v36, %v3291_v12  ;;  %v7865_v23 = vmax.f32 %v6928_v18, 0.0  ;;  %v3300_v36 = vsel %vm2459_vm4, %v2721_v0, -inf  ;;  %v3216_v60 = vrot.slane %v3215_v30, 1 }
 0x1e6   :  { %v2752_v41 = vmax.f32 %v2750_v4, %v2751_v63  ;;  %v2701_v29 = vmax.f32 %v6940_v7, 0.0  ;;  %v2484_v4 = vrot.slane %v6792_v9, 4  ;;  %v3228_v27 = vsel %vm2459_vm4, %v2704_v34, -inf }
 0x1e7   :  { %v3299_v12 = vsel %vm3181_vm5, %v7865_v23, -inf  ;;  %v2597_v63 = vadd.f32 %v2485_v40, %v6526_v19  ;;  %v2505_v0 = vrot.slane %v6788_v15, 4  ;;  %v6957_v5 = vmax.f32 %v3215_v30, %v3216_v60 }
 0x1e8   :  { %v6942_v50 = vmax.f32 %v3299_v12, %v3300_v36  ;;  %v2753_v28 = vrot.slane %v2752_v41, 1  ;;  %v3227_v25 = vsel %vm3181_vm5, %v2701_v29, -inf  ;;  %v2486_v9 = vsel %vm2459_vm4, %v2484_v4, %v2485_v40 }
 0x1e9   :  { %v6953_v45 = vmax.f32 %v3227_v25, %v3228_v27  ;;  %v2662_v39 = vadd.f32 %v6835_v56, %v2597_v63  ;;  %v2506_v12 = vrot.slane %v6814_v52, 4  ;;  %v2594_v36 = vadd.f32 %v2486_v9, %v6530_v55 }
 0x1ea   :  { %v6955_v38 = vmax.f32 %v2752_v41, %v2753_v28  ;;  %v2508_v19 = vrot.slane %v6794_v51, 4  ;;  %v7948_v28 = vmax.f32 %v6706_v17, 0.0  ;;  %v2494_v40 = vrot.slane %v6816_v14, 4 }
 0x1eb   :  { %v2507_v15 = vsel %vm2459_vm4, %v2505_v0, %v2506_v12  ;;  %v2613_v41 = vadd.f32 %v2506_v12, %v6676_v32  ;;  %v2710_v60 = vmax.f32 %v2662_v39, 0.0  ;;  %v6975_v55 = vadd.f32 %v6835_v56, %v2594_v36 }
 0x1ec   :  { %7947 = vst [vmem:[#allocation36_spill] sm:$0xff] %v6955_v38  ;;  %v4875_v34 = vpack.i.bf16 %v6955_v38, %v6957_v5  ;;  %v2769_v30 = vsel %vm1363_vm2, %v7948_v28, -inf  ;;  %v2610_v52 = vadd.f32 %v2507_v15, %v6673_v49  ;;  %v2509_v4 = vrot.slane %v6819_v59, 4 }
 0x1ed   :  { %v2678_v51 = vadd.f32 %v6625_v22, %v2613_v41  ;;  %v7949_v32 = vmax.f32 %v6773_v62, 0.0  ;;  %v2603_v25 = vadd.f32 %v2494_v40, %v6537_v21  ;;  %v2707_v49 = vmax.f32 %v6975_v55, 0.0  ;;  %v7971_v55 = vld [vmem:[#allocation24_spill] sm:$0xff] }
 0x1ee   :  { %4876 = vrot.lane.b32.xlu0 %v4875_v34, %s5183_s2  ;;  %v6983_v27 = vadd.f32 %v6625_v22, %v2610_v52  ;;  %v2510_v63 = vsel %vm2459_vm4, %v2508_v19, %v2509_v4  ;;  %v2614_v0 = vadd.f32 %v2509_v4, %v6686_v37  ;;  %v2770_v39 = vrot.slane %v2769_v30, 4 }
 0x1ef   :  { %v2790_v17 = vsel %vm1363_vm2, %v7949_v32, -inf  ;;  %v2726_v14 = vmax.f32 %v2678_v51, 0.0  ;;  %v2611_v59 = vadd.f32 %v2510_v63, %v6691_v33  ;;  %v2493_v62 = vrot.slane %v6821_v8, 4 }
 0x1f0   :  { %v7860_v9 = vmax.f32 %v6983_v27, 0.0  ;;  %v3255_v12 = vsel %vm2459_vm4, %v2710_v60, -inf  ;;  %v3254_v21 = vsel %vm3181_vm5, %v2707_v49, -inf  ;;  %v2679_v36 = vadd.f32 %v6629_v42, %v2614_v0 }
 0x1f1   :  { %v3318_v34 = vsel %vm2459_vm4, %v2726_v14, -inf  ;;  %v2791_v19 = vrot.slane %v2790_v17, 4  ;;  %v6998_v15 = vmax.f32 %v3254_v21, %v3255_v12  ;;  %v7006_v8 = vadd.f32 %v6629_v42, %v2611_v59  ;;  %v7950_v14 = vld [vmem:[#allocation7_spill] sm:$0xff] }
 0x1f2   :  { %v3317_v37 = vsel %vm3181_vm5, %v7860_v9, -inf  ;;  %v2727_v41 = vmax.f32 %v2679_v36, 0.0  ;;  %v2495_v28 = vsel %vm2459_vm4, %v2493_v62, %v2494_v40  ;;  %v2771_v52 = vmax.f32 %v2769_v30, %v2770_v39  ;;  %v7951_v36 = vld [vmem:[#allocation9_spill] sm:$0xff] }
 0x1f3   :  { %v7003_v33 = vmax.f32 %v3317_v37, %v3318_v34  ;;  %v2668_v60 = vadd.f32 %v6835_v56, %v2603_v25  ;;  %v7864_v51 = vmax.f32 %v7006_v8, 0.0  ;;  %v2792_v4 = vmax.f32 %v2790_v17, %v2791_v19 }
 0x1f4   :  { %v3327_v32 = vsel %vm2459_vm4, %v2727_v41, -inf  ;;  %v2600_v63 = vadd.f32 %v2495_v28, %v7950_v14  ;;  %v2772_v30 = vrot.slane %v2771_v52, 2  ;;  %v2503_v25 = vrot.slane %v6841_v43, 4 }
 0x1f5   :  { %v3326_v0 = vsel %vm3181_vm5, %v7864_v51, -inf  ;;  %v2716_v59 = vmax.f32 %v2668_v60, 0.0  ;;  %v2793_v40 = vrot.slane %v2792_v4, 2  ;;  %v2502_v62 = vrot.slane %v6848_v10, 4 }
 0x1f6   :  { %v7016_v12 = vmax.f32 %v3326_v0, %v3327_v32  ;;  %v7019_v21 = vadd.f32 %v6835_v56, %v2600_v63  ;;  %v2773_v39 = vmax.f32 %v2771_v52, %v2772_v30  ;;  %v2609_v19 = vadd.f32 %v2503_v25, %v7951_v36  ;;  %v7952_v52 = vld [vmem:[#allocation19_spill] sm:$0xff]  ;;  %v7953_v0 = vld [vmem:[#allocation10_spill] sm:$0xff] }
 0x1f7   :  { %v2794_v34 = vmax.f32 %v2792_v4, %v2793_v40  ;;  %v3282_v37 = vsel %vm2459_vm4, %v2716_v59, -inf  ;;  %v2504_v60 = vsel %vm2459_vm4, %v2502_v62, %v2503_v25  ;;  %v2514_v14 = vrot.slane %v6843_v26, 4 }
 0x1f8   :  { %v7862_v17 = vmax.f32 %v7019_v21, 0.0  ;;  %v2774_v28 = vrot.slane %v2773_v39, 1  ;;  %v3185_v63 = vrot.slane %v7952_v52, 4  ;;  %v3239_v10 = vrot.slane %v6770_v20, 4 }
 0x1f9   :  { %v2795_v43 = vrot.slane %v2794_v34, 1  ;;  %v2674_v4 = vadd.f32 %v6835_v56, %v2609_v19  ;;  %v2606_v59 = vadd.f32 %v2504_v60, %v7953_v0  ;;  %v2517_v36 = vrot.slane %v6850_v46, 4 }
 0x1fa   :  { %v3281_v41 = vsel %vm3181_vm5, %v7862_v17, -inf  ;;  %v7037_v30 = vmax.f32 %v2773_v39, %v2774_v28  ;;  %v2515_v25 = vrot.slane %v6860_v48, 4  ;;  %v2512_v26 = vrot.slane %v6862_v44, 4  ;;  %v7956_v44 = vld [vmem:[#allocation11_spill] sm:$0xff] }
 0x1fb   :  { %v7030_v32 = vmax.f32 %v3281_v41, %v3282_v37  ;;  %v7039_v40 = vmax.f32 %v2794_v34, %v2795_v43  ;;  %v2722_v62 = vmax.f32 %v2674_v4, 0.0  ;;  %v7044_v37 = vadd.f32 %v6835_v56, %v2606_v59 }
 0x1fc   :  { %7954 = vst [vmem:[#allocation7_spill] sm:$0xff] %v7037_v30  ;;  %v2518_v41 = vrot.slane %v6870_v1, 4  ;;  %v3266_v19 = vrot.slane %v6837_v57, 4  ;;  %v2516_v34 = vsel %vm2459_vm4, %v2514_v14, %v2515_v25  ;;  %v2619_v48 = vadd.f32 %v2515_v25, %v6717_v35 }
 0x1fd   :  { %7955 = vst [vmem:[#allocation9_spill] sm:$0xff] %v7039_v40  ;;  %v4880_v39 = vpack.i.bf16 %v7039_v40, %v7037_v30  ;;  %v7861_v28 = vmax.f32 %v7044_v37, 0.0  ;;  %v2616_v46 = vadd.f32 %v2516_v34, %v6721_v53  ;;  %v3186_v60 = vmax.f32 %v7952_v52, %v3185_v63 }
 0x1fe   :  { %v3240_v43 = vmax.f32 %v6770_v20, %v3239_v10  ;;  %v2615_v1 = vadd.f32 %v2512_v26, %v7956_v44  ;;  %v2519_v4 = vsel %vm2459_vm4, %v2517_v36, %v2518_v41  ;;  %v3309_v0 = vsel %vm2459_vm4, %v2722_v62, -inf }
 0x1ff   :  { %4881 = vrot.lane.b32.xlu0 %v4880_v39, %s5183_s2  ;;  %v3308_v14 = vsel %vm3181_vm5, %v7861_v28, -inf  ;;  %v7065_v53 = vadd.f32 %v6625_v22, %v2616_v46  ;;  %v2684_v35 = vadd.f32 %v6625_v22, %v2619_v48  ;;  %v3267_v52 = vmax.f32 %v6837_v57, %v3266_v19 }
 0x200   :  { %v7957_v20 = vmax.f32 %v6853_v6, 0.0  ;;  %v7072_v10 = vmax.f32 %v3308_v14, %v3309_v0  ;;  %v2617_v59 = vadd.f32 %v2519_v4, %v6747_v24  ;;  %v2620_v62 = vadd.f32 %v2518_v41, %v6736_v31 }
 0x201   :  { %v7859_v36 = vmax.f32 %v7065_v53, 0.0  ;;  %v2732_v25 = vmax.f32 %v2684_v35, 0.0  ;;  %v2511_v39 = vrot.slane %v6872_v13, 4  ;;  %v3187_v34 = vrot.slane %v3186_v60, 2  ;;  %v7958_v35 = vld [vmem:[#allocation20_spill] sm:$0xff] }
 0x202   :  { %v2811_v63 = vsel %vm1363_vm2, %v7957_v20, -inf  ;;  %v7079_v46 = vadd.f32 %v6629_v42, %v2617_v59  ;;  %v2685_v19 = vadd.f32 %v6629_v42, %v2620_v62  ;;  %v3241_v24 = vrot.slane %v3240_v43, 2  ;;  %v7959_v59 = vld [vmem:[#allocation22_spill] sm:$0xff] }
 0x203   :  { %v3344_v57 = vsel %vm3181_vm5, %v7859_v36, -inf  ;;  %v3345_v6 = vsel %vm2459_vm4, %v2732_v25, -inf  ;;  %v3268_v48 = vrot.slane %v3267_v52, 2  ;;  %v2812_v44 = vrot.slane %v2811_v63, 4 }
 0x204   :  { %v7086_v4 = vmax.f32 %v3344_v57, %v3345_v6  ;;  %v2680_v31 = vadd.f32 %v6835_v56, %v2615_v1  ;;  %v7863_v13 = vmax.f32 %v7079_v46, 0.0  ;;  %v2733_v41 = vmax.f32 %v2685_v19, 0.0  ;;  %v7960_v57 = vld [vmem:[#allocation12_spill] sm:$0xff] }
 0x205   :  { %v2513_v0 = vsel %vm2459_vm4, %v2511_v39, %v2512_v26  ;;  %v3188_v14 = vmax.f32 %v3186_v60, %v3187_v34  ;;  %v3194_v20 = vrot.slane %v7958_v35, 4  ;;  %v3221_v36 = vrot.slane %v7959_v59, 4 }
 0x206   :  { %v3353_v25 = vsel %vm3181_vm5, %v7863_v13, -inf  ;;  %v3354_v62 = vsel %vm2459_vm4, %v2733_v41, -inf  ;;  %v2612_v6 = vadd.f32 %v2513_v0, %v7960_v57  ;;  %v3269_v9 = vmax.f32 %v3267_v52, %v3268_v48  ;;  %v7962_v57 = vld [vmem:[#allocation31_spill] sm:$0xff] }
 0x207   :  { %v7961_v1 = vmax.f32 %v6880_v47, 0.0  ;;  %v3203_v26 = vrot.slane %v6907_v54, 4  ;;  %v7102_v60 = vmax.f32 %v3353_v25, %v3354_v62  ;;  %v2728_v39 = vmax.f32 %v2680_v31, 0.0 }
 0x208   :  { %v7105_v34 = vadd.f32 %v6835_v56, %v2612_v6  ;;  %v2813_v28 = vmax.f32 %v2811_v63, %v2812_v44  ;;  %v3242_v17 = vmax.f32 %v3240_v43, %v3241_v24  ;;  %v7108_v13 = vmax.f32 %v7958_v35, %v3194_v20  ;;  %v7963_v43 = vld [vmem:[#allocation33_spill] sm:$0xff] }
 0x209   :  { %v2755_v19 = vsel %vm1363_vm2, %v7961_v1, -inf  ;;  %v7111_v41 = vmax.f32 %v7959_v59, %v3221_v36  ;;  %v3189_v52 = vrot.slane %v3188_v14, 1  ;;  %v3248_v47 = vrot.slane %v6800_v11, 4 }
 0x20a   :  { %v2756_v48 = vrot.slane %v2755_v19, 4  ;;  %v7867_v0 = vmax.f32 %v7105_v34, 0.0  ;;  %v2814_v25 = vrot.slane %v2813_v28, 2  ;;  %v7116_v31 = vmax.f32 %v6907_v54, %v3203_v26 }
 0x20b   :  { %v3270_v62 = vrot.slane %v3269_v9, 1  ;;  %v2521_v63 = vrot.slane %v7962_v57, 4  ;;  %v2520_v24 = vrot.slane %v7963_v43, 4  ;;  %v3336_v44 = vsel %vm2459_vm4, %v2728_v39, -inf  ;;  %v7964_v43 = vld [vmem:[#allocation13_spill] sm:$0xff] }
 0x20c   :  { %v3335_v36 = vsel %vm3181_vm5, %v7867_v0, -inf  ;;  %v2815_v35 = vmax.f32 %v2813_v28, %v2814_v25  ;;  %v3243_v20 = vrot.slane %v3242_v17, 1  ;;  %v3293_v59 = vrot.slane %v6925_v58, 4 }
 0x20d   :  { %v7125_v6 = vmax.f32 %v3335_v36, %v3336_v44  ;;  %v7127_v1 = vmax.f32 %v3188_v14, %v3189_v52  ;;  %v7129_v54 = vmax.f32 %v3269_v9, %v3270_v62  ;;  %v7132_v26 = vmax.f32 %v6800_v11, %v3248_v47  ;;  %v7965_v44 = vld [vmem:[#allocation14_spill] sm:$0xff]  ;;  %v7967_v47 = vld [vmem:[#allocation32_spill] sm:$0xff] }
 0x20e   :  { %v2816_v57 = vrot.slane %v2815_v35, 1  ;;  %v2621_v39 = vadd.f32 %v2521_v63, %v7964_v43  ;;  %v2522_v51 = vsel %vm2459_vm4, %v2520_v24, %v2521_v63  ;;  %v7136_v23 = vmax.f32 %v2755_v19, %v2756_v48  ;;  %v7969_v43 = vld [vmem:[#allocation25_spill] sm:$0xff] }
 0x20f   :  { %v3205_v28 = vrot.slane %v7116_v31, 2  ;;  %v4895_v25 = vpack.i.bf16 %v7129_v54, %v7127_v1  ;;  %v2618_v14 = vadd.f32 %v2522_v51, %v7965_v44  ;;  %v7144_v9 = vmax.f32 %v3242_v17, %v3243_v20  ;;  %v7968_v51 = vld [vmem:[#allocation34_spill] sm:$0xff]  ;;  %v7970_v44 = vld [vmem:[#allocation16_spill] sm:$0xff] }
 0x210   :  { %v7142_v52 = vmax.f32 %v2815_v35, %v2816_v57  ;;  %v2686_v11 = vadd.f32 %v6835_v56, %v2621_v39  ;;  %v2523_v62 = vrot.slane %v7967_v47, 4  ;;  %v3294_v36 = vmax.f32 %v6925_v58, %v3293_v59 }
 0x211   :  { %v2776_v19 = vsel %vm1363_vm2, %v2701_v29, -inf  ;;  %4896 = vrot.lane.b32.xlu0 %v4895_v25, %s5184_s28  ;;  %v7154_v48 = vadd.f32 %v6835_v56, %v2618_v14  ;;  %v2526_v63 = vrot.slane %v7968_v51, 4  ;;  %v2524_v35 = vrot.slane %v6911_v61, 4 }
 0x212   :  { %7966 = vst [vmem:[#allocation19_spill] sm:$0xff] %v7142_v52  ;;  %v4885_v17 = vpack.i.bf16 %v7144_v9, %v7142_v52  ;;  %v2734_v24 = vmax.f32 %v2686_v11, 0.0  ;;  %v2530_v58 = vrot.slane %v6913_v3, 4  ;;  %v2797_v29 = vsel %vm1363_vm2, %v2707_v49, -inf }
 0x213   :  { %v7866_v7 = vmax.f32 %v7154_v48, 0.0  ;;  %v2527_v20 = vrot.slane %v6918_v16, 4  ;;  %v2777_v59 = vrot.slane %v2776_v19, 4  ;;  %v2525_v57 = vsel %vm2459_vm4, %v2523_v62, %v2524_v35 }
 0x214   :  { %4886 = vrot.lane.b32.xlu1 %v4885_v17, %s5183_s2  ;;  %v2625_v39 = vadd.f32 %v2524_v35, %v7969_v43  ;;  %v2627_v14 = vadd.f32 %v2530_v58, %v7970_v44  ;;  %v3363_v61 = vsel %vm2459_vm4, %v2734_v24, -inf  ;;  %v2622_v49 = vadd.f32 %v2525_v57, %v7971_v55  ;;  %v7972_v17 = vld [vmem:[#allocation29_spill] sm:$0xff]  ;;  %v7973_v35 = vld [vmem:[#allocation28_spill] sm:$0xff] }
 0x215   :  { %v3362_v3 = vsel %vm3181_vm5, %v7866_v7, -inf  ;;  %4901 = vrot.lane.b32.xlu0 %v4895_v25, %s5181_s12  ;;  %v2528_v16 = vsel %vm2459_vm4, %v2526_v63, %v2527_v20  ;;  %v2798_v11 = vrot.slane %v2797_v29, 4  ;;  %v2626_v43 = vadd.f32 %v2527_v20, %v7973_v35 }
 0x216   :  { %v7177_v47 = vmax.f32 %v3362_v3, %v3363_v61  ;;  %v2690_v62 = vadd.f32 %v6625_v22, %v2625_v39  ;;  %v7181_v51 = vadd.f32 %v6625_v22, %v2622_v49  ;;  %v2623_v24 = vadd.f32 %v2528_v16, %v7972_v17  ;;  %v7975_v49 = vld [vmem:[#allocation6_spill] sm:$0xff] }
 0x217   :  { %v2529_v44 = vrot.slane %v6920_v2, 4  ;;  %v3295_v7 = vrot.slane %v3294_v36, 2  ;;  %v7974_v0 = vmax.f32 %v6928_v18, 0.0  ;;  %v2778_v63 = vmax.f32 %v2776_v19, %v2777_v59 }
 0x218   :  { %4891 = vrot.lane.b32.xlu1 %v4895_v25, %s5183_s2  ;;  %v2738_v61 = vmax.f32 %v2690_v62, 0.0  ;;  %v7868_v39 = vmax.f32 %v7181_v51, 0.0  ;;  %v7192_v22 = vadd.f32 %v6629_v42, %v2623_v24  ;;  %v2691_v3 = vadd.f32 %v6629_v42, %v2626_v43 }
 0x219   :  { %v2832_v57 = vsel %vm1363_vm2, %v7974_v0, -inf  ;;  %v2531_v20 = vsel %vm2459_vm4, %v2529_v44, %v2530_v58  ;;  %v2799_v55 = vmax.f32 %v2797_v29, %v2798_v11  ;;  %v2692_v18 = vadd.f32 %v6835_v56, %v2627_v14 }
 0x21a   :  { %v3372_v2 = vsel %vm2459_vm4, %v2738_v61, -inf  ;;  %v2624_v0 = vadd.f32 %v2531_v20, %v7975_v49  ;;  %v2833_v19 = vrot.slane %v2832_v57, 4  ;;  %v3371_v25 = vsel %vm3181_vm5, %v7868_v39, -inf }
 0x21b   :  { %v7869_v59 = vmax.f32 %v7192_v22, 0.0  ;;  %v2739_v16 = vmax.f32 %v2691_v3, 0.0  ;;  %v3296_v62 = vmax.f32 %v3294_v36, %v3295_v7  ;;  %v7976_v42 = vmax.f32 %v7006_v8, 0.0 }
 0x21c   :  { %v7206_v29 = vmax.f32 %v3371_v25, %v3372_v2  ;;  %v7209_v11 = vadd.f32 %v6835_v56, %v2624_v0  ;;  %v7977_v14 = vmax.f32 %v7019_v21, 0.0  ;;  %v2758_v36 = vrot.slane %v7136_v23, 2 }
 0x21d   :  { %v2853_v58 = vsel %vm1363_vm2, %v7976_v42, -inf  ;;  %v3380_v24 = vsel %vm3181_vm5, %v7869_v59, -inf  ;;  %v3381_v35 = vsel %vm2459_vm4, %v2739_v16, -inf  ;;  %v2779_v8 = vrot.slane %v2778_v63, 2 }
 0x21e   :  { %v2818_v17 = vsel %vm1363_vm2, %v7977_v14, -inf  ;;  %v2800_v7 = vrot.slane %v2799_v55, 2  ;;  %v2740_v43 = vmax.f32 %v2692_v18, 0.0  ;;  %v7219_v44 = vmax.f32 %v3380_v24, %v3381_v35 }
 0x21f   :  { %v2854_v61 = vrot.slane %v2853_v58, 4  ;;  %v7870_v56 = vmax.f32 %v7209_v11, 0.0  ;;  %v2759_v21 = vmax.f32 %v7136_v23, %v2758_v36  ;;  %v3206_v3 = vmax.f32 %v7116_v31, %v3205_v28 }
 0x220   :  { %v3196_v20 = vrot.slane %v7108_v13, 2  ;;  %v2834_v2 = vmax.f32 %v2832_v57, %v2833_v19  ;;  %v3320_v49 = vrot.slane %v7003_v33, 4  ;;  %v2819_v0 = vrot.slane %v2818_v17, 4 }
 0x221   :  { %v3223_v25 = vrot.slane %v7111_v41, 2  ;;  %v3389_v18 = vsel %vm3181_vm5, %v7870_v56, -inf  ;;  %v2760_v16 = vrot.slane %v2759_v21, 1  ;;  %v3297_v42 = vrot.slane %v3296_v62, 1 }
 0x222   :  { %v3250_v23 = vrot.slane %v7132_v26, 2  ;;  %v2780_v14 = vmax.f32 %v2778_v63, %v2779_v8  ;;  %v2801_v24 = vmax.f32 %v2799_v55, %v2800_v7  ;;  %v3390_v31 = vsel %vm2459_vm4, %v2740_v43, -inf }
 0x223   :  { %v2855_v28 = vmax.f32 %v2853_v58, %v2854_v61  ;;  %v7234_v35 = vmax.f32 %v3389_v18, %v3390_v31  ;;  %v7236_v57 = vmax.f32 %v2759_v21, %v2760_v16  ;;  %v3207_v19 = vrot.slane %v3206_v3, 1 }
 0x224   :  { %v3302_v36 = vrot.slane %v6942_v50, 4  ;;  %v3321_v39 = vmax.f32 %v7003_v33, %v3320_v49  ;;  %v2820_v59 = vmax.f32 %v2818_v17, %v2819_v0  ;;  %v2835_v56 = vrot.slane %v2834_v2, 2 }
 0x225   :  { %v7978_v52 = vmax.f32 %v7044_v37, 0.0  ;;  %v4910_v63 = vpack.i.bf16 %v7236_v57, %v6957_v5  ;;  %v7245_v55 = vmax.f32 %v3296_v62, %v3297_v42  ;;  %v3284_v58 = vrot.slane %v7030_v32, 4 }
 0x226   :  { %v2836_v8 = vmax.f32 %v2834_v2, %v2835_v56  ;;  %v3224_v7 = vmax.f32 %v7111_v41, %v3223_v25  ;;  %v2802_v43 = vrot.slane %v2801_v24, 1  ;;  %v7251_v33 = vmax.f32 %v3206_v3, %v3207_v19 }
 0x227   :  { %v2839_v30 = vsel %vm1363_vm2, %v7978_v52, -inf  ;;  %4911 = vrot.lane.b32.xlu1 %v4910_v63, %s5181_s12  ;;  %4906 = vrot.lane.b32.xlu0 %v4910_v63, %s5184_s28  ;;  %v2781_v37 = vrot.slane %v2780_v14, 1  ;;  %v3197_v52 = vmax.f32 %v7108_v13, %v3196_v20  ;;  %v2856_v17 = vrot.slane %v2855_v28, 2 }
 0x228   :  { %v2821_v61 = vrot.slane %v2820_v59, 2  ;;  %v2840_v21 = vrot.slane %v2839_v30, 4  ;;  %v2837_v62 = vrot.slane %v2836_v8, 1  ;;  %v3225_v49 = vrot.slane %v3224_v7, 1 }
 0x229   :  { %v3303_v0 = vmax.f32 %v6942_v50, %v3302_v36  ;;  %v4925_v41 = vpack.i.bf16 %v7251_v33, %v7245_v55  ;;  %v7257_v56 = vmax.f32 %v2801_v24, %v2802_v43  ;;  %v2857_v2 = vmax.f32 %v2855_v28, %v2856_v17 }
 0x22a   :  { %v3230_v25 = vrot.slane %v6953_v45, 4  ;;  %v7260_v3 = vmax.f32 %v2836_v8, %v2837_v62  ;;  %v7262_v18 = vmax.f32 %v3224_v7, %v3225_v49  ;;  %v3198_v13 = vrot.slane %v3197_v52, 1 }
 0x22b   :  { %v3322_v20 = vrot.slane %v3321_v39, 2  ;;  %v3285_v16 = vmax.f32 %v7030_v32, %v3284_v58  ;;  %4926 = vrot.lane.b32.xlu1 %v4925_v41, %s5184_s28  ;;  %v7266_v42 = vmax.f32 %v2780_v14, %v2781_v37  ;;  %v3251_v50 = vmax.f32 %v7132_v26, %v3250_v23 }
 0x22c   :  { %v2822_v31 = vmax.f32 %v2820_v59, %v2821_v61  ;;  %v2841_v24 = vmax.f32 %v2839_v30, %v2840_v21  ;;  %v4915_v28 = vpack.i.bf16 %v7260_v3, %v7262_v18  ;;  %v3311_v19 = vrot.slane %v7072_v10, 4 }
 0x22d   :  { %v4935_v36 = vpack.i.bf16 %v7257_v56, %v7266_v42  ;;  %v2858_v63 = vrot.slane %v2857_v2, 1  ;;  %v3304_v8 = vrot.slane %v3303_v0, 2  ;;  %v7979_v32 = vmax.f32 %v7079_v46, 0.0 }
 0x22e   :  { %4916 = vrot.lane.b32.xlu0 %v4915_v28, %s5183_s2  ;;  %v7278_v14 = vmax.f32 %v3197_v52, %v3198_v13  ;;  %v3231_v30 = vmax.f32 %v6953_v45, %v3230_v25  ;;  %v3323_v26 = vmax.f32 %v3321_v39, %v3322_v20  ;;  %v3286_v59 = vrot.slane %v3285_v16, 2  ;;  %v7981_v45 = vld [vmem:[#allocation30_spill] sm:$0xff] }
 0x22f   :  { %v2874_v58 = vsel %vm1363_vm2, %v7979_v32, -inf  ;;  %4936 = vrot.lane.b32.xlu1 %v4935_v36, %s5184_s28  ;;  %v3252_v23 = vrot.slane %v3251_v50, 1  ;;  %v2842_v7 = vrot.slane %v2841_v24, 2  ;;  %v7980_v43 = vmax.f32 %v7105_v34, 0.0 }
 0x230   :  { %v4920_v46 = vpack.i.bf16 %v7278_v14, %v7245_v55  ;;  %v2823_v17 = vrot.slane %v2822_v31, 1  ;;  %v3312_v61 = vmax.f32 %v7072_v10, %v3311_v19  ;;  %v2875_v52 = vrot.slane %v2874_v58, 4 }
 0x231   :  { %v2860_v37 = vsel %vm1363_vm2, %v7980_v43, -inf  ;;  %v7288_v21 = vmax.f32 %v2857_v2, %v2858_v63  ;;  %v3275_v39 = vrot.slane %v7981_v45, 4  ;;  %v3232_v62 = vrot.slane %v3231_v30, 2 }
 0x232   :  { %4921 = vrot.lane.b32.xlu0 %v4920_v46, %s5183_s2  ;;  %v2861_v49 = vrot.slane %v2860_v37, 4  ;;  %v7293_v34 = vmax.f32 %v3251_v50, %v3252_v23  ;;  %v3305_v25 = vmax.f32 %v3303_v0, %v3304_v8  ;;  %v2843_v13 = vmax.f32 %v2841_v24, %v2842_v7 }
 0x233   :  { %4941 = vrot.lane.b32.xlu1 %v4935_v36, %s5181_s12  ;;  %v7295_v20 = vmax.f32 %v2822_v31, %v2823_v17  ;;  %v3287_v28 = vmax.f32 %v3285_v16, %v3286_v59  ;;  %v3313_v32 = vrot.slane %v3312_v61, 2  ;;  %v2876_v10 = vmax.f32 %v2874_v58, %v2875_v52 }
 0x234   :  { %v4945_v2 = vpack.i.bf16 %v7288_v21, %v7293_v34  ;;  %v3324_v19 = vrot.slane %v3323_v26, 1  ;;  %v3276_v63 = vmax.f32 %v7981_v45, %v3275_v39  ;;  %v3257_v43 = vrot.slane %v6998_v15, 4 }
 0x235   :  { %v3356_v50 = vrot.slane %v7102_v60, 4  ;;  %v2862_v36 = vmax.f32 %v2860_v37, %v2861_v49  ;;  %v3306_v0 = vrot.slane %v3305_v25, 1  ;;  %v3233_v31 = vmax.f32 %v3231_v30, %v3232_v62 }
 0x236   :  { %4931 = vrot.lane.b32.xlu0 %v4925_v41, %s5181_s12  ;;  %v7982_v16 = vmax.f32 %v7154_v48, 0.0  ;;  %v4950_v8 = vpack.i.bf16 %v7144_v9, %v7295_v20  ;;  %v4960_v58 = vpack.i.bf16 %v7295_v20, %v7236_v57  ;;  %v3288_v59 = vrot.slane %v3287_v28, 1 }
 0x237   :  { %4946 = vrot.lane.b32.xlu1 %v4945_v2, %s5183_s2  ;;  %v7311_v23 = vmax.f32 %v3323_v26, %v3324_v19  ;;  %v2844_v41 = vrot.slane %v2843_v13, 1  ;;  %v3314_v7 = vmax.f32 %v3312_v61, %v3313_v32  ;;  %v2877_v37 = vrot.slane %v2876_v10, 2 }
 0x238   :  { %v2881_v24 = vsel %vm1363_vm2, %v7982_v16, -inf  ;;  %v3277_v46 = vrot.slane %v3276_v63, 2  ;;  %v3258_v17 = vmax.f32 %v6998_v15, %v3257_v43  ;;  %v3357_v48 = vmax.f32 %v7102_v60, %v3356_v50 }
 0x239   :  { %v2882_v30 = vrot.slane %v2881_v24, 4  ;;  %v7317_v52 = vmax.f32 %v3305_v25, %v3306_v0  ;;  %v3234_v45 = vrot.slane %v3233_v31, 1  ;;  %v2863_v39 = vrot.slane %v2862_v36, 2 }
 0x23a   :  { %4951 = vrot.lane.b32.xlu0 %v4950_v8, %s5184_s28  ;;  %v7983_v26 = vmax.f32 %v7209_v11, 0.0  ;;  %v7322_v61 = vmax.f32 %v3287_v28, %v3288_v59  ;;  %v7326_v49 = vmax.f32 %v2843_v13, %v2844_v41  ;;  %v3315_v32 = vrot.slane %v3314_v7, 1 }
 0x23b   :  { %4961 = vrot.lane.b32.xlu1 %v4960_v58, %s5183_s2  ;;  %v4965_v15 = vpack.i.bf16 %v7317_v52, %v7311_v23  ;;  %v2878_v60 = vmax.f32 %v2876_v10, %v2877_v37  ;;  %v3259_v2 = vrot.slane %v3258_v17, 2  ;;  %v2883_v25 = vmax.f32 %v2881_v24, %v2882_v30 }
 0x23c   :  { %v2902_v62 = vsel %vm1363_vm2, %v7983_v26, -inf  ;;  %v7330_v19 = vmax.f32 %v3233_v31, %v3234_v45  ;;  %v3278_v11 = vmax.f32 %v3276_v63, %v3277_v46  ;;  %v3358_v43 = vrot.slane %v3357_v48, 2 }
 0x23d   :  { %v2864_v50 = vmax.f32 %v2862_v36, %v2863_v39  ;;  %v2903_v28 = vrot.slane %v2902_v62, 4  ;;  %v4970_v0 = vpack.i.bf16 %v7322_v61, %v7251_v33  ;;  %v7984_v13 = vmax.f32 %v7192_v22, 0.0 }
 0x23e   :  { %4956 = vrot.lane.b32.xlu0 %v4950_v8, %s5181_s12  ;;  %v4985_v10 = vpack.i.bf16 %v7326_v49, %v7330_v19  ;;  %v7339_v8 = vmax.f32 %v3314_v7, %v3315_v32  ;;  %v2879_v24 = vrot.slane %v2878_v60, 1  ;;  %v3347_v31 = vrot.slane %v7086_v4, 4 }
 0x23f   :  { %4966 = vrot.lane.b32.xlu1 %v4965_v15, %s5183_s2  ;;  %v2895_v16 = vsel %vm1363_vm2, %v7984_v13, -inf  ;;  %v2884_v63 = vrot.slane %v2883_v25, 2  ;;  %v3279_v36 = vrot.slane %v3278_v11, 1  ;;  %v3260_v58 = vmax.f32 %v3258_v17, %v3259_v2 }
 0x240   :  { %v3374_v59 = vrot.slane %v7206_v29, 4  ;;  %v2896_v22 = vrot.slane %v2895_v16, 4  ;;  %v2904_v41 = vmax.f32 %v2902_v62, %v2903_v28  ;;  %v4990_v37 = vpack.i.bf16 %v7339_v8, %v7311_v23 }
 0x241   :  { %v7347_v46 = vmax.f32 %v2878_v60, %v2879_v24  ;;  %v2865_v7 = vrot.slane %v2864_v50, 1  ;;  %v3359_v30 = vmax.f32 %v3357_v48, %v3358_v43  ;;  %v3329_v45 = vrot.slane %v7016_v12, 4 }
 0x242   :  { %4971 = vrot.lane.b32.xlu0 %v4970_v0, %s5183_s2  ;;  %v3348_v39 = vmax.f32 %v7086_v4, %v3347_v31  ;;  %v7353_v17 = vmax.f32 %v3278_v11, %v3279_v36  ;;  %v3261_v26 = vrot.slane %v3260_v58, 1  ;;  %v2885_v15 = vmax.f32 %v2883_v25, %v2884_v63 }
 0x243   :  { %4986 = vrot.lane.b32.xlu1 %v4985_v10, %s5183_s2  ;;  %v3375_v62 = vmax.f32 %v7206_v29, %v3374_v59  ;;  %v2905_v32 = vrot.slane %v2904_v41, 2  ;;  %v2897_v2 = vmax.f32 %v2895_v16, %v2896_v22  ;;  %v7358_v48 = vmax.f32 %v2864_v50, %v2865_v7 }
 0x244   :  { %v5000_v60 = vpack.i.bf16 %v7347_v46, %v7353_v17  ;;  %v3360_v43 = vrot.slane %v3359_v30, 1  ;;  %v3330_v4 = vmax.f32 %v7016_v12, %v3329_v45  ;;  %v3349_v28 = vrot.slane %v3348_v39, 2 }
 0x245   :  { %v3338_v0 = vrot.slane %v7125_v6, 4  ;;  %v7364_v25 = vmax.f32 %v3260_v58, %v3261_v26  ;;  %v3376_v29 = vrot.slane %v3375_v62, 2  ;;  %v3383_v11 = vrot.slane %v7219_v44, 4  ;;  %v7985_v26 = vld [vmem:[#allocation23_spill] sm:$0xff] }
 0x246   :  { %4976 = vrot.lane.b32.xlu0 %v4985_v10, %s5184_s28  ;;  %v2906_v13 = vmax.f32 %v2904_v41, %v2905_v32  ;;  %v7369_v16 = vmax.f32 %v3359_v30, %v3360_v43  ;;  %v2886_v24 = vrot.slane %v2885_v15, 1  ;;  %v2898_v12 = vrot.slane %v2897_v2, 2 }
 0x247   :  { %4991 = vrot.lane.b32.xlu1 %v4990_v37, %s5184_s28  ;;  %v5015_v50 = vpack.i.bf16 %v7358_v48, %v7364_v25  ;;  %v3331_v31 = vrot.slane %v3330_v4, 2  ;;  %v3339_v63 = vmax.f32 %v7125_v6, %v3338_v0  ;;  %v3377_v36 = vmax.f32 %v3375_v62, %v3376_v29 }
 0x248   :  { %v3392_v58 = vrot.slane %v7234_v35, 4  ;;  %v2907_v59 = vrot.slane %v2906_v13, 1  ;;  %v3384_v22 = vmax.f32 %v7219_v44, %v3383_v11  ;;  %v5020_v41 = vpack.i.bf16 %v7266_v42, %v7369_v16 }
 0x249   :  { %v7378_v7 = vmax.f32 %v2885_v15, %v2886_v24  ;;  %v2899_v30 = vmax.f32 %v2897_v2, %v2898_v12  ;;  %v3340_v45 = vrot.slane %v3339_v63, 2  ;;  %v3365_v6 = vrot.slane %v7177_v47, 4  ;;  %v7989_v24 = vld [vmem:[#allocation21_spill] sm:$0xff] }
 0x24a   :  { %4981 = vrot.lane.b32.xlu0 %v4985_v10, %s5181_s12  ;;  %v3350_v10 = vmax.f32 %v3348_v39, %v3349_v28  ;;  %v3332_v39 = vmax.f32 %v3330_v4, %v3331_v31  ;;  %v7986_v62 = vmax.f32 %v7985_v26, 0.0  ;;  %v7386_v44 = vmax.f32 %v2906_v13, %v2907_v59 }
 0x24b   :  { %5001 = vrot.lane.b32.xlu1 %v5000_v60, %s5183_s2  ;;  %v3378_v60 = vrot.slane %v3377_v36, 1  ;;  %v3393_v15 = vmax.f32 %v7234_v35, %v3392_v58  ;;  %v3385_v43 = vrot.slane %v3384_v22, 2  ;;  %v5025_v2 = vpack.i.bf16 %v7378_v7, %v7322_v61 }
 0x24c   :  { %v2783_v32 = vsel %vm1363_vm2, %v7986_v62, -inf  ;;  %7987 = vst [vmem:[#allocation10_spill] sm:$0xff] %v7386_v44  ;;  %v2900_v28 = vrot.slane %v2899_v30, 1  ;;  %v3333_v4 = vrot.slane %v3332_v39, 1  ;;  %v3341_v29 = vmax.f32 %v3339_v63, %v3340_v45 }
 0x24d   :  { %v3366_v11 = vmax.f32 %v7177_v47, %v3365_v6  ;;  %v7990_v12 = vmax.f32 %v7989_v24, 0.0  ;;  %v2784_v31 = vrot.slane %v2783_v32, 4  ;;  %v7401_v58 = vmax.f32 %v3377_v36, %v3378_v60  ;;  %v7994_v36 = vld [vmem:[#allocation18_spill] sm:$0xff] }
 0x24e   :  { %4996 = vrot.lane.b32.xlu0 %v4990_v37, %s5181_s12  ;;  %v3351_v37 = vrot.slane %v3350_v10, 1  ;;  %v3394_v59 = vrot.slane %v3393_v15, 2  ;;  %v7406_v63 = vmax.f32 %v2899_v30, %v2900_v28  ;;  %v3386_v47 = vmax.f32 %v3384_v22, %v3385_v43 }
 0x24f   :  { %5016 = vrot.lane.b32.xlu1 %v5015_v50, %s5183_s2  ;;  %v2762_v13 = vsel %vm1363_vm2, %v7990_v12, -inf  ;;  %v7409_v6 = vmax.f32 %v3332_v39, %v3333_v4  ;;  %v3367_v26 = vrot.slane %v3366_v11, 2  ;;  %v2785_v62 = vmax.f32 %v2783_v32, %v2784_v31 }
 0x250   :  { %v7392_v0 = vmax.f32 %v3350_v10, %v3351_v37  ;;  %7993 = vst [vmem:[#allocation20_spill] sm:$0xff] %v7406_v63  ;;  %v2763_v45 = vrot.slane %v2762_v13, 4  ;;  %v3342_v37 = vrot.slane %v3341_v29, 1  ;;  %v7995_v60 = vmax.f32 %v7994_v36, 0.0 }
 0x251   :  { %v5050_v30 = vpack.i.bf16 %v7401_v58, %v7409_v6  ;;  %v3395_v28 = vmax.f32 %v3393_v15, %v3394_v59  ;;  %v3387_v43 = vrot.slane %v3386_v47, 1  ;;  %v7996_v4 = vmax.f32 %v6983_v27, 0.0  ;;  %v7998_v15 = vld [vmem:[#allocation35_spill] sm:$0xff] }
 0x252   :  { %5006 = vrot.lane.b32.xlu0 %v5015_v50, %s5184_s28  ;;  %7988 = vst [vmem:[#allocation11_spill] sm:$0xff] %v7392_v0  ;;  %v5045_v35 = vpack.i.bf16 %v7392_v0, %v7386_v44  ;;  %v2741_v24 = vsel %vm1363_vm2, %v7995_v60, -inf  ;;  %v5035_v22 = vpack.i.bf16 %v7392_v0, %v7406_v63  ;;  %v2764_v39 = vmax.f32 %v2762_v13, %v2763_v45 }
 0x253   :  { %5021 = vrot.lane.b32.xlu1 %v5020_v41, %s5183_s2  ;;  %v2846_v32 = vsel %vm1363_vm2, %v7996_v4, -inf  ;;  %v3368_v31 = vmax.f32 %v3366_v11, %v3367_v26  ;;  %v7999_v59 = vmax.f32 %v7998_v15, 0.0  ;;  %v3396_v27 = vrot.slane %v3395_v28, 1 }
 0x254   :  { %v2847_v45 = vrot.slane %v2846_v32, 4  ;;  %v8000_v4 = vmax.f32 %v7181_v51, 0.0  ;;  %v2765_v11 = vrot.slane %v2764_v39, 2 }
 0x255   :  { %v2825_v60 = vsel %vm1363_vm2, %v7999_v59, -inf  ;;  %v3369_v26 = vrot.slane %v3368_v31, 1  ;;  %v7441_v63 = vmax.f32 %v3395_v28, %v3396_v27 }
 0x256   :  { %5011 = vrot.lane.b32.xlu0 %v5015_v50, %s5181_s12  ;;  %v7991_v50 = vld [vmem:[#allocation26_spill] sm:$0xff] }
 0x257   :  { %5026 = vrot.lane.b32.xlu1 %v5025_v2, %s5184_s28  ;;  %v7992_v10 = vmax.f32 %v7991_v50, 0.0  ;;  %v2742_v50 = vrot.slane %v2741_v24, 4  ;;  %8003 = vst [vmem:[#allocation31_spill] sm:$0xff] %v7441_v63 }
 0x259   :  { %v2804_v41 = vsel %vm1363_vm2, %v7992_v10, -inf  ;;  %v2786_v10 = vrot.slane %v2785_v62, 2 }
 0x25a   :  { %5046 = vrot.lane.b32.xlu0 %v5045_v35, %s5181_s12  ;;  %v2805_v12 = vrot.slane %v2804_v41, 4 }
 0x25b   :  { %5031 = vrot.lane.b32.xlu1 %v5025_v2, %s5181_s12  ;;  %v7423_v2 = vmax.f32 %v3341_v29, %v3342_v37  ;;  %v2888_v29 = vsel %vm1363_vm2, %v8000_v4, -inf  ;;  %v7434_v37 = vmax.f32 %v3386_v47, %v3387_v43  ;;  %v2787_v15 = vmax.f32 %v2785_v62, %v2786_v10 }
 0x25c   :  { %v2806_v36 = vmax.f32 %v2804_v41, %v2805_v12  ;;  %v2743_v41 = vmax.f32 %v2741_v24, %v2742_v50  ;;  %v2826_v12 = vrot.slane %v2825_v60, 4  ;;  %v2889_v59 = vrot.slane %v2888_v29, 4 }
 0x25d   :  { %7997 = vst [vmem:[#allocation22_spill] sm:$0xff] %v7423_v2  ;;  %v5055_v13 = vpack.i.bf16 %v7401_v58, %v7423_v2  ;;  %8001 = vst [vmem:[#allocation12_spill] sm:$0xff] %v7434_v37  ;;  %v2848_v4 = vmax.f32 %v2846_v32, %v2847_v45  ;;  %v5065_v47 = vpack.i.bf16 %v7257_v56, %v7434_v37  ;;  %v2788_v28 = vrot.slane %v2787_v15, 1 }
 0x25e   :  { %5051 = vrot.lane.b32.xlu0 %v5050_v30, %s5183_s2  ;;  %v8002_v30 = vmax.f32 %v7065_v53, 0.0  ;;  %v2807_v51 = vrot.slane %v2806_v36, 2  ;;  %v2766_v43 = vmax.f32 %v2764_v39, %v2765_v11  ;;  %v7446_v24 = vmax.f32 %v3368_v31, %v3369_v26 }
 0x25f   :  { %5036 = vrot.lane.b32.xlu1 %v5035_v22, %s5183_s2  ;;  %v2744_v53 = vrot.slane %v2743_v41, 2  ;;  %v2827_v50 = vmax.f32 %v2825_v60, %v2826_v12  ;;  %v2849_v32 = vrot.slane %v2848_v4, 2  ;;  %v5085_v60 = vpack.i.bf16 %v7423_v2, %v7386_v44 }
 0x260   :  { %v2867_v22 = vsel %vm1363_vm2, %v8002_v30, -inf  ;;  %8004 = vst [vmem:[#allocation33_spill] sm:$0xff] %v7446_v24  ;;  %v5080_v62 = vpack.i.bf16 %v7441_v63, %v7446_v24  ;;  %v2808_v10 = vmax.f32 %v2806_v36, %v2807_v51  ;;  %v2767_v39 = vrot.slane %v2766_v43, 1  ;;  %v3800_v63 = vld [vmem:[#allocation3 + $0xa0] sm:$0xff]  ;;  %v3805_v24 = vld [vmem:[#allocation3 + $0xc8] sm:$0xff] }
 0x261   :  { %v2868_v0 = vrot.slane %v2867_v22, 4  ;;  %v2745_v45 = vmax.f32 %v2743_v41, %v2744_v53  ;;  %v2828_v11 = vrot.slane %v2827_v50, 2  ;;  %v5075_v26 = vpack.i.bf16 %v7339_v8, %v7378_v7 }
 0x262   :  { %5056 = vrot.lane.b32.xlu0 %v5055_v13, %s5184_s28  ;;  %v2809_v36 = vrot.slane %v2808_v10, 1 }
 0x263   :  { %5041 = vrot.lane.b32.xlu1 %v5045_v35, %s5184_s28  ;;  %v2890_v35 = vmax.f32 %v2888_v29, %v2889_v59  ;;  %v2869_v27 = vmax.f32 %v2867_v22, %v2868_v0  ;;  %v2850_v29 = vmax.f32 %v2848_v4, %v2849_v32  ;;  %v7460_v0 = vmax.f32 %v2766_v43, %v2767_v39 }
 0x264   :  { %v2829_v41 = vmax.f32 %v2827_v50, %v2828_v11  ;;  %v2746_v30 = vrot.slane %v2745_v45, 1  ;;  %v3783_v11 = vld [vmem:[#allocation3 + $0x18] sm:$0xff] }
 0x265   :  { %v2891_v31 = vrot.slane %v2890_v35, 2  ;;  %v2870_v12 = vrot.slane %v2869_v27, 2  ;;  %8006 = vst [vmem:[#allocation14_spill] sm:$0xff] %v7460_v0  ;;  %v2851_v51 = vrot.slane %v2850_v29, 1 }
 0x266   :  { %5061 = vrot.lane.b32.xlu0 %v5055_v13, %s5181_s12  ;;  %v7455_v13 = vmax.f32 %v2787_v15, %v2788_v28  ;;  %v7465_v15 = vmax.f32 %v2808_v10, %v2809_v36  ;;  %v2830_v43 = vrot.slane %v2829_v41, 1  ;;  %v3791_v36 = vld [vmem:[#allocation3 + $0x58] sm:$0xff] }
 0x267   :  { %5066 = vrot.lane.b32.xlu1 %v5065_v47, %s5183_s2  ;;  %v2892_v22 = vmax.f32 %v2890_v35, %v2891_v31  ;;  %v2871_v4 = vmax.f32 %v2869_v27, %v2870_v12  ;;  %v7469_v47 = vmax.f32 %v2745_v45, %v2746_v30  ;;  %v7473_v28 = vmax.f32 %v2850_v29, %v2851_v51  ;;  %v7493_v45 = vpop.permute.xlu0 %4876  ;;  %v3787_v31 = vld [vmem:[#allocation3 + $0x38] sm:$0xff] }
 0x268   :  { %8005 = vst [vmem:[#allocation13_spill] sm:$0xff] %v7455_v13  ;;  %v5095_v59 = vpack.i.bf16 %v7455_v13, %v7460_v0  ;;  %8007 = vst [vmem:[#allocation32_spill] sm:$0xff] %v7465_v15  ;;  %v7477_v10 = vmax.f32 %v2829_v41, %v2830_v43  ;;  %v4829_v29 = vpack.c.bf16 %v3787_v31, %v3783_v11  ;;  %v3795_v12 = vld [vmem:[#allocation3 + $0x78] sm:$0xff]  ;;  %v3781_v31 = vld [vmem:[#allocation3 + $0x8] sm:$0xff] }
 0x269   :  { %8008 = vst [vmem:[#allocation34_spill] sm:$0xff] %v7469_v47  ;;  %v2893_v53 = vrot.slane %v2892_v22, 1  ;;  %v5100_v50 = vpack.i.bf16 %v7465_v15, %v7469_v47  ;;  %8009 = vst [vmem:[#allocation25_spill] sm:$0xff] %v7473_v28  ;;  %v2872_v35 = vrot.slane %v2871_v4, 1  ;;  %v4833_v30 = vpack.c.bf16 %v3795_v12, %v3791_v36  ;;  %v3799_v51 = vld [vmem:[#allocation3 + $0x98] sm:$0xff]  ;;  %v3780_v36 = vld [vmem:[#allocation3] sm:$0xff] }
 0x26a   :  { %5081 = vrot.lane.b32.xlu0 %v5080_v62, %s5181_s12  ;;  %8010 = vst [vmem:[#allocation16_spill] sm:$0xff] %v7477_v10  ;;  %8013 = vst [vmem:[#allocation28_spill] sm:$0xff] %v7493_v45  ;;  %4830 = vmatprep.subr.bf16.mxu0 %v4829_v29  ;;  %v3807_v11 = vld [vmem:[#allocation3 + $0xd8] sm:$0xff]  ;;  %v3784_v12 = vld [vmem:[#allocation3 + $0x20] sm:$0xff] }
 0x26b   :  { %5071 = vrot.lane.b32.xlu1 %v5080_v62, %s5184_s28  ;;  %v7479_v32 = vmax.f32 %v2892_v22, %v2893_v53  ;;  %v7484_v27 = vmax.f32 %v2871_v4, %v2872_v35  ;;  %v3790_v22 = vld [vmem:[#allocation3 + $0x50] sm:$0xff]  ;;  %v3803_v4 = vld [vmem:[#allocation3 + $0xb8] sm:$0xff]  ;;  %v3801_v15 = vld [vmem:[#allocation3 + $0xa8] sm:$0xff] }
 0x26c   :  { %v3802_v35 = vld [vmem:[#allocation3 + $0xb0] sm:$0xff]  ;;  %v3819_v0 = vld [vmem:[#allocation3 + $0x138] sm:$0xff]  ;;  %v3796_v13 = vld [vmem:[#allocation3 + $0x80] sm:$0xff] }
 0x26d   :  { %8011 = vst [vmem:[#allocation24_spill] sm:$0xff] %v7479_v32  ;;  %8012 = vst [vmem:[#allocation29_spill] sm:$0xff] %v7484_v27  ;;  %v5125_v39 = vpack.i.bf16 %v7479_v32, %v7484_v27  ;;  %v3785_v27 = vld [vmem:[#allocation3 + $0x28] sm:$0xff]  ;;  %v3806_v29 = vld [vmem:[#allocation3 + $0xd0] sm:$0xff] }
 0x26e   :  { %5086 = vrot.lane.b32.xlu0 %v5085_v60, %s5183_s2  ;;  %v3782_v60 = vld [vmem:[#allocation3 + $0x10] sm:$0xff] }
 0x26f   :  { %5076 = vrot.lane.b32.xlu1 %v5075_v26, %s5183_s2  ;;  %v3786_v26 = vld [vmem:[#allocation3 + $0x30] sm:$0xff] }
 0x270   :  { %v4831_v41 = vpack.c.bf16 %v3786_v26, %v3782_v60  ;;  %v3811_v60 = vld [vmem:[#allocation3 + $0xf8] sm:$0xff]  ;;  %v4797_v26 = vpack.c.bf16 %v3785_v27, %v3781_v31  ;;  %v3792_v27 = vld [vmem:[#allocation3 + $0x60] sm:$0xff]  ;;  %v3797_v31 = vld [vmem:[#allocation3 + $0x88] sm:$0xff] }
 0x271   :  { %v7497_v43 = vpop.permute.xlu0 %4881  ;;  %v4841_v47 = vpack.c.bf16 %v3811_v60, %v3807_v11  ;;  %v3818_v11 = vld [vmem:[#allocation3 + $0x130] sm:$0xff]  ;;  %v3823_v60 = vld [vmem:[#allocation3 + $0x158] sm:$0xff] }
 0x272   :  { %5096 = vrot.lane.b32.xlu0 %v5095_v59, %s5183_s2  ;;  %8014 = vst [vmem:[#allocation6_spill] sm:$0xff] %v7497_v43  ;;  %4832 = vmatpush1.bf16.msra.mxu0 %v4831_v41  ;;  %v3793_v41 = vld [vmem:[#allocation3 + $0x68] sm:$0xff] }
 0x273   :  { %5091 = vrot.lane.b32.xlu1 %v5080_v62, %s5183_s2  ;;  %v5110_v62 = vpack.i.bf16 %v7473_v28, %v7477_v10  ;;  %4834 = vmatprep.subr.bf16.mxu0 %v4833_v30  ;;  %v4799_v10 = vpack.c.bf16 %v3784_v12, %v3780_v36  ;;  %v3789_v28 = vld [vmem:[#allocation3 + $0x48] sm:$0xff]  ;;  %v3815_v30 = vld [vmem:[#allocation3 + $0x118] sm:$0xff]  ;;  %v4805_v12 = vpack.c.bf16 %v3801_v15, %v3797_v31 }
 0x274   :  { %4798 = vmatprep.subr.bf16.mxu1 %v4797_v26  ;;  %v3817_v31 = vld [vmem:[#allocation3 + $0x128] sm:$0xff] }
 0x275   :  { %4800 = vmatpush1.bf16.msra.mxu1 %v4799_v10  ;;  %v4807_v10 = vpack.c.bf16 %v3800_v63, %v3796_v13  ;;  %v3816_v13 = vld [vmem:[#allocation3 + $0x120] sm:$0xff] }
 0x276   :  { %5106 = vrot.lane.b32.xlu0 %v5095_v59, %s5184_s28 }
 0x277   :  { %5101 = vrot.lane.b32.xlu1 %v5100_v50, %s5183_s2 }
 0x27a   :  { %5116 = vrot.lane.b32.xlu0 %v5100_v50, %s5184_s28 }
 0x27b   :  { %5111 = vrot.lane.b32.xlu1 %v5110_v62, %s5183_s2 }
 0x27e   :  { %5126 = vrot.lane.b32.xlu0 %v5125_v39, %s5183_s2 }
 0x27f   :  { %5121 = vrot.lane.b32.xlu1 %v5095_v59, %s5181_s12  ;;  %v3794_v59 = vld [vmem:[#allocation3 + $0x70] sm:$0xff] }
 0x280   :  { %v4835_v53 = vpack.c.bf16 %v3794_v59, %v3790_v22 }
 0x282   :  { %5136 = vrot.lane.b32.xlu0 %v5100_v50, %s5181_s12  ;;  %v3798_v50 = vld [vmem:[#allocation3 + $0x90] sm:$0xff]  ;;  %4836 = vmatpush1.bf16.msra.mxu0 %v4835_v53  ;;  %v3809_v53 = vld [vmem:[#allocation3 + $0xe8] sm:$0xff] }
 0x283   :  { %5131 = vrot.lane.b32.xlu1 %v5110_v62, %s5184_s28  ;;  %v7502_v22 = vpop.permute.xlu0 %4896  ;;  %v4839_v59 = vpack.c.bf16 %v3802_v35, %v3798_v50  ;;  %v4809_v15 = vpack.c.bf16 %v3809_v53, %v3805_v24  ;;  %v3821_v24 = vld [vmem:[#allocation3 + $0x148] sm:$0xff] }
 0x284   :  { %v3825_v53 = vld [vmem:[#allocation3 + $0x168] sm:$0xff] }
 0x286   :  { %5146 = vrot.lane.b32.xlu0 %v5110_v62, %s5181_s12  ;;  %v4837_v62 = vpack.c.bf16 %v3803_v4, %v3799_v51  ;;  %v7500_v32 = vpop.permute.xlu1 %4886  ;;  %v4801_v51 = vpack.c.bf16 %v3793_v41, %v3789_v28  ;;  %v3788_v4 = vld [vmem:[#allocation3 + $0x40] sm:$0xff]  ;;  %v4845_v28 = vpack.c.bf16 %v3819_v0, %v3815_v30  ;;  %v3827_v41 = vld [vmem:[#allocation3 + $0x178] sm:$0xff]  ;;  %v3822_v0 = vld [vmem:[#allocation3 + $0x150] sm:$0xff] }
 0x287   :  { %5141 = vrot.lane.b32.xlu1 %v5125_v39, %s5184_s28  ;;  %8015 = vst [vmem:[#allocation30_spill] sm:$0xff] %v7500_v32  ;;  %v4803_v36 = vpack.c.bf16 %v3792_v27, %v3788_v4  ;;  %v7506_v26 = vpop.permute.xlu0 %4901  ;;  %v3808_v4 = vld [vmem:[#allocation3 + $0xe0] sm:$0xff]  ;;  %v3813_v27 = vld [vmem:[#allocation3 + $0x108] sm:$0xff] }
 0x288   :  { %4838 = vmatprep.subr.bf16.mxu0 %v4837_v62  ;;  %4802 = vmatprep.subr.bf16.mxu1 %v4801_v51  ;;  %v3814_v62 = vld [vmem:[#allocation3 + $0x110] sm:$0xff]  ;;  %v3804_v51 = vld [vmem:[#allocation3 + $0xc0] sm:$0xff]  ;;  %v4813_v63 = vpack.c.bf16 %v3817_v31, %v3813_v27  ;;  %v4878_v27 = vunpack.i.l.bf16 %v7493_v45 }
 0x289   :  { %4840 = vmatpush1.bf16.msra.mxu0 %v4839_v59  ;;  %4804 = vmatpush1.bf16.msra.mxu1 %v4803_v36  ;;  %v3826_v59 = vld [vmem:[#allocation3 + $0x170] sm:$0xff]  ;;  %v3812_v30 = vld [vmem:[#allocation3 + $0x100] sm:$0xff]  ;;  %v3831_v36 = vld [vmem:[#allocation3 + $0x198] sm:$0xff] }
 0x28a   :  { %v7504_v35 = vpop.permute.xlu1 %4891  ;;  %4842 = vmatprep.subr.bf16.mxu0 %v4841_v47  ;;  %4806 = vmatprep.subr.bf16.mxu1 %v4805_v12  ;;  %v4849_v47 = vpack.c.bf16 %v3827_v41, %v3823_v60  ;;  %v3835_v12 = vld [vmem:[#allocation3 + $0x1b8] sm:$0xff]  ;;  %v4817_v60 = vpack.c.bf16 %v3825_v53, %v3821_v24  ;;  %v4898_v53 = vunpack.i.l.bf16 %v7502_v22 }
 0x28b   :  { %5151 = vrot.lane.b32.xlu1 %v5125_v39, %s5181_s12  ;;  %v3810_v39 = vld [vmem:[#allocation3 + $0xf0] sm:$0xff] }
 0x28c   :  { %v4843_v50 = vpack.c.bf16 %v3810_v39, %v3806_v29  ;;  %v4847_v29 = vpack.c.bf16 %v3818_v11, %v3814_v62  ;;  %v4811_v39 = vpack.c.bf16 %v3808_v4, %v3804_v51  ;;  %v4853_v62 = vpack.c.bf16 %v3835_v12, %v3831_v36  ;;  %v3830_v11 = vld [vmem:[#allocation3 + $0x190] sm:$0xff] }
 0x28d   :  { %4808 = vmatpush1.bf16.msra.mxu1 %v4807_v10  ;;  %v3834_v10 = vld [vmem:[#allocation3 + $0x1b0] sm:$0xff]  ;;  %v7890_v12 = vunpack.i.h.bf16 %v7493_v45  ;;  %v8018_v45 = vld [vmem:[#allocation19_spill] sm:$0xff] }
 0x28e   :  { %4844 = vmatpush1.bf16.msra.mxu0 %v4843_v50  ;;  %4810 = vmatprep.subr.bf16.mxu1 %v4809_v15  ;;  %v4851_v50 = vpack.c.bf16 %v3826_v59, %v3822_v0  ;;  %v4855_v15 = vpack.c.bf16 %v3834_v10, %v3830_v11  ;;  %v4894_v59 = vunpack.i.h.bf16 %v7504_v35 }
 0x28f   :  { %4846 = vmatprep.subr.bf16.mxu0 %v4845_v28  ;;  %v4815_v28 = vpack.c.bf16 %v3816_v13, %v3812_v30 }
 0x290   :  { %v3433_v24 = vmax.f32 %v7129_v54, %v4894_v59  ;;  %v3061_v54 = vmax.f32 %v6955_v38, %v7890_v12 }
 0x291   :  { %4812 = vmatpush1.bf16.msra.mxu1 %v4811_v39  ;;  %v3431_v39 = vmax.f32 %v6957_v5, %v4878_v27  ;;  %v7891_v5 = vunpack.i.h.bf16 %v7497_v43 }
 0x292   :  { %4848 = vmatpush1.bf16.msra.mxu0 %v4847_v29  ;;  %4814 = vmatprep.subr.bf16.mxu1 %v4813_v63  ;;  %v4893_v29 = vunpack.i.l.bf16 %v7504_v35 }
 0x293   :  { %4850 = vmatprep.subr.bf16.mxu0 %v4849_v47 }
 0x294   :  { %v3430_v63 = vmax.f32 %v7127_v1, %v4893_v29  ;;  %v7893_v1 = vunpack.i.l.bf16 %v7497_v43  ;;  %v4903_v29 = vunpack.i.l.bf16 %v7506_v26 }
 0x295   :  { %4816 = vmatpush1.bf16.msra.mxu1 %v4815_v28  ;;  %v4899_v28 = vunpack.i.h.bf16 %v7502_v22  ;;  %v4889_v22 = vunpack.i.h.bf16 %v7500_v32 }
 0x296   :  { %4852 = vmatpush1.bf16.msra.mxu0 %v4851_v50  ;;  %4818 = vmatprep.subr.bf16.mxu1 %v4817_v60  ;;  %v3462_v11 = vmax.f32 %v3430_v63, %v4898_v53  ;;  %v3063_v63 = vmax.f32 %v7039_v40, %v7891_v5 }
 0x297   :  { %4854 = vmatprep.subr.bf16.mxu0 %v4853_v62  ;;  %v3432_v5 = vmax.f32 %v7144_v9, %v4889_v22 }
 0x298   :  { %v3494_v53 = vmax.f32 %v3462_v11, %v4903_v29 }
 0x299   :  { %v7508_v2 = vpop.permute.xlu1 %4911  ;;  %v4907_v44 = vpop.permute.xlu0 %4906 }
 0x29a   :  { %4856 = vmatpush1.bf16.msra.mxu0 %v4855_v15  ;;  %v4908_v47 = vunpack.i.l.bf16 %v4907_v44  ;;  %v4913_v50 = vunpack.i.l.bf16 %v7508_v2  ;;  %v4909_v35 = vunpack.i.h.bf16 %v4907_v44  ;;  %v3465_v15 = vmax.f32 %v3433_v24, %v4899_v28 }
 0x29b   :  { %v7894_v44 = vunpack.i.l.bf16 %v7500_v32  ;;  %v3502_v9 = vmax.f32 %v3494_v53, %v7278_v14 }
 0x29c   :  { %v3463_v13 = vmax.f32 %v3431_v39, %v4908_v47  ;;  %v4904_v47 = vunpack.i.h.bf16 %v7506_v26  ;;  %v3101_v59 = vmax.f32 %v3061_v54, %v4909_v35  ;;  %v4914_v26 = vunpack.i.h.bf16 %v7508_v2 }
 0x29d   :  { %v7510_v41 = vpop.permute.xlu1 %4926 }
 0x29e   :  { %v3495_v10 = vmax.f32 %v3463_v13, %v4913_v50  ;;  %v8017_v13 = vld [vmem:[#allocation7_spill] sm:$0xff]  ;;  %v7559_v12 = vmax.f32 %v3465_v15, %v4904_v47  ;;  %v7570_v29 = vmax.f32 %v3101_v59, %v4914_v26  ;;  %v4928_v15 = vunpack.i.l.bf16 %v7510_v41 }
 0x29f   :  { %v3062_v24 = vmax.f32 %v8017_v13, %v7893_v1  ;;  %v3064_v1 = vmax.f32 %v8018_v45, %v7894_v44 }
 0x2a0   :  { %v7512_v51 = vpop.permute.xlu0 %4916  ;;  %v3503_v50 = vmax.f32 %v3495_v10, %v7262_v18 }
 0x2a1   :  { %8016 = vst [vmem:[#allocation23_spill] sm:$0xff] %v7512_v51  ;;  %v7514_v4 = vpop.permute.xlu1 %4936  ;;  %v4918_v11 = vunpack.i.l.bf16 %v7512_v51  ;;  %v8019_v38 = vunpack.i.h.bf16 %v7512_v51 }
 0x2a2   :  { %v4938_v10 = vunpack.i.l.bf16 %v7514_v4 }
 0x2a3   :  { %v3065_v43 = vmax.f32 %v7260_v3, %v8019_v38 }
 0x2a4   :  { %v7517_v31 = vpop.permute.xlu0 %4921  ;;  %v3102_v45 = vmax.f32 %v3062_v24, %v4938_v10 }
 0x2a5   :  { %v7520_v0 = vpop.permute.xlu1 %4941  ;;  %v4923_v27 = vunpack.i.l.bf16 %v7517_v31  ;;  %v4924_v35 = vunpack.i.h.bf16 %v7517_v31  ;;  %v4939_v31 = vunpack.i.h.bf16 %v7514_v4  ;;  %v4929_v4 = vunpack.i.h.bf16 %v7510_v41 }
 0x2a7   :  { %v3434_v54 = vmax.f32 %v7245_v55, %v4923_v27  ;;  %v3543_v55 = vmax.f32 %v3503_v50, %v4918_v11  ;;  %v4943_v27 = vunpack.i.l.bf16 %v7520_v0  ;;  %v3550_v59 = vmax.f32 %v7278_v14, %v4924_v35 }
 0x2a8   :  { %v7524_v30 = vpop.permute.xlu0 %4931  ;;  %v4944_v50 = vunpack.i.h.bf16 %v7520_v0  ;;  %v3103_v13 = vmax.f32 %v3063_v63, %v4939_v31  ;;  %v3542_v2 = vmax.f32 %v3502_v9, %v4924_v35  ;;  %v3551_v63 = vmax.f32 %v7262_v18, %v4918_v11 }
 0x2a9   :  { %v7527_v36 = vpop.permute.xlu1 %4946  ;;  %v4933_v26 = vunpack.i.l.bf16 %v7524_v30  ;;  %v3466_v32 = vmax.f32 %v3434_v54, %v4928_v15  ;;  %v3141_v54 = vmax.f32 %v7570_v29, %v7236_v57  ;;  %v3733_v40 = vrot.slane %v3543_v55, 7 }
 0x2aa   :  { %v7595_v37 = vmax.f32 %v3102_v45, %v4943_v27  ;;  %v4934_v0 = vunpack.i.h.bf16 %v7524_v30  ;;  %v3590_v51 = vmax.f32 %v3550_v59, %v4929_v4  ;;  %v7903_v29 = vunpack.i.h.bf16 %v7527_v36 }
 0x2ab   :  { %v3498_v10 = vmax.f32 %v3466_v32, %v4933_v26  ;;  %v4948_v45 = vunpack.i.l.bf16 %v7527_v36  ;;  %v7608_v30 = vsel %vm3679_vm6, %v3733_v40, %v3542_v2 }
 0x2ac   :  { %v7534_v62 = vpop.permute.xlu0 %4951  ;;  %v3142_v18 = vmax.f32 %v7595_v37, %v7266_v42  ;;  %v3066_v2 = vmax.f32 %v7288_v21, %v7903_v29 }
 0x2ad   :  { %v7538_v60 = vpop.permute.xlu1 %4961  ;;  %v4954_v22 = vunpack.i.h.bf16 %v7534_v62  ;;  %v4953_v14 = vunpack.i.l.bf16 %v7534_v62  ;;  %v7602_v62 = vmax.f32 %v3103_v13, %v4944_v50  ;;  %v3622_v13 = vmax.f32 %v3590_v51, %v4934_v0 }
 0x2ae   :  { %v4963_v11 = vunpack.i.l.bf16 %v7538_v60  ;;  %v3552_v4 = vmax.f32 %v7293_v34, %v4948_v45  ;;  %v4964_v51 = vunpack.i.h.bf16 %v7538_v60 }
 0x2af   :  { %v3464_v41 = vmax.f32 %v3432_v5, %v4954_v22  ;;  %v3104_v35 = vmax.f32 %v3064_v1, %v4953_v14  ;;  %v3506_v22 = vmax.f32 %v3498_v10, %v7317_v52  ;;  %v3630_v10 = vmax.f32 %v3622_v13, %v7251_v33 }
 0x2b0   :  { %v7548_v39 = vpop.permute.xlu0 %4956 }
 0x2b1   :  { %v7557_v28 = vpop.permute.xlu1 %4966  ;;  %v4959_v53 = vunpack.i.h.bf16 %v7548_v39  ;;  %v4958_v38 = vunpack.i.l.bf16 %v7548_v39 }
 0x2b2   :  { %v4969_v5 = vunpack.i.h.bf16 %v7557_v28  ;;  %v4968_v59 = vunpack.i.l.bf16 %v7557_v28 }
 0x2b3   :  { %v3496_v31 = vmax.f32 %v3464_v41, %v4959_v53  ;;  %v3136_v27 = vmax.f32 %v3104_v35, %v4958_v38  ;;  %v7630_v41 = vmax.f32 %v3141_v54, %v4963_v11 }
 0x2b4   :  { %v7575_v47 = vpop.permute.xlu0 %4971  ;;  %v7622_v50 = vmax.f32 %v3506_v22, %v4969_v5 }
 0x2b5   :  { %v7580_v44 = vpop.permute.xlu1 %4986  ;;  %v3504_v1 = vmax.f32 %v3496_v31, %v7293_v34  ;;  %v3144_v0 = vmax.f32 %v3136_v27, %v7295_v20  ;;  %v3554_v34 = vmax.f32 %v7317_v52, %v4969_v5  ;;  %v4973_v60 = vunpack.i.l.bf16 %v7575_v47 }
 0x2b6   :  { %v3739_v31 = vrot.slane %v7622_v50, 4  ;;  %v4989_v52 = vunpack.i.h.bf16 %v7580_v44  ;;  %v4988_v33 = vunpack.i.l.bf16 %v7580_v44 }
 0x2b7   :  { %v3544_v38 = vmax.f32 %v3504_v1, %v4948_v45  ;;  %v3662_v27 = vmax.f32 %v3630_v10, %v4973_v60 }
 0x2b8   :  { %v4977_v15 = vpop.permute.xlu0 %4976 }
 0x2b9   :  { %v7597_v24 = vpop.permute.xlu1 %4991  ;;  %v4978_v57 = vunpack.i.l.bf16 %v4977_v15  ;;  %v4979_v32 = vunpack.i.h.bf16 %v4977_v15 }
 0x2ba   :  { %v4994_v54 = vunpack.i.h.bf16 %v7597_v24  ;;  %v4993_v35 = vunpack.i.l.bf16 %v7597_v24  ;;  %v3735_v24 = vrot.slane %v3544_v38, 6 }
 0x2bb   :  { %v3591_v26 = vmax.f32 %v3551_v63, %v4978_v57  ;;  %v3105_v53 = vmax.f32 %v3065_v43, %v4979_v32  ;;  %v3435_v63 = vmax.f32 %v7311_v23, %v4968_v59  ;;  %v4974_v57 = vunpack.i.h.bf16 %v7575_v47 }
 0x2bc   :  { %v4982_v55 = vpop.permute.xlu0 %4981  ;;  %v8020_v23 = vmax.f32 %v7559_v12, %v7353_v17  ;;  %v7649_v32 = vmax.f32 %v3144_v0, %v4964_v51 }
 0x2bd   :  { %v4983_v9 = vunpack.i.l.bf16 %v4982_v55  ;;  %v7610_v39 = vpop.permute.xlu1 %5001  ;;  %v4984_v40 = vunpack.i.h.bf16 %v4982_v55  ;;  %v3467_v1 = vmax.f32 %v3435_v63, %v4993_v35 }
 0x2be   :  { %v5003_v28 = vunpack.i.l.bf16 %v7610_v39  ;;  %v5004_v59 = vunpack.i.h.bf16 %v7610_v39  ;;  %v3712_v10 = vrot.slane %v7649_v32, 5 }
 0x2bf   :  { %v3623_v14 = vmax.f32 %v3591_v26, %v4983_v9  ;;  %v3137_v43 = vmax.f32 %v3105_v53, %v4984_v40 }
 0x2c0   :  { %v4997_v42 = vpop.permute.xlu0 %4996  ;;  %v3545_v5 = vmax.f32 %v8020_v23, %v5003_v28 }
 0x2c1   :  { %v7628_v15 = vpop.permute.xlu1 %5016  ;;  %v3631_v45 = vmax.f32 %v3623_v14, %v7330_v19  ;;  %v3145_v22 = vmax.f32 %v3137_v43, %v7326_v49  ;;  %v4998_v44 = vunpack.i.l.bf16 %v4997_v42  ;;  %v3594_v19 = vmax.f32 %v3554_v34, %v4994_v54 }
 0x2c2   :  { %v4999_v12 = vunpack.i.h.bf16 %v4997_v42  ;;  %v3737_v53 = vrot.slane %v3545_v5, 5  ;;  %v3736_v49 = vsel %vm3682_vm7, %v3735_v24, %v7608_v30  ;;  %v3553_v42 = vmax.f32 %v7353_v17, %v5003_v28 }
 0x2c3   :  { %v3663_v40 = vmax.f32 %v3631_v45, %v4988_v33  ;;  %v7655_v38 = vmax.f32 %v3145_v22, %v4989_v52  ;;  %v3499_v34 = vmax.f32 %v3467_v1, %v4998_v44  ;;  %v5019_v35 = vunpack.i.h.bf16 %v7628_v15 }
 0x2c4   :  { %v5007_v20 = vpop.permute.xlu0 %5006  ;;  %v7660_v63 = vmax.f32 %v3594_v19, %v4999_v12  ;;  %v5018_v5 = vunpack.i.l.bf16 %v7628_v15 }
 0x2c5   :  { %v7647_v55 = vpop.permute.xlu1 %5021  ;;  %v5009_v9 = vunpack.i.h.bf16 %v5007_v20  ;;  %v5008_v13 = vunpack.i.l.bf16 %v5007_v20  ;;  %v3714_v45 = vrot.slane %v7655_v38, 4 }
 0x2c6   :  { %v5024_v11 = vunpack.i.h.bf16 %v7647_v55  ;;  %v5023_v33 = vunpack.i.l.bf16 %v7647_v55 }
 0x2c7   :  { %v3106_v20 = vmax.f32 %v3066_v2, %v5009_v9  ;;  %v3592_v23 = vmax.f32 %v3552_v4, %v5008_v13  ;;  %v3758_v2 = vrot.slane %v3663_v40, 7  ;;  %v3738_v4 = vsel %vm3685_vm8, %v3737_v53, %v3736_v49 }
 0x2c8   :  { %v5012_v26 = vpop.permute.xlu0 %5011  ;;  %v3174_v29 = vmax.f32 %v3142_v18, %v5024_v11  ;;  %v3067_v18 = vmax.f32 %v7347_v46, %v5004_v59  ;;  %v3507_v13 = vmax.f32 %v3499_v34, %v7409_v6  ;;  %v3740_v15 = vsel %vm3688_vm9, %v3739_v31, %v3738_v4 }
 0x2c9   :  { %v5014_v51 = vunpack.i.h.bf16 %v5012_v26  ;;  %v5013_v14 = vunpack.i.l.bf16 %v5012_v26  ;;  %v5027_v0 = vpop.permute.xlu1 %5026  ;;  %v7678_v1 = vsel %vm3679_vm6, %v3758_v2, %v3662_v27 }
 0x2ca   :  { %v5028_v37 = vunpack.i.l.bf16 %v5027_v0  ;;  %v3708_v30 = vrot.slane %v3174_v29, 7  ;;  %v5029_v9 = vunpack.i.h.bf16 %v5027_v0  ;;  %v3634_v29 = vmax.f32 %v7660_v63, %v7339_v8  ;;  %v3836_v63 = vld [vmem:[#allocation3 + $0x1c0] sm:$0xff] }
 0x2cb   :  { %v3138_v60 = vmax.f32 %v3106_v20, %v5014_v51  ;;  %v3624_v43 = vmax.f32 %v3592_v23, %v5013_v14 }
 0x2cc   :  { %v7662_v54 = vpop.permute.xlu0 %5046  ;;  %v3593_v17 = vmax.f32 %v3553_v42, %v5028_v37  ;;  %v3107_v40 = vmax.f32 %v3067_v18, %v5029_v9 }
 0x2cd   :  { %v5032_v52 = vpop.permute.xlu1 %5031  ;;  %v3146_v11 = vmax.f32 %v3138_v60, %v7358_v48  ;;  %v3632_v24 = vmax.f32 %v3624_v43, %v7364_v25  ;;  %v7687_v48 = vsel %vm3679_vm6, %v3708_v30, %v7630_v41  ;;  %v7692_v25 = vmax.f32 %v7369_v16, %v5023_v33  ;;  %v8021_v43 = vld [vmem:[#allocation11_spill] sm:$0xff] }
 0x2ce   :  { %v5033_v28 = vunpack.i.l.bf16 %v5032_v52  ;;  %v5034_v53 = vunpack.i.h.bf16 %v5032_v52  ;;  %v5049_v41 = vunpack.i.h.bf16 %v7662_v54  ;;  %v5048_v0 = vunpack.i.l.bf16 %v7662_v54 }
 0x2cf   :  { %v7697_v14 = vmax.f32 %v3146_v11, %v5019_v35  ;;  %v7699_v31 = vmax.f32 %v3632_v24, %v5018_v5 }
 0x2d0   :  { %v3625_v22 = vmax.f32 %v3593_v17, %v5033_v28  ;;  %v5052_v44 = vpop.permute.xlu0 %5051  ;;  %v7709_v52 = vmax.f32 %v3107_v40, %v5034_v53  ;;  %v3824_v17 = vld [vmem:[#allocation3 + $0x160] sm:$0xff]  ;;  %v3829_v28 = vld [vmem:[#allocation3 + $0x188] sm:$0xff] }
 0x2d1   :  { %v5054_v37 = vunpack.i.h.bf16 %v5052_v44  ;;  %v5053_v19 = vunpack.i.l.bf16 %v5052_v44  ;;  %v7680_v12 = vpop.permute.xlu1 %5036  ;;  %v3828_v44 = vld [vmem:[#allocation3 + $0x180] sm:$0xff] }
 0x2d2   :  { %v5039_v27 = vunpack.i.h.bf16 %v7680_v12  ;;  %v5038_v26 = vunpack.i.l.bf16 %v7680_v12  ;;  %v3633_v51 = vmax.f32 %v3625_v22, %v7322_v61  ;;  %v8022_v61 = vld [vmem:[#allocation20_spill] sm:$0xff]  ;;  %v3833_v22 = vld [vmem:[#allocation3 + $0x1a8] sm:$0xff]  ;;  %v3844_v12 = vld [vmem:[%s7827_s4] sm:$0xf] }
 0x2d3   :  { %v3547_v50 = vmax.f32 %v3507_v13, %v5053_v19  ;;  %v3437_v23 = vmax.f32 %v7401_v58, %v5054_v37  ;;  %v3555_v49 = vmax.f32 %v7409_v6, %v5053_v19  ;;  %v3820_v6 = vld [vmem:[#allocation3 + $0x140] sm:$0xff]  ;;  %v4821_v47 = vpack.c.bf16 %v3833_v22, %v3829_v28 }
 0x2d4   :  { %v5057_v20 = vpop.permute.xlu0 %5056  ;;  %v3436_v2 = vmax.f32 %v8021_v43, %v5039_v27  ;;  %v3068_v18 = vmax.f32 %v8022_v61, %v5038_v26  ;;  %v7713_v54 = vmax.f32 %v3633_v51, %v4974_v57  ;;  %v4819_v24 = vpack.c.bf16 %v3824_v17, %v3820_v6  ;;  %v3832_v37 = vld [vmem:[#allocation3 + $0x1a0] sm:$0xff] }
 0x2d5   :  { %v5059_v34 = vunpack.i.h.bf16 %v5057_v20  ;;  %v5058_v42 = vunpack.i.l.bf16 %v5057_v20  ;;  %v5042_v60 = vpop.permute.xlu1 %5041  ;;  %v3741_v58 = vrot.slane %v3547_v50, 3  ;;  %v4823_v57 = vpack.c.bf16 %v3832_v37, %v3828_v44  ;;  %v8025_v17 = vld [vmem:[#allocation10_spill] sm:$0xff] }
 0x2d6   :  { %v5044_v4 = vunpack.i.h.bf16 %v5042_v60  ;;  %v5043_v35 = vunpack.i.l.bf16 %v5042_v60  ;;  %4820 = vmatpush1.bf16.msra.mxu1 %v4819_v24 }
 0x2d7   :  { %v3469_v30 = vmax.f32 %v3437_v23, %v5059_v34  ;;  %v3595_v5 = vmax.f32 %v3555_v49, %v5058_v42  ;;  %v3760_v23 = vrot.slane %v7699_v31, 6  ;;  %v3762_v49 = vrot.slane %v7713_v54, 5  ;;  %4822 = vmatprep.subr.bf16.mxu1 %v4821_v47 }
 0x2d8   :  { %v3468_v9 = vmax.f32 %v3436_v2, %v5044_v4  ;;  %v3108_v13 = vmax.f32 %v3068_v18, %v5043_v35  ;;  %v5062_v11 = vpop.permute.xlu0 %5061  ;;  %v3147_v42 = vmax.f32 %v7709_v52, %v7378_v7  ;;  %v8023_v2 = vmax.f32 %v7602_v62, %v7257_v56  ;;  %v8024_v4 = vld [vmem:[#allocation12_spill] sm:$0xff]  ;;  %v3839_v7 = vld [vmem:[#allocation3 + $0x1d8] sm:$0xff]  ;;  %v3841_v62 = vld [vmem:[#allocation3 + $0x1e8] sm:$0xff] }
 0x2d9   :  { %v5064_v19 = vunpack.i.h.bf16 %v5062_v11  ;;  %v5063_v27 = vunpack.i.l.bf16 %v5062_v11  ;;  %v5067_v40 = vpop.permute.xlu1 %5066  ;;  %v3742_v18 = vsel %vm3691_vm10, %v3741_v58, %v3740_v15  ;;  %v3843_v52 = vld [vmem:[#allocation3 + $0x1f8] sm:$0xff]  ;;  %v3838_v15 = vld [vmem:[#allocation3 + $0x1d0] sm:$0xff]  ;;  %v3761_v8 = vsel %vm3682_vm7, %v3760_v23, %v7678_v1 }
 0x2da   :  { %v3500_v53 = vmax.f32 %v3468_v9, %v5049_v41  ;;  %v3140_v51 = vmax.f32 %v3108_v13, %v5048_v0  ;;  %v5069_v50 = vunpack.i.h.bf16 %v5067_v40  ;;  %v5068_v20 = vunpack.i.l.bf16 %v5067_v40  ;;  %v3837_v9 = vld [vmem:[#allocation3 + $0x1c8] sm:$0xff]  ;;  %4824 = vmatpush1.bf16.msra.mxu1 %v4823_v57  ;;  %v3842_v58 = vld [vmem:[#allocation3 + $0x1f0] sm:$0xff] }
 0x2db   :  { %v3501_v34 = vmax.f32 %v3469_v30, %v5064_v19  ;;  %v3627_v43 = vmax.f32 %v3595_v5, %v5063_v27  ;;  %v4857_v24 = vpack.c.bf16 %v3843_v52, %v3839_v7  ;;  %v4825_v22 = vpack.c.bf16 %v3841_v62, %v3837_v9  ;;  %v8028_v9 = vld [vmem:[#allocation31_spill] sm:$0xff] }
 0x2dc   :  { %v3508_v60 = vmax.f32 %v3500_v53, %v7369_v16  ;;  %v3175_v41 = vmax.f32 %v8023_v2, %v5069_v50  ;;  %v5082_v0 = vpop.permute.xlu0 %5081  ;;  %v3557_v31 = vmax.f32 %v8024_v4, %v5068_v20  ;;  %v3148_v28 = vmax.f32 %v3140_v51, %v8025_v17  ;;  %v8026_v2 = vld [vmem:[#allocation22_spill] sm:$0xff]  ;;  %v8027_v17 = vld [vmem:[#allocation33_spill] sm:$0xff] }
 0x2dd   :  { %v3509_v35 = vmax.f32 %v3501_v34, %v8024_v4  ;;  %v5083_v6 = vunpack.i.l.bf16 %v5082_v0  ;;  %v5072_v30 = vpop.permute.xlu1 %5071  ;;  %v4859_v44 = vpack.c.bf16 %v3842_v58, %v3838_v15  ;;  %v5084_v53 = vunpack.i.h.bf16 %v5082_v0  ;;  %4858 = vmatprep.subr.bf16.mxu0 %v4857_v24  ;;  %4826 = vmatprep.subr.bf16.mxu1 %v4825_v22 }
 0x2de   :  { %v3710_v16 = vrot.slane %v3175_v41, 6  ;;  %v5074_v5 = vunpack.i.h.bf16 %v5072_v30  ;;  %v5073_v13 = vunpack.i.l.bf16 %v5072_v30  ;;  %v3548_v56 = vmax.f32 %v3508_v60, %v5023_v33 }
 0x2df   :  { %v3549_v11 = vmax.f32 %v3509_v35, %v5068_v20  ;;  %4860 = vmatpush1.bf16.msra.mxu0 %v4859_v44  ;;  %v3635_v41 = vmax.f32 %v3627_v43, %v8026_v2 }
 0x2e0   :  { %v3711_v37 = vsel %vm3682_vm7, %v3710_v16, %v7687_v48  ;;  %v3596_v19 = vmax.f32 %v7692_v25, %v5073_v13  ;;  %v3597_v27 = vmax.f32 %v3557_v31, %v5074_v5  ;;  %v5087_v40 = vpop.permute.xlu0 %5086  ;;  %v3743_v47 = vrot.slane %v3548_v56, 2 }
 0x2e1   :  { %v5089_v51 = vunpack.i.h.bf16 %v5087_v40  ;;  %v5088_v55 = vunpack.i.l.bf16 %v5087_v40  ;;  %v5077_v33 = vpop.permute.xlu1 %5076  ;;  %v3713_v57 = vsel %vm3685_vm8, %v3712_v10, %v3711_v37  ;;  %v3745_v50 = vrot.slane %v3549_v11, 1 }
 0x2e2   :  { %v3628_v20 = vmax.f32 %v3596_v19, %v5083_v6  ;;  %v5079_v34 = vunpack.i.h.bf16 %v5077_v33  ;;  %v5078_v60 = vunpack.i.l.bf16 %v5077_v33  ;;  %v3629_v48 = vmax.f32 %v3597_v27, %v5084_v53  ;;  %v8029_v33 = vld [vmem:[#allocation13_spill] sm:$0xff] }
 0x2e3   :  { %v3180_v25 = vmax.f32 %v3148_v28, %v5088_v55  ;;  %v3744_v0 = vsel %vm3694_vm11, %v3743_v47, %v3742_v18  ;;  %v3715_v31 = vsel %vm3688_vm9, %v3714_v45, %v3713_v57  ;;  %v3716_v6 = vrot.slane %v7697_v14, 3 }
 0x2e4   :  { %v3666_v4 = vmax.f32 %v3634_v29, %v5079_v34  ;;  %v3179_v32 = vmax.f32 %v3147_v42, %v5078_v60  ;;  %v5097_v35 = vpop.permute.xlu0 %5096  ;;  %v3746_v10 = vsel %vm3697_vm12, %v3745_v50, %v3744_v0  ;;  %v3667_v30 = vmax.f32 %v3635_v41, %v5089_v51  ;;  %v3840_v29 = vld [vmem:[#allocation3 + $0x1e0] sm:$0xff]  ;;  %v8031_v34 = vld [vmem:[#allocation32_spill] sm:$0xff] }
 0x2e5   :  { %3747 = vrot.lane.b32.xlu1 %v3746_v10, %s5184_s28  ;;  %v5092_v43 = vpop.permute.xlu1 %5091  ;;  %v3636_v18 = vmax.f32 %v3628_v20, %v8027_v17  ;;  %v3720_v38 = vrot.slane %v3180_v25, 1  ;;  %v3637_v45 = vmax.f32 %v3629_v48, %v8028_v9  ;;  %v3717_v14 = vsel %vm3691_vm10, %v3716_v6, %v3715_v31  ;;  %v8030_v50 = vld [vmem:[#allocation14_spill] sm:$0xff] }
 0x2e6   :  { %v3764_v42 = vrot.slane %v3666_v4, 4  ;;  %v3718_v28 = vrot.slane %v3179_v32, 2  ;;  %v5094_v7 = vunpack.i.h.bf16 %v5092_v43  ;;  %v5093_v52 = vunpack.i.l.bf16 %v5092_v43  ;;  %v8032_v48 = vld [vmem:[#allocation34_spill] sm:$0xff] }
 0x2e7   :  { %v3763_v16 = vsel %vm3685_vm8, %v3762_v49, %v3761_v8  ;;  %v4827_v23 = vpack.c.bf16 %v3840_v29, %v3836_v63  ;;  %v3766_v62 = vrot.slane %v3667_v30, 3  ;;  %v5099_v22 = vunpack.i.h.bf16 %v5097_v35 }
 0x2e8   :  { %v3668_v5 = vmax.f32 %v3636_v18, %v5093_v52  ;;  %v5107_v13 = vpop.permute.xlu0 %5106  ;;  %v3719_v56 = vsel %vm3694_vm11, %v3718_v28, %v3717_v14  ;;  %v3765_v1 = vsel %vm3688_vm9, %v3764_v42, %v3763_v16  ;;  %v3669_v15 = vmax.f32 %v3637_v45, %v5094_v7  ;;  %v8033_v42 = vld [vmem:[#allocation25_spill] sm:$0xff]  ;;  %v8034_v7 = vld [vmem:[#allocation16_spill] sm:$0xff] }
 0x2e9   :  { %v5102_v58 = vpop.permute.xlu1 %5101  ;;  %v3721_v11 = vsel %vm3697_vm12, %v3720_v38, %v3719_v56  ;;  %4828 = vmatpush1.bf16.msra.mxu1 %v4827_v23  ;;  %v5098_v54 = vunpack.i.l.bf16 %v5097_v35  ;;  %v3767_v49 = vsel %vm3691_vm10, %v3766_v62, %v3765_v1  ;;  %v5109_v51 = vunpack.i.h.bf16 %v5107_v13  ;;  %v8035_v14 = vld [vmem:[#allocation9_spill] sm:$0xff]  ;;  %v8037_v23 = vld [vmem:[#allocation24_spill] sm:$0xff] }
 0x2ea   :  { %v3768_v24 = vrot.slane %v3668_v5, 2  ;;  %3722 = vrot.lane.b32.xlu0 %v3721_v11, %s5183_s2  ;;  %v3770_v44 = vrot.slane %v3669_v15, 1  ;;  %v5104_v37 = vunpack.i.h.bf16 %v5102_v58  ;;  %v5103_v19 = vunpack.i.l.bf16 %v5102_v58  ;;  %v8036_v5 = vld [vmem:[#allocation7_spill] sm:$0xff] }
 0x2eb   :  { %v5108_v55 = vunpack.i.l.bf16 %v5107_v13  ;;  %v2943_v57 = vmax.f32 %v8029_v33, %v5099_v22  ;;  %v2942_v20 = vmax.f32 %v8030_v50, %v5098_v54 }
 0x2ec   :  { %v5117_v27 = vpop.permute.xlu0 %5116  ;;  %v3769_v40 = vsel %vm3694_vm11, %v3768_v24, %v3767_v49  ;;  %v2944_v60 = vmax.f32 %v8031_v34, %v5104_v37  ;;  %v2941_v25 = vmax.f32 %v8032_v48, %v5103_v19  ;;  %v8038_v24 = vld [vmem:[#allocation6_spill] sm:$0xff]  ;;  %v8043_v48 = vld [vmem:[#allocation28_spill] sm:$0xff] }
 0x2ed   :  { %v5112_v47 = vpop.permute.xlu1 %5111  ;;  %v3771_v53 = vsel %vm3697_vm12, %v3770_v44, %v3769_v40  ;;  %v5119_v2 = vunpack.i.h.bf16 %v5117_v27  ;;  %v5118_v41 = vunpack.i.l.bf16 %v5117_v27  ;;  %v2974_v10 = vmax.f32 %v2942_v20, %v5108_v55  ;;  %v8041_v40 = vld [vmem:[#allocation36_spill] sm:$0xff] }
 0x2ee   :  { %3772 = vrot.lane.b32.xlu0 %v3771_v53, %s5181_s12  ;;  %v5114_v4 = vunpack.i.h.bf16 %v5112_v47  ;;  %v5113_v32 = vunpack.i.l.bf16 %v5112_v47  ;;  %v2975_v31 = vmax.f32 %v2943_v57, %v5109_v51  ;;  %v8039_v22 = vunpack.i.h.bf16 %v8038_v24  ;;  %v8042_v53 = vld [vmem:[#allocation19_spill] sm:$0xff] }
 0x2ef   :  { %v2973_v17 = vmax.f32 %v2941_v25, %v5118_v41  ;;  %v2976_v18 = vmax.f32 %v2944_v60, %v5119_v2  ;;  %v8040_v44 = vunpack.i.l.bf16 %v8038_v24  ;;  %v8044_v25 = vunpack.i.h.bf16 %v8043_v48  ;;  %v8045_v41 = vld [vmem:[#allocation30_spill] sm:$0xff] }
 0x2f0   :  { %v5127_v0 = vpop.permute.xlu0 %5126  ;;  %v2946_v28 = vmax.f32 %v8033_v42, %v5114_v4  ;;  %v2945_v52 = vmax.f32 %v8034_v7, %v5113_v32  ;;  %v8048_v7 = vld [vmem:[#allocation23_spill] sm:$0xff] }
 0x2f1   :  { %v5122_v35 = vpop.permute.xlu1 %5121  ;;  %v5129_v43 = vunpack.i.h.bf16 %v5127_v0  ;;  %v5128_v15 = vunpack.i.l.bf16 %v5127_v0  ;;  %v8046_v0 = vunpack.i.l.bf16 %v8045_v41 }
 0x2f2   :  { %v5124_v6 = vunpack.i.h.bf16 %v5122_v35  ;;  %v5123_v30 = vunpack.i.l.bf16 %v5122_v35 }
 0x2f3   :  { %v2948_v62 = vmax.f32 %v8037_v23, %v5129_v43 }
 0x2f4   :  { %v3007_v8 = vmax.f32 %v2975_v31, %v5124_v6  ;;  %v3006_v63 = vmax.f32 %v2974_v10, %v5123_v30  ;;  %v5137_v29 = vpop.permute.xlu0 %5136  ;;  %v8047_v10 = vld [vmem:[#allocation29_spill] sm:$0xff] }
 0x2f5   :  { %v5139_v38 = vunpack.i.h.bf16 %v5137_v29  ;;  %v5138_v9 = vunpack.i.l.bf16 %v5137_v29  ;;  %v5132_v45 = vpop.permute.xlu1 %5131  ;;  %v2947_v31 = vmax.f32 %v8047_v10, %v5128_v15 }
 0x2f6   :  { %v3015_v16 = vmax.f32 %v3007_v8, %v8035_v14  ;;  %v3014_v13 = vmax.f32 %v3006_v63, %v8036_v5  ;;  %v5134_v56 = vunpack.i.h.bf16 %v5132_v45  ;;  %v5133_v1 = vunpack.i.l.bf16 %v5132_v45 }
 0x2f7   :  { %v3005_v58 = vmax.f32 %v2973_v17, %v5138_v9  ;;  %v3008_v11 = vmax.f32 %v2976_v18, %v5139_v38  ;;  %v8050_v9 = vunpack.i.h.bf16 %v7527_v36 }
 0x2f8   :  { %v3055_v54 = vmax.f32 %v3015_v16, %v8039_v22  ;;  %v3054_v49 = vmax.f32 %v3014_v13, %v8040_v44  ;;  %v2977_v37 = vmax.f32 %v2945_v52, %v5133_v1  ;;  %v2978_v19 = vmax.f32 %v2946_v28, %v5134_v56  ;;  %v5147_v27 = vpop.permute.xlu0 %5146 }
 0x2f9   :  { %v3013_v47 = vmax.f32 %v3005_v58, %v8041_v40  ;;  %v3016_v51 = vmax.f32 %v3008_v11, %v8042_v53  ;;  %v5149_v55 = vunpack.i.h.bf16 %v5147_v27  ;;  %v5148_v33 = vunpack.i.l.bf16 %v5147_v27  ;;  %v5142_v57 = vpop.permute.xlu1 %5141  ;;  %v4012_v40 = vld [vmem:[%s7828_s5] sm:$0xf] }
 0x2fa   :  { %v3681_v50 = vrot.slane %v3055_v54, 6  ;;  %v3678_v20 = vrot.slane %v3054_v49, 7  ;;  %v5144_v34 = vunpack.i.h.bf16 %v5142_v57  ;;  %v5143_v60 = vunpack.i.l.bf16 %v5142_v57  ;;  %v8052_v49 = vld [vmem:[#allocation8_spill] sm:$0xff] }
 0x2fb   :  { %v3053_v2 = vmax.f32 %v3013_v47, %v8044_v25  ;;  %v3056_v4 = vmax.f32 %v3016_v51, %v8046_v0  ;;  %v3009_v32 = vmax.f32 %v2977_v37, %v5148_v33  ;;  %v3010_v35 = vmax.f32 %v2978_v19, %v5149_v55  ;;  %v8053_v19 = vld [vmem:[#allocation27_spill] sm:$0xff]  ;;  %v8054_v47 = vld [vmem:[#allocation17_spill] sm:$0xff] }
 0x2fc   :  { %v2980_v17 = vmax.f32 %v2948_v62, %v5144_v34  ;;  %v2979_v63 = vmax.f32 %v2947_v31, %v5143_v60  ;;  %v8049_v52 = vunpack.i.h.bf16 %v8048_v7  ;;  %v3849_v37 = vrot.slane %v3844_v12, %v8052_v49 }
 0x2fd   :  { %v3680_v6 = vsel %vm3679_vm6, %v3678_v20, %v3053_v2  ;;  %v3017_v30 = vmax.f32 %v3009_v32, %v7260_v3  ;;  %v3018_v43 = vmax.f32 %v3010_v35, %v7288_v21  ;;  %v5152_v18 = vpop.permute.xlu1 %5151  ;;  %v3684_v8 = vrot.slane %v3056_v4, 5 }
 0x2fe   :  { %v5154_v29 = vunpack.i.h.bf16 %v5152_v18  ;;  %v5153_v42 = vunpack.i.l.bf16 %v5152_v18  ;;  %v3683_v28 = vsel %vm3682_vm7, %v3681_v50, %v3680_v6  ;;  %v3857_v27 = vrot.slane %v3844_v12, %v8053_v19 }
 0x2ff   :  { %v3057_v38 = vmax.f32 %v3017_v30, %v8049_v52  ;;  %v3058_v45 = vmax.f32 %v3018_v43, %v8050_v9  ;;  %v3686_v21 = vsel %vm3685_vm8, %v3684_v8, %v3683_v28  ;;  %v3853_v53 = vrot.slane %v3844_v12, %v8054_v47 }
 0x300   :  { %v3011_v14 = vmax.f32 %v2979_v63, %v5153_v42  ;;  %v3012_v16 = vmax.f32 %v2980_v17, %v5154_v29  ;;  %v4017_v50 = vrot.slane %v4012_v40, %v8052_v49  ;;  %v4021_v25 = vrot.slane %v4012_v40, %v8054_v47 }
 0x301   :  { %v3687_v5 = vrot.slane %v3057_v38, 4  ;;  %v3690_v3 = vrot.slane %v3058_v45, 3  ;;  %v4025_v4 = vrot.slane %v4012_v40, %v8053_v19  ;;  %v8055_v63 = vlaneseq }
 0x302   :  { %v3019_v13 = vmax.f32 %v3011_v14, %v7347_v46  ;;  %v3020_v56 = vmax.f32 %v3012_v16, %v8022_v61  ;;  %v4044_v42 = vstv %s7829_s6 }
 0x303   :  { %v3689_v1 = vsel %vm3688_vm9, %v3687_v5, %v3686_v21  ;;  %v4048_v29 = vand.u32 127, %v8055_v63 }
 0x304   :  { %v3059_v23 = vmax.f32 %v3019_v13, %v5004_v59  ;;  %v3060_v62 = vmax.f32 %v3020_v56, %v5038_v26  ;;  %v3692_v36 = vsel %vm3691_vm10, %v3690_v3, %v3689_v1  ;;  %v8051_v26 = vld [vmem:[#allocation15_spill] sm:$0xff] }
 0x305   :  { %v3860_v44 = vsub.s32 3, %v8051_v26  ;;  %v4051_v28 = vsub.s32 %v4048_v29, %v8051_v26 }
 0x306   :  { %v3693_v15 = vrot.slane %v3059_v23, 2  ;;  %v3696_v58 = vrot.slane %v3060_v62, 1 }
 0x307   :  { %v3861_v51 = vrot.slane %v3844_v12, %v3860_v44  ;;  %v4029_v6 = vrot.slane %v4012_v40, %v3860_v44 }
 0x308   :  { %v3695_v11 = vsel %vm3694_vm11, %v3693_v15, %v3692_v36 }
 0x309   :  { %v3698_v24 = vsel %vm3697_vm12, %v3696_v58, %v3695_v11 }
 0x357   :  { %v3748_v61 = vpop.permute.xlu1 %3747 }
 0x35c   :  { %v3723_v46 = vpop.permute.xlu0 %3722 }
 0x35d   :  { %v3776_v22 = vsel %vm3775_vm13, %v3698_v24, %v3723_v46 }
 0x35e   :  { %v3777_v54 = vsel %vm81_vm0, %v3776_v22, %v3748_v61 }
 0x360   :  { %v3773_v39 = vpop.permute.xlu0 %3772 }
 0x361   :  { %v3779_v59 = vsel %vm3778_vm14, %v3777_v54, %v3773_v39 }
 0x362   :  { %3931 = vmatmul.mubr.f32.vlgmr.msra.gmra.mrb[120].mxu1 %v3779_v59  ;;  %4002 = vmatmul.mubr.f32.vlgmr.msra.gmra.mrb[120].mxu0 %v3779_v59 }
 0x435   :  { %v3932_v55 = vpop.f32.mrb[120].mxu1  ;;  %v4003_v33 = vpop.f32.mrb[120].mxu0 }
 0x436   :  { %v3933_v57 = vadd.f32 %v3932_v55, %v3849_v37  ;;  %v4004_v20 = vadd.f32 %v4003_v33, %v3857_v27  ;;  %v3934_v34 = vpop.f32.mrb[121].mxu1  ;;  %v4005_v60 = vpop.f32.mrb[121].mxu0 }
 0x437   :  { %v3935_v48 = vadd.f32 %v3934_v34, %v3853_v53  ;;  %v4006_v2 = vadd.f32 %v4005_v60, %v3861_v51 }
 0x438   :  { %v4008_v41 = vmax.f32 %v3933_v57, 0.0  ;;  %v4010_v0 = vmax.f32 %v4004_v20, 0.0 }
 0x439   :  { %v4009_v32 = vmax.f32 %v3935_v48, 0.0  ;;  %v4011_v31 = vmax.f32 %v4006_v2, 0.0 }
 0x43a   :  { %v4034_v35 = vmul.f32 %v4017_v50, %v4008_v41  ;;  %v4036_v30 = vmul.f32 %v4025_v4, %v4010_v0 }
 0x43b   :  { %v4035_v10 = vmul.f32 %v4021_v25, %v4009_v32  ;;  %v4037_v17 = vmul.f32 %v4029_v6, %v4011_v31 }
 0x43d   :  { %v4038_v43 = vadd.f32 %v4035_v10, %v4034_v35 }
 0x43f   :  { %v4039_v18 = vadd.f32 %v4038_v43, %v4036_v30 }
 0x441   :  { %v4040_v8 = vadd.f32 %v4039_v18, %v4037_v17 }
 0x443   :  { %4041 = vadd.xlane.f32.xlu1 %v4040_v8 }
 0x4d0   :  { %v4042_v7 = vpop.xlane.xlu1 %4041 }
 0x4d1   :  { %v4045_v52 = vadd.f32 %v4044_v42, %v4042_v7 }
 0x4d3   :  { %v4052_v38 = vrot.slane %v4045_v52, %v4051_v28 }
 0x4d5   :  { %4055 = vst.msk [vmem:[%s7830_s7] sm:$0x1] %vm4054_vm15, %v4052_v38 }
 0x4d6   :  { %4060 = vsyncpa [#allocation4], 1 }

</bundles_post_ra>
